<compile_context>
chip_gen: v7x
topology: tpu7x:2x2x1
jax: 0.10.0
libtpu: 0.0.40
codegen_flags: <defaults>
</compile_context>

<pallas_src>
import functools

import jax
import jax.numpy as jnp
from jax import lax
from jax.experimental import pallas as pl
from jax.experimental.pallas import tpu as pltpu


# ----------------------------- Pallas kernel --------------------------------
def _make_conv_bn_relu_kernel(taps, Wp, Mblk, stride, tile_row_stride, n_tiles, fuse_taps):
    """taps: static [(kh, kw)]; Wp: padded width (multiple of 8); Mblk = OH_T * Wp."""

    def kernel(x_ref, w_ref, sb_ref, o_ref):
        # x_ref  : (Lin, C_in)   flattened, spatially padded NHWC image (bf16), whole image
        # w_ref  : fused   -> (KH*KW*C_in, Cp) bf16
        #          unfused -> (KH*KW, C_in, Cp) bf16
        # sb_ref : (2, Cp)       row 0 = BN scale, row 1 = BN bias (f32)
        # o_ref  : (Mblk, Cp)    output rows of this OH tile in (OH_T, Wp) coords
        if n_tiles == 1:
            base = 0                                             # static offsets (fast path)
        else:
            base = pl.multiple_of(pl.program_id(1) * tile_row_stride, 8)

        def tap_view(kh, kw):
            off = kh * Wp + kw
            if stride == 1:
                return x_ref[pl.ds(base + off, Mblk), :]
            # TODO(synk): for stride > 1, ~(stride-1)/stride of the computed columns are
            # discarded by the glue; compacting them would recover that compute/writeback.
            return x_ref[pl.ds(base + off, Mblk, stride=stride), :]

        if fuse_taps:
            # One MXU dot with K = KH*KW*C_in (single push, MRB/register accumulation).
            # The f32 round-trip keeps the lane concatenation in the most widely supported
            # 32-bit layout and is numerically exact for bf16 inputs.
            lhs = jnp.concatenate(
                [tap_view(kh, kw).astype(jnp.float32) for kh, kw in taps], axis=-1)
            acc = jnp.dot(lhs.astype(jnp.bfloat16), w_ref[...],
                          preferred_element_type=jnp.float32)
        else:
            # Per-tap dots, accumulated in registers (no VMEM accumulator RMW, one store).
            acc = None
            for t, (kh, kw) in enumerate(taps):
                contrib = jnp.dot(tap_view(kh, kw), w_ref[t],
                                  preferred_element_type=jnp.float32)
                acc = contrib if acc is None else acc + contrib

        y = acc * sb_ref[0:1, :] + sb_ref[1:2, :]                # BN (eval-mode fold)
        o_ref[...] = jnp.maximum(y, 0.0).astype(o_ref.dtype)     # ReLU + single store

    return kernel


# ------------------------------ module wrapper --------------------------------
@functools.partial(jax.jit, static_argnames=("stride", "padding", "out_dtype", "fuse_taps"))
def conv2d_block_forward(x, weight, gamma, beta, running_mean, running_var,
                         *, stride=1, padding=1, eps=1e-3,
                         out_dtype=jnp.float32, fuse_taps=True):
    """Equivalent of Conv2dBlock.forward (eval-mode BN).

    x      : (N, C_in, H, W)          float32, NCHW (PyTorch convention)
    weight : (C_out, C_in, KH, KW)    float32, bias-free conv weight
    """
    N, C_in, H, W = x.shape
    C_out, C_in_w, KH, KW = weight.shape
    assert C_in == C_in_w, (C_in, C_in_w)
    assert stride >= 1

    Hp = H + 2 * padding
    Wp_raw = W + 2 * padding
    Wp = ((Wp_raw + 7) // 8) * 8                 # sublane-aligned padded width
    OH = (Hp - KH) // stride + 1
    OW = (Wp_raw - KW) // stride + 1
    Cp = ((C_out + 127) // 128) * 128            # lane-dense output channels
    K_tot = KH * KW * C_in
    out_isz = jnp.dtype(out_dtype).itemsize

    # ---- VMEM-capacity-aware OH tiling (v7x: 64 MiB, v5e/v6e: 128 MiB) ----
    try:
        vmem_cap = int(pltpu.get_tpu_info().vmem_capacity_bytes)
    except Exception:
        vmem_cap = 64 << 20
    budget = max(32 << 20, min(vmem_cap - (8 << 20), 100 << 20))

    def plan(oh_t):
        n_tiles = -(-OH // oh_t)
        oh_pad = n_tiles * oh_t
        m_blk = oh_t * Wp
        # Max flat row touched by any (tile, tap, output position) + 1.
        lin_needed = stride * oh_pad * Wp + (KH - 1) * Wp + KW - stride
        rows = max(Hp, -(-lin_needed // Wp))
        lin = rows * Wp
        est = (2 * lin * C_in * 2            # input block (bf16), double-buffered
               + 2 * K_tot * Cp * 2          # weight (bf16), double-buffered (constant idx)
               + 2 * 2 * Cp * 4              # BN scale/bias
               + 2 * m_blk * Cp * out_isz)   # output tile, double-buffered
        return est, n_tiles, oh_pad, m_blk, rows, lin

    OH_T = OH
    while OH_T > 1 and plan(OH_T)[0] > budget:
        OH_T -= 1
    est, T, OH_pad, Mblk, rows, Lin = plan(OH_T)
    extra_rows = rows - Hp

    # ---- glue: NCHW -> flattened, spatially padded NHWC (bf16) ----
    x_nhwc = jnp.transpose(x.astype(jnp.bfloat16), (0, 2, 3, 1))
    x_padded = jnp.pad(x_nhwc, ((0, 0),
                                (padding, padding + extra_rows),
                                (padding, padding + (Wp - Wp_raw)),
                                (0, 0)))
    x_flat = x_padded.reshape(N, Lin, C_in)

    # ---- weight: (C_out, C_in, KH, KW) -> (KH, KW, C_in, Cp) -> kernel layout (bf16) ----
    w4 = jnp.transpose(weight, (2, 3, 1, 0)).astype(jnp.bfloat16)       # (KH, KW, C_in, C_out)
    w4 = jnp.pad(w4, ((0, 0), (0, 0), (0, 0), (0, Cp - C_out)))
    if fuse_taps:
        w = w4.reshape(K_tot, Cp)
        w_spec = pl.BlockSpec((K_tot, Cp), lambda n, t: (0, 0))
    else:
        w = w4.reshape(KH * KW, C_in, Cp)
        w_spec = pl.BlockSpec((KH * KW, C_in, Cp), lambda n, t: (0, 0, 0))

    # ---- eval-mode BN fold, packed into one (2, Cp) f32 operand ----
    inv_std = 1.0 / jnp.sqrt(running_var.astype(jnp.float32) + eps)
    scale = gamma.astype(jnp.float32) * inv_std
    bias = beta.astype(jnp.float32) - running_mean.astype(jnp.float32) * scale
    sb = jnp.stack([jnp.pad(scale, (0, Cp - C_out)),
                    jnp.pad(bias, (0, Cp - C_out))])                    # (2, Cp)

    taps = [(kh, kw) for kh in range(KH) for kw in range(KW)]
    kernel = _make_conv_bn_relu_kernel(taps, Wp, Mblk, stride,
                                       OH_T * stride * Wp, T, fuse_taps)

    flops = 2 * N * OH * OW * C_out * C_in * KH * KW
    bytes_accessed = (N * Lin * C_in * 2 + K_tot * Cp * 2 + 2 * Cp * 4
                      + N * OH_pad * Wp * Cp * out_isz)
    cost = pl.CostEstimate(flops=flops, transcendentals=0, bytes_accessed=bytes_accessed)

    vmem_limit = int(min(max(est + (8 << 20), 32 << 20), vmem_cap - (4 << 20)))

    out = pl.pallas_call(
        kernel,
        out_shape=jax.ShapeDtypeStruct((N, OH_pad * Wp, Cp), out_dtype),
        grid_spec=pltpu.PrefetchScalarGridSpec(
            num_scalar_prefetch=0,
            grid=(N, T),
            in_specs=[
                # Per-image padded input, resident across the OH tiles of an image
                # (index_map constant in t => re-DMA'd only when the image changes).
                pl.BlockSpec((None, Lin, C_in), lambda n, t: (n, 0, 0)),
                # Constant weight / BN operands (never re-copied across grid steps).
                # TODO(synk): single-buffer these (pl.Buffered(1)) once portable.
                w_spec,
                pl.BlockSpec((2, Cp), lambda n, t: (0, 0)),
            ],
            out_specs=pl.BlockSpec((None, Mblk, Cp), lambda n, t: (n, t, 0)),
        ),
        compiler_params=pltpu.CompilerParams(
            dimension_semantics=("parallel", "parallel"),
            vmem_limit_bytes=vmem_limit,
        ),
        cost_estimate=cost,
    )(x_flat, w, sb)

    # ---- glue: drop padded rows / columns / channels, back to NCHW ----
    out = out.reshape(N, OH_pad, Wp, Cp)[:, :OH, :OW, :C_out]
    return jnp.transpose(out, (0, 3, 1, 2))


# ---------------------------------- main --------------------------------------
if __name__ == "__main__":
    key = jax.random.PRNGKey(0)
    k_x, k_w, k_g, k_b, k_m, k_v = jax.random.split(key, 6)

    # Small shapes consistent with the module: Conv2d(4 -> 8, k=3, padding=1), stride 1.
    N, C_in, H, W = 2, 4, 16, 16
    C_out, KH, KW = 8, 3, 3
    stride, padding, eps = 1, 1, 1e-3

    x = jax.random.normal(k_x, (N, C_in, H, W), dtype=jnp.float32)
    weight = jax.random.normal(k_w, (C_out, C_in, KH, KW), dtype=jnp.float32) * 0.1
    gamma = jax.random.normal(k_g, (C_out,), dtype=jnp.float32) * 0.1 + 1.0
    beta = jax.random.normal(k_b, (C_out,), dtype=jnp.float32) * 0.1
    running_mean = jax.random.normal(k_m, (C_out,), dtype=jnp.float32) * 0.1
    running_var = jnp.abs(jax.random.normal(k_v, (C_out,), dtype=jnp.float32)) * 0.1 + 1.0

    def run(fuse, out_dtype):
        y = conv2d_block_forward(x, weight, gamma, beta, running_mean, running_var,
                                 stride=stride, padding=padding, eps=eps,
                                 out_dtype=out_dtype, fuse_taps=fuse)
        return jax.block_until_ready(y)

    # Prefer the fused single-dot kernel; fall back to the per-tap register-accumulating
    # kernel if this Mosaic build rejects the unaligned lane concatenation.
    try:
        out = run(True, jnp.float32)
        fused = True
    except Exception:
        out = run(False, jnp.float32)
        fused = False

    # Reference: XLA conv on the same bf16-rounded operands (the kernel uses bf16 inputs
    # with f32 accumulation), eval-mode BN fold, ReLU.
    x_r = x.astype(jnp.bfloat16).astype(jnp.float32)
    w_r = weight.astype(jnp.bfloat16).astype(jnp.float32)
    ref_conv = lax.conv_general_dilated(
        x_r, w_r, window_strides=(stride, stride),
        padding=((padding, padding), (padding, padding)),
        dimension_numbers=("NCHW", "OIHW", "NCHW"),
        precision=lax.Precision.HIGHEST)
    inv_std = 1.0 / jnp.sqrt(running_var + eps)
    s = (gamma * inv_std).reshape(1, C_out, 1, 1)
    b = (beta - running_mean * gamma * inv_std).reshape(1, C_out, 1, 1)
    ref = jnp.maximum(ref_conv * s + b, 0.0)

    assert out.shape == (N, C_out, H, W), out.shape
    assert jnp.allclose(out, ref, rtol=2e-3, atol=2e-3), float(jnp.max(jnp.abs(out - ref)))

    # bf16-output variant (halves output writeback and the double-buffered output tile).
    out_bf16 = run(fused, jnp.bfloat16).astype(jnp.float32)
    assert jnp.allclose(out_bf16, ref, rtol=2e-2, atol=2e-2), \
        float(jnp.max(jnp.abs(out_bf16 - ref)))

    print("KERNEL_OK")
</pallas_src>

<mosaic_0001>
module attributes {stable_mosaic.version = 11 : i64} {
  func.func @kernel(%arg0: i32, %arg1: i32, %arg2: memref<1x456x4xbf16, #tpu.memory_space<vmem>>, %arg3: memref<36x128xbf16, #tpu.memory_space<vmem>>, %arg4: memref<2x128xf32, #tpu.memory_space<vmem>>, %arg5: memref<1x384x128xf32, #tpu.memory_space<vmem>>) attributes {dimension_semantics = [#tpu.dimension_semantics<parallel>, #tpu.dimension_semantics<parallel>], iteration_bounds = array<i64: 2, 1>, scalar_prefetch = 0 : i64, scratch_operands = 0 : i64, tpu.core_type = #tpu.core_type<tc>, window_params = [{transform_indices = @transform_0, window_bounds = array<i64: 1, 456, 4>}, {pipeline_mode = #tpu.pipeline_mode<synchronous>, transform_indices = @transform_1, window_bounds = array<i64: 36, 128>}, {pipeline_mode = #tpu.pipeline_mode<synchronous>, transform_indices = @transform_2, window_bounds = array<i64: 2, 128>}, {transform_indices = @transform_3, window_bounds = array<i64: 1, 384, 128>}]} {
    %c0 = arith.constant 0 : index
    %c0_0 = arith.constant 0 : index
    %c0_1 = arith.constant 0 : index
    %0 = vector.load %arg2[%c0, %c0_0, %c0_1] : memref<1x456x4xbf16, #tpu.memory_space<vmem>>, vector<1x384x4xbf16>
    %1 = vector.shape_cast %0 : vector<1x384x4xbf16> to vector<384x4xbf16>
    %2 = arith.extf %1 : vector<384x4xbf16> to vector<384x4xf32>
    %c0_2 = arith.constant 0 : index
    %c1 = arith.constant 1 : index
    %c0_3 = arith.constant 0 : index
    %3 = vector.load %arg2[%c0_2, %c1, %c0_3] : memref<1x456x4xbf16, #tpu.memory_space<vmem>>, vector<1x384x4xbf16>
    %4 = vector.shape_cast %3 : vector<1x384x4xbf16> to vector<384x4xbf16>
    %5 = arith.extf %4 : vector<384x4xbf16> to vector<384x4xf32>
    %c0_4 = arith.constant 0 : index
    %c2 = arith.constant 2 : index
    %c0_5 = arith.constant 0 : index
    %6 = vector.load %arg2[%c0_4, %c2, %c0_5] : memref<1x456x4xbf16, #tpu.memory_space<vmem>>, vector<1x384x4xbf16>
    %7 = vector.shape_cast %6 : vector<1x384x4xbf16> to vector<384x4xbf16>
    %8 = arith.extf %7 : vector<384x4xbf16> to vector<384x4xf32>
    %c0_6 = arith.constant 0 : index
    %c24 = arith.constant 24 : index
    %c0_7 = arith.constant 0 : index
    %9 = vector.load %arg2[%c0_6, %c24, %c0_7] : memref<1x456x4xbf16, #tpu.memory_space<vmem>>, vector<1x384x4xbf16>
    %10 = vector.shape_cast %9 : vector<1x384x4xbf16> to vector<384x4xbf16>
    %11 = arith.extf %10 : vector<384x4xbf16> to vector<384x4xf32>
    %c0_8 = arith.constant 0 : index
    %c25 = arith.constant 25 : index
    %c0_9 = arith.constant 0 : index
    %12 = vector.load %arg2[%c0_8, %c25, %c0_9] : memref<1x456x4xbf16, #tpu.memory_space<vmem>>, vector<1x384x4xbf16>
    %13 = vector.shape_cast %12 : vector<1x384x4xbf16> to vector<384x4xbf16>
    %14 = arith.extf %13 : vector<384x4xbf16> to vector<384x4xf32>
    %c0_10 = arith.constant 0 : index
    %c26 = arith.constant 26 : index
    %c0_11 = arith.constant 0 : index
    %15 = vector.load %arg2[%c0_10, %c26, %c0_11] : memref<1x456x4xbf16, #tpu.memory_space<vmem>>, vector<1x384x4xbf16>
    %16 = vector.shape_cast %15 : vector<1x384x4xbf16> to vector<384x4xbf16>
    %17 = arith.extf %16 : vector<384x4xbf16> to vector<384x4xf32>
    %c0_12 = arith.constant 0 : index
    %c48 = arith.constant 48 : index
    %c0_13 = arith.constant 0 : index
    %18 = vector.load %arg2[%c0_12, %c48, %c0_13] : memref<1x456x4xbf16, #tpu.memory_space<vmem>>, vector<1x384x4xbf16>
    %19 = vector.shape_cast %18 : vector<1x384x4xbf16> to vector<384x4xbf16>
    %20 = arith.extf %19 : vector<384x4xbf16> to vector<384x4xf32>
    %c0_14 = arith.constant 0 : index
    %c49 = arith.constant 49 : index
    %c0_15 = arith.constant 0 : index
    %21 = vector.load %arg2[%c0_14, %c49, %c0_15] : memref<1x456x4xbf16, #tpu.memory_space<vmem>>, vector<1x384x4xbf16>
    %22 = vector.shape_cast %21 : vector<1x384x4xbf16> to vector<384x4xbf16>
    %23 = arith.extf %22 : vector<384x4xbf16> to vector<384x4xf32>
    %c0_16 = arith.constant 0 : index
    %c50 = arith.constant 50 : index
    %c0_17 = arith.constant 0 : index
    %24 = vector.load %arg2[%c0_16, %c50, %c0_17] : memref<1x456x4xbf16, #tpu.memory_space<vmem>>, vector<1x384x4xbf16>
    %25 = vector.shape_cast %24 : vector<1x384x4xbf16> to vector<384x4xbf16>
    %26 = arith.extf %25 : vector<384x4xbf16> to vector<384x4xf32>
    %27 = tpu.concatenate %2, %5, %8, %11, %14, %17, %20, %23, %26 in 1 : vector<384x4xf32>, vector<384x4xf32>, vector<384x4xf32>, vector<384x4xf32>, vector<384x4xf32>, vector<384x4xf32>, vector<384x4xf32>, vector<384x4xf32>, vector<384x4xf32> -> vector<384x36xf32>
    %28 = arith.truncf %27 : vector<384x36xf32> to vector<384x36xbf16>
    %c0_18 = arith.constant 0 : index
    %c0_19 = arith.constant 0 : index
    %29 = vector.load %arg3[%c0_18, %c0_19] : memref<36x128xbf16, #tpu.memory_space<vmem>>, vector<36x128xbf16>
    %cst = arith.constant dense<0.000000e+00> : vector<384x128xf32>
    %30 = tpu.matmul %28, %29, %cst {dimension_numbers = #tpu.dot_dimension_numbers<[1], [0], [0], [1], [0, 0, 1, 1], [], []>} : vector<384x36xbf16>, vector<36x128xbf16>, vector<384x128xf32> -> vector<384x128xf32>
    %c0_20 = arith.constant 0 : index
    %c0_21 = arith.constant 0 : index
    %31 = vector.load %arg4[%c0_20, %c0_21] : memref<2x128xf32, #tpu.memory_space<vmem>>, vector<1x128xf32>
    %32 = vector.broadcast %31 : vector<1x128xf32> to vector<384x128xf32>
    %33 = arith.mulf %30, %32 : vector<384x128xf32>
    %c1_22 = arith.constant 1 : index
    %c0_23 = arith.constant 0 : index
    %34 = vector.load %arg4[%c1_22, %c0_23] : memref<2x128xf32, #tpu.memory_space<vmem>>, vector<1x128xf32>
    %35 = vector.broadcast %34 : vector<1x128xf32> to vector<384x128xf32>
    %36 = arith.addf %33, %35 : vector<384x128xf32>
    %cst_24 = arith.constant 0.000000e+00 : f32
    %37 = vector.broadcast %cst_24 : f32 to vector<384x128xf32>
    %38 = arith.maximumf %36, %37 : vector<384x128xf32>
    %c0_25 = arith.constant 0 : index
    %c0_26 = arith.constant 0 : index
    %c0_27 = arith.constant 0 : index
    %39 = vector.load %arg5[%c0_25, %c0_26, %c0_27] : memref<1x384x128xf32, #tpu.memory_space<vmem>>, vector<1x384x128xf32>
    %40 = vector.shape_cast %39 : vector<1x384x128xf32> to vector<384x128xf32>
    %41 = vector.shape_cast %38 : vector<384x128xf32> to vector<1x384x128xf32>
    tpu.vector_store %arg5[%c0_25, %c0_26, %c0_27], %41 {strides = array<i32>} : memref<1x384x128xf32, #tpu.memory_space<vmem>>, vector<1x384x128xf32>,
    return
  }
  func.func @transform_0(%arg0: i32, %arg1: i32) -> (i32, i32, i32) {
    %c0_i32 = arith.constant 0 : i32
    %c0_i32_0 = arith.constant 0 : i32
    %c0_i32_1 = arith.constant 0 : i32
    return %arg0, %c0_i32, %c0_i32_0 : i32, i32, i32
  }
  func.func @transform_1(%arg0: i32, %arg1: i32) -> (i32, i32) {
    %c0_i32 = arith.constant 0 : i32
    %c0_i32_0 = arith.constant 0 : i32
    %c0_i32_1 = arith.constant 0 : i32
    return %c0_i32, %c0_i32_0 : i32, i32
  }
  func.func @transform_2(%arg0: i32, %arg1: i32) -> (i32, i32) {
    %c0_i32 = arith.constant 0 : i32
    %c0_i32_0 = arith.constant 0 : i32
    %c0_i32_1 = arith.constant 0 : i32
    return %c0_i32, %c0_i32_0 : i32, i32
  }
  func.func @transform_3(%arg0: i32, %arg1: i32) -> (i32, i32, i32) {
    %c0_i32 = arith.constant 0 : i32
    %c0_i32_0 = arith.constant 0 : i32
    return %arg0, %arg1, %c0_i32 : i32, i32, i32
  }
}

module attributes {stable_mosaic.version = 11 : i64} {
  func.func @kernel(%arg0: i32, %arg1: i32, %arg2: memref<1x456x4xbf16, #tpu.memory_space<vmem>>, %arg3: memref<9x4x128xbf16, #tpu.memory_space<vmem>>, %arg4: memref<2x128xf32, #tpu.memory_space<vmem>>, %arg5: memref<1x384x128xf32, #tpu.memory_space<vmem>>) attributes {dimension_semantics = [#tpu.dimension_semantics<parallel>, #tpu.dimension_semantics<parallel>], iteration_bounds = array<i64: 2, 1>, scalar_prefetch = 0 : i64, scratch_operands = 0 : i64, tpu.core_type = #tpu.core_type<tc>, window_params = [{transform_indices = @transform_0, window_bounds = array<i64: 1, 456, 4>}, {pipeline_mode = #tpu.pipeline_mode<synchronous>, transform_indices = @transform_1, window_bounds = array<i64: 9, 4, 128>}, {pipeline_mode = #tpu.pipeline_mode<synchronous>, transform_indices = @transform_2, window_bounds = array<i64: 2, 128>}, {transform_indices = @transform_3, window_bounds = array<i64: 1, 384, 128>}]} {
    %c0 = arith.constant 0 : index
    %c0_0 = arith.constant 0 : index
    %c0_1 = arith.constant 0 : index
    %0 = vector.load %arg2[%c0, %c0_0, %c0_1] : memref<1x456x4xbf16, #tpu.memory_space<vmem>>, vector<1x384x4xbf16>
    %1 = vector.shape_cast %0 : vector<1x384x4xbf16> to vector<384x4xbf16>
    %c0_2 = arith.constant 0 : index
    %c0_3 = arith.constant 0 : index
    %c0_4 = arith.constant 0 : index
    %2 = vector.load %arg3[%c0_2, %c0_3, %c0_4] : memref<9x4x128xbf16, #tpu.memory_space<vmem>>, vector<1x4x128xbf16>
    %3 = vector.shape_cast %2 : vector<1x4x128xbf16> to vector<4x128xbf16>
    %cst = arith.constant dense<0.000000e+00> : vector<384x128xf32>
    %4 = tpu.matmul %1, %3, %cst {dimension_numbers = #tpu.dot_dimension_numbers<[1], [0], [0], [1], [0, 0, 1, 1], [], []>} : vector<384x4xbf16>, vector<4x128xbf16>, vector<384x128xf32> -> vector<384x128xf32>
    %c0_5 = arith.constant 0 : index
    %c1 = arith.constant 1 : index
    %c0_6 = arith.constant 0 : index
    %5 = vector.load %arg2[%c0_5, %c1, %c0_6] : memref<1x456x4xbf16, #tpu.memory_space<vmem>>, vector<1x384x4xbf16>
    %6 = vector.shape_cast %5 : vector<1x384x4xbf16> to vector<384x4xbf16>
    %c1_7 = arith.constant 1 : index
    %c0_8 = arith.constant 0 : index
    %c0_9 = arith.constant 0 : index
    %7 = vector.load %arg3[%c1_7, %c0_8, %c0_9] : memref<9x4x128xbf16, #tpu.memory_space<vmem>>, vector<1x4x128xbf16>
    %8 = vector.shape_cast %7 : vector<1x4x128xbf16> to vector<4x128xbf16>
    %cst_10 = arith.constant dense<0.000000e+00> : vector<384x128xf32>
    %9 = tpu.matmul %6, %8, %cst_10 {dimension_numbers = #tpu.dot_dimension_numbers<[1], [0], [0], [1], [0, 0, 1, 1], [], []>} : vector<384x4xbf16>, vector<4x128xbf16>, vector<384x128xf32> -> vector<384x128xf32>
    %10 = arith.addf %4, %9 : vector<384x128xf32>
    %c0_11 = arith.constant 0 : index
    %c2 = arith.constant 2 : index
    %c0_12 = arith.constant 0 : index
    %11 = vector.load %arg2[%c0_11, %c2, %c0_12] : memref<1x456x4xbf16, #tpu.memory_space<vmem>>, vector<1x384x4xbf16>
    %12 = vector.shape_cast %11 : vector<1x384x4xbf16> to vector<384x4xbf16>
    %c2_13 = arith.constant 2 : index
    %c0_14 = arith.constant 0 : index
    %c0_15 = arith.constant 0 : index
    %13 = vector.load %arg3[%c2_13, %c0_14, %c0_15] : memref<9x4x128xbf16, #tpu.memory_space<vmem>>, vector<1x4x128xbf16>
    %14 = vector.shape_cast %13 : vector<1x4x128xbf16> to vector<4x128xbf16>
    %cst_16 = arith.constant dense<0.000000e+00> : vector<384x128xf32>
    %15 = tpu.matmul %12, %14, %cst_16 {dimension_numbers = #tpu.dot_dimension_numbers<[1], [0], [0], [1], [0, 0, 1, 1], [], []>} : vector<384x4xbf16>, vector<4x128xbf16>, vector<384x128xf32> -> vector<384x128xf32>
    %16 = arith.addf %10, %15 : vector<384x128xf32>
    %c0_17 = arith.constant 0 : index
    %c24 = arith.constant 24 : index
    %c0_18 = arith.constant 0 : index
    %17 = vector.load %arg2[%c0_17, %c24, %c0_18] : memref<1x456x4xbf16, #tpu.memory_space<vmem>>, vector<1x384x4xbf16>
    %18 = vector.shape_cast %17 : vector<1x384x4xbf16> to vector<384x4xbf16>
    %c3 = arith.constant 3 : index
    %c0_19 = arith.constant 0 : index
    %c0_20 = arith.constant 0 : index
    %19 = vector.load %arg3[%c3, %c0_19, %c0_20] : memref<9x4x128xbf16, #tpu.memory_space<vmem>>, vector<1x4x128xbf16>
    %20 = vector.shape_cast %19 : vector<1x4x128xbf16> to vector<4x128xbf16>
    %cst_21 = arith.constant dense<0.000000e+00> : vector<384x128xf32>
    %21 = tpu.matmul %18, %20, %cst_21 {dimension_numbers = #tpu.dot_dimension_numbers<[1], [0], [0], [1], [0, 0, 1, 1], [], []>} : vector<384x4xbf16>, vector<4x128xbf16>, vector<384x128xf32> -> vector<384x128xf32>
    %22 = arith.addf %16, %21 : vector<384x128xf32>
    %c0_22 = arith.constant 0 : index
    %c25 = arith.constant 25 : index
    %c0_23 = arith.constant 0 : index
    %23 = vector.load %arg2[%c0_22, %c25, %c0_23] : memref<1x456x4xbf16, #tpu.memory_space<vmem>>, vector<1x384x4xbf16>
    %24 = vector.shape_cast %23 : vector<1x384x4xbf16> to vector<384x4xbf16>
    %c4 = arith.constant 4 : index
    %c0_24 = arith.constant 0 : index
    %c0_25 = arith.constant 0 : index
    %25 = vector.load %arg3[%c4, %c0_24, %c0_25] : memref<9x4x128xbf16, #tpu.memory_space<vmem>>, vector<1x4x128xbf16>
    %26 = vector.shape_cast %25 : vector<1x4x128xbf16> to vector<4x128xbf16>
    %cst_26 = arith.constant dense<0.000000e+00> : vector<384x128xf32>
    %27 = tpu.matmul %24, %26, %cst_26 {dimension_numbers = #tpu.dot_dimension_numbers<[1], [0], [0], [1], [0, 0, 1, 1], [], []>} : vector<384x4xbf16>, vector<4x128xbf16>, vector<384x128xf32> -> vector<384x128xf32>
    %28 = arith.addf %22, %27 : vector<384x128xf32>
    %c0_27 = arith.constant 0 : index
    %c26 = arith.constant 26 : index
    %c0_28 = arith.constant 0 : index
    %29 = vector.load %arg2[%c0_27, %c26, %c0_28] : memref<1x456x4xbf16, #tpu.memory_space<vmem>>, vector<1x384x4xbf16>
    %30 = vector.shape_cast %29 : vector<1x384x4xbf16> to vector<384x4xbf16>
    %c5 = arith.constant 5 : index
    %c0_29 = arith.constant 0 : index
    %c0_30 = arith.constant 0 : index
    %31 = vector.load %arg3[%c5, %c0_29, %c0_30] : memref<9x4x128xbf16, #tpu.memory_space<vmem>>, vector<1x4x128xbf16>
    %32 = vector.shape_cast %31 : vector<1x4x128xbf16> to vector<4x128xbf16>
    %cst_31 = arith.constant dense<0.000000e+00> : vector<384x128xf32>
    %33 = tpu.matmul %30, %32, %cst_31 {dimension_numbers = #tpu.dot_dimension_numbers<[1], [0], [0], [1], [0, 0, 1, 1], [], []>} : vector<384x4xbf16>, vector<4x128xbf16>, vector<384x128xf32> -> vector<384x128xf32>
    %34 = arith.addf %28, %33 : vector<384x128xf32>
    %c0_32 = arith.constant 0 : index
    %c48 = arith.constant 48 : index
    %c0_33 = arith.constant 0 : index
    %35 = vector.load %arg2[%c0_32, %c48, %c0_33] : memref<1x456x4xbf16, #tpu.memory_space<vmem>>, vector<1x384x4xbf16>
    %36 = vector.shape_cast %35 : vector<1x384x4xbf16> to vector<384x4xbf16>
    %c6 = arith.constant 6 : index
    %c0_34 = arith.constant 0 : index
    %c0_35 = arith.constant 0 : index
    %37 = vector.load %arg3[%c6, %c0_34, %c0_35] : memref<9x4x128xbf16, #tpu.memory_space<vmem>>, vector<1x4x128xbf16>
    %38 = vector.shape_cast %37 : vector<1x4x128xbf16> to vector<4x128xbf16>
    %cst_36 = arith.constant dense<0.000000e+00> : vector<384x128xf32>
    %39 = tpu.matmul %36, %38, %cst_36 {dimension_numbers = #tpu.dot_dimension_numbers<[1], [0], [0], [1], [0, 0, 1, 1], [], []>} : vector<384x4xbf16>, vector<4x128xbf16>, vector<384x128xf32> -> vector<384x128xf32>
    %40 = arith.addf %34, %39 : vector<384x128xf32>
    %c0_37 = arith.constant 0 : index
    %c49 = arith.constant 49 : index
    %c0_38 = arith.constant 0 : index
    %41 = vector.load %arg2[%c0_37, %c49, %c0_38] : memref<1x456x4xbf16, #tpu.memory_space<vmem>>, vector<1x384x4xbf16>
    %42 = vector.shape_cast %41 : vector<1x384x4xbf16> to vector<384x4xbf16>
    %c7 = arith.constant 7 : index
    %c0_39 = arith.constant 0 : index
    %c0_40 = arith.constant 0 : index
    %43 = vector.load %arg3[%c7, %c0_39, %c0_40] : memref<9x4x128xbf16, #tpu.memory_space<vmem>>, vector<1x4x128xbf16>
    %44 = vector.shape_cast %43 : vector<1x4x128xbf16> to vector<4x128xbf16>
    %cst_41 = arith.constant dense<0.000000e+00> : vector<384x128xf32>
    %45 = tpu.matmul %42, %44, %cst_41 {dimension_numbers = #tpu.dot_dimension_numbers<[1], [0], [0], [1], [0, 0, 1, 1], [], []>} : vector<384x4xbf16>, vector<4x128xbf16>, vector<384x128xf32> -> vector<384x128xf32>
    %46 = arith.addf %40, %45 : vector<384x128xf32>
    %c0_42 = arith.constant 0 : index
    %c50 = arith.constant 50 : index
    %c0_43 = arith.constant 0 : index
    %47 = vector.load %arg2[%c0_42, %c50, %c0_43] : memref<1x456x4xbf16, #tpu.memory_space<vmem>>, vector<1x384x4xbf16>
    %48 = vector.shape_cast %47 : vector<1x384x4xbf16> to vector<384x4xbf16>
    %c8 = arith.constant 8 : index
    %c0_44 = arith.constant 0 : index
    %c0_45 = arith.constant 0 : index
    %49 = vector.load %arg3[%c8, %c0_44, %c0_45] : memref<9x4x128xbf16, #tpu.memory_space<vmem>>, vector<1x4x128xbf16>
    %50 = vector.shape_cast %49 : vector<1x4x128xbf16> to vector<4x128xbf16>
    %cst_46 = arith.constant dense<0.000000e+00> : vector<384x128xf32>
    %51 = tpu.matmul %48, %50, %cst_46 {dimension_numbers = #tpu.dot_dimension_numbers<[1], [0], [0], [1], [0, 0, 1, 1], [], []>} : vector<384x4xbf16>, vector<4x128xbf16>, vector<384x128xf32> -> vector<384x128xf32>
    %52 = arith.addf %46, %51 : vector<384x128xf32>
    %c0_47 = arith.constant 0 : index
    %c0_48 = arith.constant 0 : index
    %53 = vector.load %arg4[%c0_47, %c0_48] : memref<2x128xf32, #tpu.memory_space<vmem>>, vector<1x128xf32>
    %54 = vector.broadcast %53 : vector<1x128xf32> to vector<384x128xf32>
    %55 = arith.mulf %52, %54 : vector<384x128xf32>
    %c1_49 = arith.constant 1 : index
    %c0_50 = arith.constant 0 : index
    %56 = vector.load %arg4[%c1_49, %c0_50] : memref<2x128xf32, #tpu.memory_space<vmem>>, vector<1x128xf32>
    %57 = vector.broadcast %56 : vector<1x128xf32> to vector<384x128xf32>
    %58 = arith.addf %55, %57 : vector<384x128xf32>
    %cst_51 = arith.constant 0.000000e+00 : f32
    %59 = vector.broadcast %cst_51 : f32 to vector<384x128xf32>
    %60 = arith.maximumf %58, %59 : vector<384x128xf32>
    %c0_52 = arith.constant 0 : index
    %c0_53 = arith.constant 0 : index
    %c0_54 = arith.constant 0 : index
    %61 = vector.load %arg5[%c0_52, %c0_53, %c0_54] : memref<1x384x128xf32, #tpu.memory_space<vmem>>, vector<1x384x128xf32>
    %62 = vector.shape_cast %61 : vector<1x384x128xf32> to vector<384x128xf32>
    %63 = vector.shape_cast %60 : vector<384x128xf32> to vector<1x384x128xf32>
    tpu.vector_store %arg5[%c0_52, %c0_53, %c0_54], %63 {strides = array<i32>} : memref<1x384x128xf32, #tpu.memory_space<vmem>>, vector<1x384x128xf32>,
    return
  }
  func.func @transform_0(%arg0: i32, %arg1: i32) -> (i32, i32, i32) {
    %c0_i32 = arith.constant 0 : i32
    %c0_i32_0 = arith.constant 0 : i32
    %c0_i32_1 = arith.constant 0 : i32
    return %arg0, %c0_i32, %c0_i32_0 : i32, i32, i32
  }
  func.func @transform_1(%arg0: i32, %arg1: i32) -> (i32, i32, i32) {
    %c0_i32 = arith.constant 0 : i32
    %c0_i32_0 = arith.constant 0 : i32
    %c0_i32_1 = arith.constant 0 : i32
    %c0_i32_2 = arith.constant 0 : i32
    return %c0_i32, %c0_i32_0, %c0_i32_1 : i32, i32, i32
  }
  func.func @transform_2(%arg0: i32, %arg1: i32) -> (i32, i32) {
    %c0_i32 = arith.constant 0 : i32
    %c0_i32_0 = arith.constant 0 : i32
    %c0_i32_1 = arith.constant 0 : i32
    return %c0_i32, %c0_i32_0 : i32, i32
  }
  func.func @transform_3(%arg0: i32, %arg1: i32) -> (i32, i32, i32) {
    %c0_i32 = arith.constant 0 : i32
    %c0_i32_0 = arith.constant 0 : i32
    return %arg0, %arg1, %c0_i32 : i32, i32, i32
  }
}

</mosaic_0001>

<bundles_post_ra>
// kernel: conv2d_block_forward.1
= control target key start
LH: loop header
LB: loop body
LE: loop exit
PB: predicated region body
PF: predicated region fallthrough
CT: control target
= control target key end

     0   :  { %s4085_s12 = smov 0   ;;  %s4087_s13 = smov 0   ;;  %s6819_s0 = inlined_call_operand.vmem [shape: bf16[2,456,4], index: 0, kind: input, shape index: {}]   ;;  %s6820_s1 = inlined_call_operand.vmem [shape: bf16[36,128], index: 1, kind: input, shape index: {}]   ;;  %s6821_s2 = inlined_call_operand.vmem [shape: f32[2,128], index: 2, kind: input, shape index: {}]   ;;  %s6822_s3 = inlined_call_operand.vmem [shape: f32[2,384,128], index: 3, kind: output, shape index: {}]  }
   0x1   :  { %s4089_s14 = smov 0  }
   0x2 LB: > { %s25_s15 = sadd.s32 1, %s4051_s13  ;;  %p2784_p0 = scmp.ge.s32.totalorder %s4055_s14, 1  ;;  %s4055_s14 = sphi %s4089_s14, %s13_s14   ;;  %s4051_s13 = sphi %s4087_s13, %s7668_s13   ;;  %s4047_s12 = sphi %s4085_s12, %s7667_s12  }
   0x3   : > { %p27_p1 = scmp.ge.s32.totalorder %s25_s15, 2  ;;  %p151_p2 = scmp.lt.s32.totalorder %s4055_s14, 3 }
   0x5   : > { %s7670_s15 = smov (%p27_p1, %s25_s15), 0  ;;  %p152_p3 = pnand %p2784_p0, %p151_p2 }
   0x7   : > { %155 = sbr.rel (%p152_p3) target bundleno = 757 (0x2f5), region = 32 }
   0xe   : > { %p179_p4 = scmp.lt.s32.totalorder %s4047_s12, 1  ;;  %vm364_vm0 = vcmask 1046528   ;;  %s4057_s20 = smov 4   ;;  %vm607_vm1 = vcmask 1045504   ;;  %vm1759_vm2 = vcmask 31744   ;;  %vm1808_vm3 = vcmask 64512  }
   0xf   : > { %s4058_s21 = smov 8   ;;  %s4059_s22 = smov 12   ;;  %vm1857_vm4 = vcmask 97280   ;;  %vm2268_vm5 = vcmask 1041408   ;;  %vm1906_vm6 = vcmask 130048   ;;  %vm1955_vm7 = vcmask 162816  }
  0x10   : > { %s7672_s12 = smov (!%p179_p4, %s4047_s12), 1  ;;  %s4060_s23 = smov 16   ;;  %vm2004_vm8 = vcmask 195584   ;;  %vm2053_vm9 = vcmask 228352   ;;  %vm2102_vm10 = vcmask 261120   ;;  %vm2195_vm11 = vcmask 293888  }
  0x11   : > { %s3036_s16 = smul.u32 228, %s7672_s12  ;;  %s4061_s24 = smov 20  }
  0x12   : > { %s4062_s25 = smov 24   ;;  %s4063_s30 = smov 28  }
  0x13   : > { %s4109_s19 = scalar_lea.vmem %s6819_s0, %s3036_s16  ;;  %s4064_s6 = smov 32  }
  0x14   : > { %v2923_v0 = vld [vmem:[%s4109_s19 + $0x10] sm:$0xff]   ;;  %v2924_v1 = vld [vmem:[%s4109_s19 + $0x18] sm:$0xff]   ;;  %v2922_v2 = vld [vmem:[%s4109_s19 + $0x8] sm:$0xff]   ;;  %s3037_s9 = smul.u32 384, %s7672_s12 }
  0x15   : > { %v4114_v3 = vunpack.c.h.bf16 %v2923_v0  ;;  %v4116_v4 = vunpack.c.l.bf16 %v2924_v1  ;;  %v4118_v5 = vunpack.c.h.bf16 %v2924_v1  ;;  %v4120_v6 = vunpack.c.l.bf16 %v2923_v0  ;;  %v4123_v7 = vld [vmem:[%s4109_s19] sm:$0xff]   ;;  %v2926_v24 = vld [vmem:[%s4109_s19 + $0x28] sm:$0xff]   ;;  %v2927_v29 = vld [vmem:[%s4109_s19 + $0x30] sm:$0xff]  }
  0x16   : > { %7099 = vst [vmem:[#allocation6_spill] sm:$0xff] %v4123_v7  ;;  %v4125_v8 = vunpack.c.h.bf16 %v2922_v2  ;;  %v6823_v9 = vunpack.c.l.bf16 %v4123_v7  ;;  %v4129_v10 = vunpack.c.h.bf16 %v4123_v7  ;;  %v4131_v11 = vunpack.c.l.bf16 %v2922_v2  ;;  %v2925_v12 = vld [vmem:[%s4109_s19 + $0x20] sm:$0xff]   ;;  %v2928_v30 = vld [vmem:[%s4109_s19 + $0x38] sm:$0xff]   ;;  %v2930_v44 = vld [vmem:[%s4109_s19 + $0x48] sm:$0xff]   ;;  %s6668_s12 = scalar_lea.vmem %s6822_s3, %s3037_s9 }
  0x17   : > { %7095 = vst [vmem:[#allocation2_spill] sm:$0xff] %v4114_v3  ;;  %7096 = vst [vmem:[#allocation3_spill] sm:$0xff] %v4116_v4  ;;  %v374_v13 = vrot.slane %v4114_v3, 1  ;;  %v376_v14 = vrot.slane %v4116_v4, 1  ;;  %v378_v15 = vrot.slane %v4118_v5, 1  ;;  %v372_v16 = vrot.slane %v4120_v6, 1 }
  0x18   : > { %7097 = vst [vmem:[#allocation4_spill] sm:$0xff] %v4118_v5  ;;  %7098 = vst [vmem:[#allocation5_spill] sm:$0xff] %v4120_v6  ;;  %v370_v17 = vrot.slane %v4125_v8, 1  ;;  %v365_v18 = vrot.slane %v6823_v9, 1  ;;  %v366_v19 = vrot.slane %v4129_v10, 1  ;;  %v368_v20 = vrot.slane %v4131_v11, 1 }
  0x19   : > { %7100 = vst [vmem:[#allocation7_spill] sm:$0xff] %v4125_v8  ;;  %7101 = vst [vmem:[#allocation8_spill] sm:$0xff] %v4129_v10  ;;  %v4144_v21 = vsel %vm364_vm0, %v374_v13, %v376_v14  ;;  %v4147_v22 = vsel %vm364_vm0, %v372_v16, %v374_v13  ;;  %v4149_v23 = vunpack.c.l.bf16 %v2925_v12  ;;  %v4153_v25 = vsel %vm364_vm0, %v376_v14, %v378_v15  ;;  %v2929_v39 = vld [vmem:[%s4109_s19 + $0x40] sm:$0xff]   ;;  %v2931_v57 = vld [vmem:[%s4109_s19 + $0x50] sm:$0xff]  }
  0x1a   : > { %7102 = vst [vmem:[#allocation9_spill] sm:$0xff] %v4131_v11  ;;  %7103 = vst [vmem:[#allocation10_spill] sm:$0xff] %v4144_v21  ;;  %v3080_v26 = vpack.i.bf16 %v4144_v21, %v4147_v22  ;;  %v4158_v27 = vsel %vm364_vm0, %v370_v17, %v372_v16  ;;  %v367_v28 = vsel %vm364_vm0, %v365_v18, %v366_v19  ;;  %v4170_v37 = vunpack.c.l.bf16 %v2926_v24  ;;  %v2932_v2 = vld [vmem:[%s4109_s19 + $0x58] sm:$0xff]   ;;  %v2933_v16 = vld [vmem:[%s4109_s19 + $0x60] sm:$0xff]  }
  0x1b   : > { %7104 = vst [vmem:[#allocation11_spill] sm:$0xff] %v4147_v22  ;;  %7105 = vst [vmem:[#allocation12_spill] sm:$0xff] %v4149_v23  ;;  %v369_v32 = vsel %vm364_vm0, %v366_v19, %v368_v20  ;;  %v380_v33 = vrot.slane %v4149_v23, 1  ;;  %v371_v34 = vsel %vm364_vm0, %v368_v20, %v370_v17  ;;  %v4172_v38 = vunpack.c.h.bf16 %v2926_v24  ;;  %v2934_v24 = vld [vmem:[%s4109_s19 + $0x68] sm:$0xff]   ;;  %v2936_v31 = vld [vmem:[%s4109_s19 + $0x78] sm:$0xff]  }
  0x1c   : > { %7106 = vst [vmem:[#allocation13_spill] sm:$0xff] %v4153_v25  ;;  %7107 = vst [vmem:[#allocation14_spill] sm:$0xff] %v4158_v27  ;;  %3081 = vrot.lane.b32.xlu1 %v3080_v26, %s4057_s20  ;;  %v3070_v35 = vpack.i.bf16 %v369_v32, %v367_v28  ;;  %v3075_v36 = vpack.i.bf16 %v4158_v27, %v371_v34  ;;  %v4178_v41 = vunpack.c.l.bf16 %v2927_v29  ;;  %v4180_v42 = vunpack.c.h.bf16 %v2925_v12  ;;  %v2937_v7 = vld [vmem:[%s4109_s19 + $0x80] sm:$0xff]  }
  0x1d   : > { %7108 = vst [vmem:[#allocation15_spill] sm:$0xff] %v4170_v37  ;;  %7109 = vst [vmem:[#allocation16_spill] sm:$0xff] %v4172_v38  ;;  %v4176_v40 = vsel %vm364_vm0, %v378_v15, %v380_v33  ;;  %v4182_v43 = vunpack.c.l.bf16 %v2928_v30  ;;  %v384_v46 = vrot.slane %v4170_v37, 1  ;;  %v386_v47 = vrot.slane %v4172_v38, 1 }
  0x1e   : > { %7110 = vst [vmem:[#allocation17_spill] sm:$0xff] %v4176_v40  ;;  %7111 = vst [vmem:[#allocation18_spill] sm:$0xff] %v4180_v42  ;;  %3071 = vrot.lane.b32.xlu0 %v3070_v35, %s4057_s20  ;;  %v4188_v45 = vpack.i.bf16 %v4176_v40, %v4153_v25  ;;  %v4192_v48 = vunpack.c.h.bf16 %v2928_v30  ;;  %v388_v49 = vrot.slane %v4178_v41, 1  ;;  %v382_v50 = vrot.slane %v4180_v42, 1 }
  0x1f   : > { %v4196_v51 = vunpack.c.l.bf16 %v2929_v39  ;;  %v392_v52 = vrot.slane %v4182_v43, 1  ;;  %v4202_v53 = vsel %vm364_vm0, %v384_v46, %v386_v47  ;;  %v4205_v55 = vunpack.c.h.bf16 %v2927_v29 }
  0x20   : > { %7112 = vst [vmem:[#allocation19_spill] sm:$0xff] %v4188_v45  ;;  %7113 = vst [vmem:[#allocation20_spill] sm:$0xff] %v4192_v48  ;;  %3086 = vrot.lane.b32.xlu1 %v4188_v45, %s4057_s20  ;;  %v394_v54 = vrot.slane %v4192_v48, 1  ;;  %v4207_v56 = vunpack.c.l.bf16 %v2930_v44  ;;  %v4211_v58 = vsel %vm364_vm0, %v386_v47, %v388_v49  ;;  %v4214_v59 = vsel %vm364_vm0, %v380_v33, %v382_v50  ;;  %v2935_v47 = vld [vmem:[%s4109_s19 + $0x70] sm:$0xff]  }
  0x21   : > { %7114 = vst [vmem:[#allocation21_spill] sm:$0xff] %v4196_v51  ;;  %7115 = vst [vmem:[#allocation22_spill] sm:$0xff] %v4202_v53  ;;  %v4217_v60 = vsel %vm364_vm0, %v382_v50, %v384_v46  ;;  %v396_v61 = vrot.slane %v4196_v51, 1  ;;  %v4223_v62 = vpack.i.bf16 %v4211_v58, %v4202_v53  ;;  %v390_v1 = vrot.slane %v4205_v55, 1 }
  0x22   : > { %7116 = vst [vmem:[#allocation23_spill] sm:$0xff] %v4211_v58  ;;  %7117 = vst [vmem:[#allocation24_spill] sm:$0xff] %v4214_v59  ;;  %3076 = vrot.lane.b32.xlu0 %v3075_v36, %s4057_s20  ;;  %v4227_v63 = vpack.i.bf16 %v4217_v60, %v4214_v59  ;;  %v4230_v0 = vsel %vm364_vm0, %v392_v52, %v394_v54  ;;  %v4237_v13 = vunpack.c.h.bf16 %v2930_v44  ;;  %v4239_v14 = vunpack.c.l.bf16 %v2931_v57 }
  0x23   : > { %7118 = vst [vmem:[#allocation25_spill] sm:$0xff] %v4217_v60  ;;  %7119 = vst [vmem:[#allocation26_spill] sm:$0xff] %v4223_v62  ;;  %v4235_v12 = vsel %vm364_vm0, %v394_v54, %v396_v61  ;;  %v400_v15 = vrot.slane %v4207_v56, 1  ;;  %v4250_v18 = vsel %vm364_vm0, %v388_v49, %v390_v1  ;;  %v4253_v19 = vsel %vm364_vm0, %v390_v1, %v392_v52 }
  0x24   : > { %7120 = vst [vmem:[#allocation27_spill] sm:$0xff] %v4227_v63  ;;  %7121 = vst [vmem:[#allocation28_spill] sm:$0xff] %v4230_v0  ;;  %3096 = vrot.lane.b32.xlu1 %v4223_v62, %s4057_s20  ;;  %v4247_v17 = vpack.i.bf16 %v4235_v12, %v4230_v0  ;;  %v4255_v20 = vunpack.c.h.bf16 %v2929_v39  ;;  %v4260_v26 = vpack.i.bf16 %v4253_v19, %v4250_v18  ;;  %v402_v28 = vrot.slane %v4237_v13, 1  ;;  %v2942_v0 = vld [vmem:[%s4109_s19 + $0xa8] sm:$0xff]  }
  0x25   : > { %7122 = vst [vmem:[#allocation29_spill] sm:$0xff] %v4235_v12  ;;  %7123 = vst [vmem:[#allocation30_spill] sm:$0xff] %v4239_v14  ;;  %v404_v29 = vrot.slane %v4239_v14, 1  ;;  %v4264_v30 = vunpack.c.l.bf16 %v2932_v2  ;;  %v4269_v33 = vunpack.c.h.bf16 %v2932_v2  ;;  %v4271_v34 = vunpack.c.l.bf16 %v2933_v16  ;;  %v2940_v12 = vld [vmem:[%s4109_s19 + $0x98] sm:$0xff]  }
  0x26   : > { %7124 = vst [vmem:[#allocation31_spill] sm:$0xff] %v4247_v17  ;;  %7125 = vst [vmem:[#allocation32_spill] sm:$0xff] %v4250_v18  ;;  %3091 = vrot.lane.b32.xlu0 %v4227_v63, %s4057_s20  ;;  %v398_v32 = vrot.slane %v4255_v20, 1  ;;  %v4273_v35 = vunpack.c.h.bf16 %v2931_v57  ;;  %v4276_v36 = vsel %vm364_vm0, %v400_v15, %v402_v28  ;;  %v4282_v46 = vunpack.c.l.bf16 %v2934_v24  ;;  %v2941_v18 = vld [vmem:[%s4109_s19 + $0xa0] sm:$0xff]  }
  0x27   : > { %7126 = vst [vmem:[#allocation33_spill] sm:$0xff] %v4253_v19  ;;  %7127 = vst [vmem:[#allocation34_spill] sm:$0xff] %v4260_v26  ;;  %v4279_v39 = vsel %vm364_vm0, %v402_v28, %v404_v29  ;;  %v408_v44 = vrot.slane %v4264_v30, 1  ;;  %v410_v54 = vrot.slane %v4269_v33, 1  ;;  %v412_v1 = vrot.slane %v4271_v34, 1 }
  0x28   : > { %7128 = vst [vmem:[#allocation35_spill] sm:$0xff] %v4264_v30  ;;  %7129 = vst [vmem:[#allocation36_spill] sm:$0xff] %v4269_v33  ;;  %3106 = vrot.lane.b32.xlu1 %v4247_v17, %s4057_s20  ;;  %v4289_v49 = vpack.i.bf16 %v4279_v39, %v4276_v36  ;;  %v4292_v50 = vsel %vm364_vm0, %v396_v61, %v398_v32  ;;  %v4295_v52 = vsel %vm364_vm0, %v398_v32, %v400_v15 }
  0x29   : > { %7130 = vst [vmem:[#allocation37_spill] sm:$0xff] %v4271_v34  ;;  %7131 = vst [vmem:[#allocation38_spill] sm:$0xff] %v4273_v35  ;;  %v4300_v57 = vpack.i.bf16 %v4295_v52, %v4292_v50  ;;  %v406_v2 = vrot.slane %v4273_v35, 1  ;;  %v4304_v28 = vunpack.c.h.bf16 %v2934_v24  ;;  %v4309_v61 = vsel %vm364_vm0, %v408_v44, %v410_v54 }
  0x2a   : > { %7132 = vst [vmem:[#allocation39_spill] sm:$0xff] %v4276_v36  ;;  %7133 = vst [vmem:[#allocation40_spill] sm:$0xff] %v4279_v39  ;;  %3101 = vrot.lane.b32.xlu0 %v4260_v26, %s4057_s20  ;;  %v4311_v15 = vunpack.c.l.bf16 %v2935_v47  ;;  %v416_v32 = vrot.slane %v4282_v46, 1  ;;  %v4314_v9 = vunpack.c.h.bf16 %v2933_v16  ;;  %v4319_v17 = vsel %vm364_vm0, %v410_v54, %v412_v1  ;;  %v2938_v39 = vld [vmem:[%s4109_s19 + $0x88] sm:$0xff]  }
  0x2b   : > { %7134 = vst [vmem:[#allocation41_spill] sm:$0xff] %v4282_v46  ;;  %7135 = vst [vmem:[#allocation42_spill] sm:$0xff] %v4289_v49  ;;  %v4322_v24 = vsel %vm364_vm0, %v404_v29, %v406_v2  ;;  %v4325_v26 = vsel %vm364_vm0, %v406_v2, %v408_v44  ;;  %v418_v62 = vrot.slane %v4304_v28, 1  ;;  %v4332_v16 = vpack.i.bf16 %v4319_v17, %v4309_v61 }
  0x2c   : > { %7136 = vst [vmem:[#allocation43_spill] sm:$0xff] %v4292_v50  ;;  %7137 = vst [vmem:[#allocation44_spill] sm:$0xff] %v4295_v52  ;;  %3116 = vrot.lane.b32.xlu1 %v4289_v49, %s4057_s20  ;;  %v420_v54 = vrot.slane %v4311_v15, 1  ;;  %v414_v63 = vrot.slane %v4314_v9, 1  ;;  %v4339_v44 = vunpack.c.l.bf16 %v2936_v31  ;;  %v4341_v2 = vunpack.c.h.bf16 %v2936_v31  ;;  %v2939_v31 = vld [vmem:[%s4109_s19 + $0x90] sm:$0xff]  }
  0x2d   : > { %7138 = vst [vmem:[#allocation45_spill] sm:$0xff] %v4300_v57  ;;  %7139 = vst [vmem:[#allocation46_spill] sm:$0xff] %v4304_v28  ;;  %v4337_v29 = vsel %vm364_vm0, %v416_v32, %v418_v62  ;;  %v4343_v45 = vunpack.c.l.bf16 %v2937_v7  ;;  %v4350_v49 = vpack.i.bf16 %v4325_v26, %v4322_v24  ;;  %v4358_v50 = vunpack.c.h.bf16 %v2935_v47 }
  0x2e   : > { %7140 = vst [vmem:[#allocation47_spill] sm:$0xff] %v4309_v61  ;;  %7141 = vst [vmem:[#allocation48_spill] sm:$0xff] %v4311_v15  ;;  %3111 = vrot.lane.b32.xlu0 %v4300_v57, %s4057_s20  ;;  %v4356_v61 = vsel %vm364_vm0, %v412_v1, %v414_v63  ;;  %v4367_v57 = vsel %vm364_vm0, %v414_v63, %v416_v32  ;;  %v4377_v52 = vunpack.c.h.bf16 %v2938_v39  ;;  %v4382_v63 = vunpack.c.l.bf16 %v2939_v31 }
  0x2f   : > { %7142 = vst [vmem:[#allocation49_spill] sm:$0xff] %v4314_v9  ;;  %7143 = vst [vmem:[#allocation50_spill] sm:$0xff] %v4319_v17  ;;  %v4353_v17 = vsel %vm364_vm0, %v418_v62, %v420_v54  ;;  %v426_v62 = vrot.slane %v4341_v2, 1  ;;  %v428_v47 = vrot.slane %v4343_v45, 1  ;;  %v422_v1 = vrot.slane %v4358_v50, 1 }
  0x30   : > { %7144 = vst [vmem:[#allocation51_spill] sm:$0xff] %v4322_v24  ;;  %7145 = vst [vmem:[#allocation52_spill] sm:$0xff] %v4325_v26  ;;  %v4364_v36 = vpack.i.bf16 %v4353_v17, %v4337_v29  ;;  %v424_v24 = vrot.slane %v4339_v44, 1  ;;  %3126 = vrot.lane.b32.xlu1 %v4332_v16, %s4057_s20  ;;  %v4375_v26 = vunpack.c.l.bf16 %v2938_v39  ;;  %v4384_v32 = vunpack.c.h.bf16 %v2937_v7 }
  0x31   : > { %7146 = vst [vmem:[#allocation53_spill] sm:$0xff] %v4332_v16  ;;  %7147 = vst [vmem:[#allocation54_spill] sm:$0xff] %v4337_v29  ;;  %v4386_v29 = vunpack.c.l.bf16 %v2940_v12  ;;  %v4393_v16 = vpack.i.bf16 %v4367_v57, %v4356_v61  ;;  %v4396_v39 = vsel %vm364_vm0, %v426_v62, %v428_v47  ;;  %v4399_v58 = vsel %vm364_vm0, %v420_v54, %v422_v1 }
  0x32   : > { %7148 = vst [vmem:[#allocation55_spill] sm:$0xff] %v4339_v44  ;;  %7149 = vst [vmem:[#allocation56_spill] sm:$0xff] %v4341_v2  ;;  %3121 = vrot.lane.b32.xlu0 %v4350_v49, %s4057_s20  ;;  %v432_v7 = vrot.slane %v4375_v26, 1  ;;  %v430_v54 = vrot.slane %v4384_v32, 1  ;;  %v4417_v59 = vunpack.c.l.bf16 %v2941_v18  ;;  %v4446_v60 = vunpack.c.h.bf16 %v2942_v0 }
  0x33   : > { %7150 = vst [vmem:[#allocation57_spill] sm:$0xff] %v4343_v45  ;;  %7151 = vst [vmem:[#allocation58_spill] sm:$0xff] %v4350_v49  ;;  %v4408_v49 = vsel %vm364_vm0, %v422_v1, %v424_v24  ;;  %v440_v40 = vrot.slane %v4386_v29, 1  ;;  %v4426_v1 = vunpack.c.h.bf16 %v2939_v31 }
  0x34   : > { %7152 = vst [vmem:[#allocation59_spill] sm:$0xff] %v4353_v17  ;;  %7153 = vst [vmem:[#allocation60_spill] sm:$0xff] %v4356_v61  ;;  %v4380_v17 = vsel %vm364_vm0, %v424_v24, %v426_v62  ;;  %v434_v61 = vrot.slane %v4377_v52, 1  ;;  %3136 = vrot.lane.b32.xlu1 %v4364_v36, %s4057_s20  ;;  %v4415_v62 = vunpack.c.h.bf16 %v2940_v12  ;;  %v4435_v12 = vpack.i.bf16 %v4408_v49, %v4399_v58 }
  0x35   : > { %7154 = vst [vmem:[#allocation61_spill] sm:$0xff] %v4358_v50  ;;  %7155 = vst [vmem:[#allocation62_spill] sm:$0xff] %v4364_v36  ;;  %v4405_v19 = vpack.i.bf16 %v4396_v39, %v4380_v17  ;;  %v2943_v36 = vld [vmem:[%s4109_s19 + $0xb0] sm:$0xff]   ;;  %v4438_v27 = vsel %vm364_vm0, %v428_v47, %v430_v54  ;;  %v4442_v22 = vsel %vm364_vm0, %v430_v54, %v432_v7  ;;  %v444_v31 = vrot.slane %v4417_v59, 1 }
  0x36   : > { %7156 = vst [vmem:[#allocation63_spill] sm:$0xff] %v4367_v57  ;;  %7157 = vst [vmem:[#allocation64_spill] sm:$0xff] %v4375_v26  ;;  %v436_v57 = vrot.slane %v4382_v63, 1  ;;  %3131 = vrot.lane.b32.xlu0 %v4393_v16, %s4057_s20  ;;  %v438_v53 = vrot.slane %v4426_v1, 1  ;;  %v4454_v47 = vunpack.c.l.bf16 %v2943_v36  ;;  %v450_v25 = vrot.slane %v4446_v60, 1 }
  0x37   : > { %7158 = vst [vmem:[#allocation65_spill] sm:$0xff] %v4377_v52  ;;  %7159 = vst [vmem:[#allocation66_spill] sm:$0xff] %v4380_v17  ;;  %v4428_v17 = vunpack.c.l.bf16 %v2942_v0 }
  0x38   : > { %7160 = vst [vmem:[#allocation67_spill] sm:$0xff] %v4382_v63  ;;  %7161 = vst [vmem:[#allocation68_spill] sm:$0xff] %v4384_v32  ;;  %v4424_v24 = vsel %vm364_vm0, %v434_v61, %v436_v57  ;;  %3146 = vrot.lane.b32.xlu1 %v4405_v19, %s4057_s20 }
  0x39   : > { %7162 = vst [vmem:[#allocation69_spill] sm:$0xff] %v4386_v29  ;;  %7163 = vst [vmem:[#allocation70_spill] sm:$0xff] %v4393_v16 }
  0x3a   : > { %7164 = vst [vmem:[#allocation71_spill] sm:$0xff] %v4396_v39  ;;  %7165 = vst [vmem:[#allocation72_spill] sm:$0xff] %v4399_v58  ;;  %v4421_v39 = vsel %vm364_vm0, %v432_v7, %v434_v61  ;;  %v442_v61 = vrot.slane %v4415_v62, 1  ;;  %v4456_v58 = vunpack.c.h.bf16 %v2941_v18  ;;  %v4460_v7 = vld [vmem:[%s4109_s19 + $0xc0] sm:$0x1]  ;;  %3141 = vrot.lane.b32.xlu0 %v4435_v12, %s4057_s20  ;;  %v4474_v18 = vpack.i.bf16 %v4442_v22, %v4438_v27 }
  0x3b   : > { %7166 = vst [vmem:[#allocation73_spill] sm:$0xff] %v4405_v19  ;;  %7167 = vst [vmem:[#allocation74_spill] sm:$0xff] %v4408_v49  ;;  %v4452_v16 = vpack.i.bf16 %v4424_v24, %v4421_v39  ;;  %v2944_v49 = vld [vmem:[%s4109_s19 + $0xb8] sm:$0xff]   ;;  %v448_v19 = vrot.slane %v4428_v17, 1 }
  0x3c   : > { %7168 = vst [vmem:[#allocation75_spill] sm:$0xff] %v4415_v62  ;;  %7169 = vst [vmem:[#allocation76_spill] sm:$0xff] %v4417_v59  ;;  %v4463_v54 = vsel %vm364_vm0, %v440_v40, %v442_v61  ;;  %v4466_v0 = vsel %vm364_vm0, %v442_v61, %v444_v31  ;;  %v452_v61 = vrot.slane %v4454_v47, 1  ;;  %v446_v21 = vrot.slane %v4456_v58, 1 }
  0x3d   : > { %7170 = vst [vmem:[#allocation77_spill] sm:$0xff] %v4421_v39  ;;  %7171 = vst [vmem:[#allocation78_spill] sm:$0xff] %v4424_v24  ;;  %v4477_v24 = vsel %vm364_vm0, %v436_v57, %v438_v53  ;;  %v4480_v39 = vsel %vm364_vm0, %v438_v53, %v440_v40  ;;  %3156 = vrot.lane.b32.xlu1 %v4452_v16, %s4057_s20  ;;  %v4493_v57 = vpack.i.bf16 %v4466_v0, %v4463_v54  ;;  %v293_v40 = vld [vmem:[%s4109_s19] sm:$0xe] }
  0x3e   : > { %7172 = vst [vmem:[#allocation79_spill] sm:$0xff] %v4426_v1  ;;  %7173 = vst [vmem:[#allocation80_spill] sm:$0xff] %v4428_v17  ;;  %v4484_v17 = vunpack.c.l.bf16 %v2944_v49  ;;  %v4499_v53 = vsel %vm364_vm0, %v448_v19, %v450_v25  ;;  %3151 = vrot.lane.b32.xlu0 %v4474_v18, %s4057_s20 }
  0x3f   : > { %7174 = vst [vmem:[#allocation81_spill] sm:$0xff] %v4435_v12  ;;  %7175 = vst [vmem:[#allocation82_spill] sm:$0xff] %v4438_v27  ;;  %v4495_v27 = vunpack.c.h.bf16 %v2943_v36  ;;  %v7193_v36 = vunpack.c.l.bf16 %v4460_v7 }
  0x40   : > { %7176 = vst [vmem:[#allocation83_spill] sm:$0xff] %v4442_v22  ;;  %7177 = vst [vmem:[#allocation84_spill] sm:$0xff] %v4446_v60  ;;  %v4486_v60 = vunpack.c.h.bf16 %v2944_v49  ;;  %v4502_v22 = vsel %vm364_vm0, %v450_v25, %v452_v61  ;;  %v456_v49 = vrot.slane %v4484_v17, 1  ;;  %v4520_v25 = vsel %vm364_vm0, %v446_v21, %v448_v19 }
  0x41   : > { %7178 = vst [vmem:[#allocation85_spill] sm:$0xff] %v4452_v16  ;;  %7179 = vst [vmem:[#allocation86_spill] sm:$0xff] %v4454_v47  ;;  %v4512_v16 = vpack.i.bf16 %v4480_v39, %v4477_v24  ;;  %3166 = vrot.lane.b32.xlu1 %v4493_v57, %s4057_s20  ;;  %v4538_v19 = vrot.slane %v4120_v6, 2 }
  0x42   : > { %7180 = vst [vmem:[#allocation87_spill] sm:$0xff] %v4456_v58  ;;  %7181 = vst [vmem:[#allocation88_spill] sm:$0xff] %v4463_v54  ;;  %v4506_v12 = vrot.slane %v4486_v60, 1  ;;  %v4517_v54 = vsel %vm364_vm0, %v444_v31, %v446_v21 }
  0x43   : > { %7182 = vst [vmem:[#allocation89_spill] sm:$0xff] %v4466_v0  ;;  %7183 = vst [vmem:[#allocation90_spill] sm:$0xff] %v4474_v18  ;;  %v460_v0 = vrot.slane %v7193_v36, 1  ;;  %v4527_v18 = vpack.i.bf16 %v4502_v22, %v4499_v53  ;;  %v613_v36 = vrot.slane %v4125_v8, 2  ;;  %3161 = vrot.lane.b32.xlu0 %v4512_v16, %s4057_s20 }
  0x44   : > { %7184 = vst [vmem:[#allocation91_spill] sm:$0xff] %v4477_v24  ;;  %7185 = vst [vmem:[#allocation92_spill] sm:$0xff] %v4480_v39  ;;  %v611_v24 = vrot.slane %v4131_v11, 2  ;;  %v4533_v31 = vsel %vm364_vm0, %v456_v49, %v4506_v12  ;;  %v629_v39 = vrot.slane %v4172_v38, 2 }
  0x45   : > { %7186 = vst [vmem:[#allocation93_spill] sm:$0xff] %v4484_v17  ;;  %7187 = vst [vmem:[#allocation94_spill] sm:$0xff] %v4486_v60  ;;  %v454_v17 = vrot.slane %v4495_v27, 1  ;;  %v294_v60 = vunpack.c.l.bf16 %v293_v40  ;;  %v461_v21 = vsel %vm364_vm0, %v4506_v12, %v460_v0  ;;  %v4544_v40 = vpack.i.bf16 %v4520_v25, %v4517_v54  ;;  %3176 = vrot.lane.b32.xlu1 %v4527_v18, %s4057_s20 }
  0x46   : > { %7188 = vst [vmem:[#allocation95_spill] sm:$0xff] %v4493_v57  ;;  %7189 = vst [vmem:[#allocation96_spill] sm:$0xff] %v4495_v27  ;;  %v609_v0 = vrot.slane %v4129_v10, 2  ;;  %v627_v10 = vrot.slane %v4170_v37, 2 }
  0x47   : > { %7190 = vst [vmem:[#allocation97_spill] sm:$0xff] %v4499_v53  ;;  %7191 = vst [vmem:[#allocation98_spill] sm:$0xff] %v4502_v22  ;;  %v4547_v11 = vsel %vm364_vm0, %v452_v61, %v454_v17  ;;  %v4550_v57 = vsel %vm364_vm0, %v454_v17, %v456_v49  ;;  %v608_v22 = vrot.slane %v294_v60, 2  ;;  %v3185_v53 = vpack.i.bf16 %v461_v21, %v4533_v31 }
  0x48   : > { %7192 = vst [vmem:[#allocation99_spill] sm:$0xff] %v4512_v16  ;;  %7194 = vst [vmem:[#allocation100_spill] sm:$0xff] %v4517_v54  ;;  %v614_v16 = vsel %vm607_vm1, %v611_v24, %v613_v36  ;;  %v616_v54 = vsel %vm607_vm1, %v613_v36, %v4538_v19  ;;  %v4561_v61 = vrot.slane %v4118_v5, 2  ;;  %v623_v17 = vrot.slane %v4149_v23, 2  ;;  %3171 = vrot.lane.b32.xlu0 %v4544_v40, %s4057_s20 }
  0x49   : > { %7195 = vst [vmem:[#allocation101_spill] sm:$0xff] %v4520_v25  ;;  %7196 = vst [vmem:[#allocation102_spill] sm:$0xff] %v4527_v18  ;;  %v619_v25 = vrot.slane %v4116_v4, 2  ;;  %v4568_v60 = vpack.i.bf16 %v4550_v57, %v4547_v11  ;;  %v610_v49 = vsel %vm607_vm1, %v608_v22, %v609_v0  ;;  %v612_v21 = vsel %vm607_vm1, %v609_v0, %v611_v24 }
  0x4a   : > { %7197 = vst [vmem:[#allocation103_spill] sm:$0xff] %v4533_v31  ;;  %7198 = vst [vmem:[#allocation104_spill] sm:$0xff] %v4544_v40  ;;  %v617_v36 = vrot.slane %v4114_v3, 2  ;;  %3186 = vrot.lane.b32.xlu1 %v3185_v53, %s4057_s20  ;;  %v3195_v18 = vpack.i.bf16 %v616_v54, %v614_v16  ;;  %v631_v22 = vrot.slane %v4178_v41, 2  ;;  %v3190_v24 = vpack.i.bf16 %v612_v21, %v610_v49 }
  0x4b   : > { %7199 = vst [vmem:[#allocation105_spill] sm:$0xff] %v4547_v11  ;;  %7200 = vst [vmem:[#allocation106_spill] sm:$0xff] %v4550_v57  ;;  %v4578_v40 = vsel %vm607_vm1, %v619_v25, %v4561_v61  ;;  %v4582_v11 = vsel %vm607_vm1, %v4561_v61, %v623_v17  ;;  %v625_v53 = vrot.slane %v4180_v42, 2  ;;  %v635_v21 = vrot.slane %v4182_v43, 2 }
  0x4c   : > { %7201 = vst [vmem:[#allocation107_spill] sm:$0xff] %v4561_v61  ;;  %7202 = vst [vmem:[#allocation108_spill] sm:$0xff] %v4568_v60  ;;  %3181 = vrot.lane.b32.xlu0 %v4568_v60, %s4057_s20  ;;  %v4589_v16 = vsel %vm607_vm1, %v4538_v19, %v617_v36  ;;  %v4592_v54 = vsel %vm607_vm1, %v617_v36, %v619_v25  ;;  %v3205_v0 = vpack.i.bf16 %v4582_v11, %v4578_v40 }
  0x4d   : > { %7203 = vst [vmem:[#allocation109_spill] sm:$0xff] %v4582_v11  ;;  %v4599_v61 = vsel %vm607_vm1, %v627_v10, %v629_v39  ;;  %v4602_v49 = vsel %vm607_vm1, %v629_v39, %v631_v22  ;;  %v637_v60 = vrot.slane %v4192_v48, 2  ;;  %v639_v25 = vrot.slane %v4196_v51, 2 }
  0x4e   : > { %3196 = vrot.lane.b32.xlu1 %v3195_v18, %s4058_s21  ;;  %7204 = vst [vmem:[#allocation110_spill] sm:$0xff] %v4599_v61  ;;  %7205 = vst [vmem:[#allocation111_spill] sm:$0xff] %v4602_v49  ;;  %v3200_v18 = vpack.i.bf16 %v4592_v54, %v4589_v16  ;;  %v4611_v36 = vsel %vm607_vm1, %v623_v17, %v625_v53  ;;  %v4614_v11 = vsel %vm607_vm1, %v625_v53, %v627_v10 }
  0x4f   : > { %7206 = vst [vmem:[#allocation112_spill] sm:$0xff] %v4611_v36  ;;  %7207 = vst [vmem:[#allocation113_spill] sm:$0xff] %v4614_v11  ;;  %v633_v39 = vrot.slane %v4205_v55, 2  ;;  %v4620_v57 = vpack.i.bf16 %v4602_v49, %v4599_v61  ;;  %v643_v51 = vrot.slane %v4207_v56, 2  ;;  %v4625_v48 = vsel %vm607_vm1, %v635_v21, %v637_v60 }
  0x50   : > { %3191 = vrot.lane.b32.xlu0 %v3190_v24, %s4058_s21  ;;  %v645_v24 = vrot.slane %v4237_v13, 2  ;;  %7209 = vst [vmem:[#allocation115_spill] sm:$0xff] %v4625_v48  ;;  %v4628_v17 = vsel %vm607_vm1, %v637_v60, %v639_v25  ;;  %v647_v10 = vrot.slane %v4239_v14, 2  ;;  %v4634_v53 = vpack.i.bf16 %v4614_v11, %v4611_v36 }
  0x51   : > { %7208 = vst [vmem:[#allocation114_spill] sm:$0xff] %v4620_v57  ;;  %7210 = vst [vmem:[#allocation116_spill] sm:$0xff] %v4628_v17  ;;  %v4640_v49 = vsel %vm607_vm1, %v633_v39, %v635_v21  ;;  %v641_v61 = vrot.slane %v4255_v20, 2  ;;  %v4647_v60 = vpack.i.bf16 %v4628_v17, %v4625_v48  ;;  %v653_v21 = vrot.slane %v4269_v33, 2 }
  0x52   : > { %3206 = vrot.lane.b32.xlu1 %v3205_v0, %s4058_s21  ;;  %7211 = vst [vmem:[#allocation117_spill] sm:$0xff] %v4634_v53  ;;  %v4637_v0 = vsel %vm607_vm1, %v631_v22, %v633_v39  ;;  %7213 = vst [vmem:[#allocation119_spill] sm:$0xff] %v4640_v49  ;;  %v4653_v36 = vsel %vm607_vm1, %v645_v24, %v647_v10  ;;  %v651_v22 = vrot.slane %v4264_v30, 2  ;;  %v655_v39 = vrot.slane %v4271_v34, 2 }
  0x53   : > { %7212 = vst [vmem:[#allocation118_spill] sm:$0xff] %v4637_v0  ;;  %7214 = vst [vmem:[#allocation120_spill] sm:$0xff] %v4647_v60  ;;  %v4665_v17 = vsel %vm607_vm1, %v639_v25, %v641_v61  ;;  %v4668_v48 = vsel %vm607_vm1, %v641_v61, %v643_v51 }
  0x54   : > { %3201 = vrot.lane.b32.xlu0 %v3200_v18, %s4058_s21  ;;  %v4650_v18 = vsel %vm607_vm1, %v643_v51, %v645_v24  ;;  %7216 = vst [vmem:[#allocation122_spill] sm:$0xff] %v4653_v36  ;;  %7218 = vst [vmem:[#allocation124_spill] sm:$0xff] %v4665_v17  ;;  %v649_v24 = vrot.slane %v4273_v35, 2  ;;  %v4683_v25 = vsel %vm607_vm1, %v653_v21, %v655_v39  ;;  %v663_v51 = vrot.slane %v4311_v15, 2 }
  0x55   : > { %7215 = vst [vmem:[#allocation121_spill] sm:$0xff] %v4650_v18  ;;  %7219 = vst [vmem:[#allocation125_spill] sm:$0xff] %v4668_v48  ;;  %v4675_v11 = vpack.i.bf16 %v4653_v36, %v4650_v18  ;;  %v4690_v61 = vpack.i.bf16 %v4668_v48, %v4665_v17  ;;  %v657_v18 = vrot.slane %v4314_v9, 2 }
  0x56   : > { %3216 = vrot.lane.b32.xlu1 %v4620_v57, %s4058_s21  ;;  %v4662_v57 = vpack.i.bf16 %v4640_v49, %v4637_v0  ;;  %v661_v0 = vrot.slane %v4304_v28, 2  ;;  %v4680_v49 = vsel %vm607_vm1, %v651_v22, %v653_v21  ;;  %7222 = vst [vmem:[#allocation128_spill] sm:$0xff] %v4683_v25  ;;  %v4696_v36 = vsel %vm607_vm1, %v649_v24, %v651_v22 }
  0x57   : > { %7220 = vst [vmem:[#allocation126_spill] sm:$0xff] %v4675_v11  ;;  %7221 = vst [vmem:[#allocation127_spill] sm:$0xff] %v4680_v49  ;;  %v4703_v21 = vpack.i.bf16 %v4683_v25, %v4680_v49  ;;  %v669_v22 = vrot.slane %v4341_v2, 2  ;;  %v665_v25 = vrot.slane %v4358_v50, 2  ;;  %v4722_v49 = vsel %vm607_vm1, %v655_v39, %v657_v18 }
  0x58   : > { %3211 = vrot.lane.b32.xlu0 %v4634_v53, %s4058_s21  ;;  %7217 = vst [vmem:[#allocation123_spill] sm:$0xff] %v4662_v57  ;;  %v659_v53 = vrot.slane %v4282_v46, 2  ;;  %7223 = vst [vmem:[#allocation129_spill] sm:$0xff] %v4690_v61  ;;  %v4709_v17 = vsel %vm607_vm1, %v661_v0, %v663_v51 }
  0x59   : > { %7225 = vst [vmem:[#allocation131_spill] sm:$0xff] %v4696_v36  ;;  %7226 = vst [vmem:[#allocation132_spill] sm:$0xff] %v4703_v21 }
  0x5a   : > { %3226 = vrot.lane.b32.xlu1 %v4647_v60, %s4058_s21  ;;  %v4693_v60 = vsel %vm607_vm1, %v647_v10, %v649_v24  ;;  %7228 = vst [vmem:[#allocation134_spill] sm:$0xff] %v4709_v17  ;;  %v667_v10 = vrot.slane %v4339_v44, 2  ;;  %v671_v24 = vrot.slane %v4343_v45, 2  ;;  %7230 = vst [vmem:[#allocation136_spill] sm:$0xff] %v4722_v49 }
  0x5b   : > { %7224 = vst [vmem:[#allocation130_spill] sm:$0xff] %v4693_v60 }
  0x5c   : > { %3221 = vrot.lane.b32.xlu0 %v4662_v57, %s4058_s21  ;;  %v4706_v57 = vsel %vm607_vm1, %v659_v53, %v661_v0  ;;  %v4725_v0 = vsel %vm607_vm1, %v657_v18, %v659_v53  ;;  %v4739_v39 = vsel %vm607_vm1, %v669_v22, %v671_v24  ;;  %v679_v53 = vrot.slane %v4382_v63, 2 }
  0x5d   : > { %7227 = vst [vmem:[#allocation133_spill] sm:$0xff] %v4706_v57  ;;  %7231 = vst [vmem:[#allocation137_spill] sm:$0xff] %v4725_v0  ;;  %v4731_v48 = vpack.i.bf16 %v4709_v17, %v4706_v57  ;;  %v673_v18 = vrot.slane %v4384_v32, 2  ;;  %v4750_v17 = vsel %vm607_vm1, %v663_v51, %v665_v25  ;;  %v4753_v57 = vsel %vm607_vm1, %v665_v25, %v667_v10 }
  0x5e   : > { %3236 = vrot.lane.b32.xlu1 %v4675_v11, %s4058_s21  ;;  %v4718_v11 = vpack.i.bf16 %v4696_v36, %v4693_v60  ;;  %v677_v60 = vrot.slane %v4377_v52, 2  ;;  %v4736_v36 = vsel %vm607_vm1, %v667_v10, %v669_v22  ;;  %7234 = vst [vmem:[#allocation140_spill] sm:$0xff] %v4739_v39  ;;  %7236 = vst [vmem:[#allocation142_spill] sm:$0xff] %v4750_v17  ;;  %v683_v22 = vrot.slane %v4386_v29, 2 }
  0x5f   : > { %7232 = vst [vmem:[#allocation138_spill] sm:$0xff] %v4731_v48  ;;  %7233 = vst [vmem:[#allocation139_spill] sm:$0xff] %v4736_v36  ;;  %v685_v63 = vrot.slane %v4415_v62, 2  ;;  %v687_v52 = vrot.slane %v4417_v59, 2  ;;  %v4771_v10 = vsel %vm607_vm1, %v671_v24, %v673_v18  ;;  %v7244_v59 = vld [vmem:[#allocation80_spill] sm:$0xff] }
  0x60   : > { %3231 = vrot.lane.b32.xlu0 %v4690_v61, %s4058_s21  ;;  %7229 = vst [vmem:[#allocation135_spill] sm:$0xff] %v4718_v11  ;;  %v675_v61 = vrot.slane %v4375_v26, 2  ;;  %7237 = vst [vmem:[#allocation143_spill] sm:$0xff] %v4753_v57  ;;  %v4768_v25 = vsel %vm607_vm1, %v677_v60, %v679_v53  ;;  %v7245_v62 = vld [vmem:[#allocation84_spill] sm:$0xff]  ;;  %v297_v24 = vld [vmem:[%s4109_s19 + $0xc8] sm:$0xf] }
  0x61   : > { %7240 = vst [vmem:[#allocation146_spill] sm:$0xff] %v4768_v25  ;;  %7241 = vst [vmem:[#allocation147_spill] sm:$0xff] %v4771_v10  ;;  %v693_v29 = vrot.slane %v7245_v62, 2  ;;  %v4788_v45 = vsel %vm607_vm1, %v683_v22, %v685_v63  ;;  %v303_v62 = vld [vmem:[%s4109_s19 + $0xc] sm:$0xe] }
  0x62   : > { %3246 = vrot.lane.b32.xlu1 %v4703_v21, %s4058_s21  ;;  %v4747_v21 = vpack.i.bf16 %v4725_v0, %v4722_v49  ;;  %v4765_v51 = vsel %vm607_vm1, %v675_v61, %v677_v60  ;;  %v4774_v49 = vsel %vm607_vm1, %v673_v18, %v675_v61  ;;  %v681_v0 = vrot.slane %v4426_v1, 2  ;;  %7246 = vst [vmem:[#allocation150_spill] sm:$0xff] %v4788_v45 }
  0x63   : > { %7239 = vst [vmem:[#allocation145_spill] sm:$0xff] %v4765_v51  ;;  %7242 = vst [vmem:[#allocation148_spill] sm:$0xff] %v4774_v49  ;;  %v691_v60 = vrot.slane %v7244_v59, 2  ;;  %v4791_v61 = vsel %vm607_vm1, %v685_v63, %v687_v52  ;;  %v4797_v18 = vpack.i.bf16 %v4768_v25, %v4765_v51  ;;  %v689_v63 = vrot.slane %v4456_v58, 2 }
  0x64   : > { %3241 = vrot.lane.b32.xlu0 %v4718_v11, %s4058_s21  ;;  %7235 = vst [vmem:[#allocation141_spill] sm:$0xff] %v4747_v21  ;;  %v4762_v11 = vpack.i.bf16 %v4739_v39, %v4736_v36  ;;  %v4782_v36 = vpack.i.bf16 %v4753_v57, %v4750_v17  ;;  %7247 = vst [vmem:[#allocation151_spill] sm:$0xff] %v4791_v61  ;;  %v695_v17 = vrot.slane %v4454_v47, 2  ;;  %v4811_v1 = vunpack.c.l.bf16 %v297_v24  ;;  %v5080_v39 = vld [vmem:[%s4109_s19 + $0xcc] sm:$0x1] }
  0x65   : > { %7248 = vst [vmem:[#allocation152_spill] sm:$0xff] %v4797_v18  ;;  %v4808_v59 = vsel %vm607_vm1, %v679_v53, %v681_v0  ;;  %v4819_v25 = vpack.i.bf16 %v4791_v61, %v4788_v45  ;;  %v4822_v51 = vsel %vm607_vm1, %v681_v0, %v683_v22  ;;  %v304_v47 = vunpack.c.l.bf16 %v303_v62  ;;  %v7259_v22 = vld [vmem:[#allocation93_spill] sm:$0xff]  ;;  %v7260_v45 = vld [vmem:[#allocation94_spill] sm:$0xff] }
  0x66   : > { %3256 = vrot.lane.b32.xlu1 %v4731_v48, %s4058_s21  ;;  %7238 = vst [vmem:[#allocation144_spill] sm:$0xff] %v4762_v11  ;;  %v2945_v48 = vld [vmem:[%s4109_s19 + $0xc0] sm:$0xff]   ;;  %7243 = vst [vmem:[#allocation149_spill] sm:$0xff] %v4782_v36  ;;  %v4829_v24 = vrot.slane %v4811_v1, 1  ;;  %v4837_v0 = vsel %vm607_vm1, %v693_v29, %v695_v17  ;;  %v699_v61 = vrot.slane %v7259_v22, 2  ;;  %v4841_v58 = vrot.slane %v7260_v45, 2 }
  0x67   : > { %v4804_v57 = vunpack.c.h.bf16 %v2945_v48  ;;  %7251 = vst [vmem:[#allocation155_spill] sm:$0xff] %v4808_v59  ;;  %7252 = vst [vmem:[#allocation156_spill] sm:$0xff] %v4811_v1  ;;  %v7262_v1 = vunpack.c.l.bf16 %v4460_v7 }
  0x68   : > { %3251 = vrot.lane.b32.xlu0 %v4747_v21, %s4058_s21  ;;  %v4801_v21 = vpack.i.bf16 %v4774_v49, %v4771_v10  ;;  %7254 = vst [vmem:[#allocation158_spill] sm:$0xff] %v4819_v25  ;;  %7255 = vst [vmem:[#allocation159_spill] sm:$0xff] %v4822_v51  ;;  %v4825_v49 = vsel %vm607_vm1, %v691_v60, %v693_v29  ;;  %v1150_v29 = vrot.slane %v304_v47, 2  ;;  %v697_v47 = vrot.slane %v4495_v27, 2 }
  0x69   : > { %7250 = vst [vmem:[#allocation154_spill] sm:$0xff] %v4804_v57  ;;  %7256 = vst [vmem:[#allocation160_spill] sm:$0xff] %v4825_v49  ;;  %v999_v53 = vrot.slane %v4804_v57, 1  ;;  %v703_v57 = vrot.slane %v7262_v1, 2  ;;  %v4881_v1 = vpack.i.bf16 %v4837_v0, %v4825_v49 }
  0x6a   : > { %3266 = vrot.lane.b32.xlu1 %v4762_v11, %s4058_s21  ;;  %7249 = vst [vmem:[#allocation153_spill] sm:$0xff] %v4801_v21  ;;  %v4813_v11 = vunpack.c.l.bf16 %v2945_v48  ;;  %7257 = vst [vmem:[#allocation161_spill] sm:$0xff] %v4829_v24  ;;  %v4901_v7 = vsel %vm607_vm1, %v697_v47, %v699_v61 }
  0x6b   : > { %7258 = vst [vmem:[#allocation162_spill] sm:$0xff] %v4837_v0  ;;  %7261 = vst [vmem:[#allocation163_spill] sm:$0xff] %v4841_v58  ;;  %v3370_v0 = vpack.i.bf16 %v4311_v15, %v4304_v28  ;;  %v7285_v15 = vld [vmem:[#allocation69_spill] sm:$0xff] }
  0x6c   : > { %7253 = vst [vmem:[#allocation157_spill] sm:$0xff] %v4813_v11  ;;  %3261 = vrot.lane.b32.xlu0 %v4782_v36, %s4058_s21  ;;  %v997_v48 = vrot.slane %v4813_v11, 1  ;;  %v4847_v11 = vsel %vm364_vm0, %v999_v53, %v4829_v24  ;;  %7269 = vst [vmem:[#allocation170_spill] sm:$0xff] %v4881_v1 }
  0x6d   : > { %7263 = vst [vmem:[#allocation164_spill] sm:$0xff] %v4847_v11  ;;  %7273 = vst [vmem:[#allocation174_spill] sm:$0xff] %v4901_v7 }
  0x6e   : > { %3276 = vrot.lane.b32.xlu1 %v4797_v18, %s4058_s21  ;;  %v4850_v62 = vsel %vm364_vm0, %v997_v48, %v999_v53  ;;  %v4854_v36 = vsel %vm364_vm0, %v4506_v12, %v997_v48  ;;  %v4860_v18 = vpack.i.bf16 %v4822_v51, %v4808_v59  ;;  %v4867_v53 = vsel %vm607_vm1, %v687_v52, %v689_v63 }
  0x6f   : > { %7264 = vst [vmem:[#allocation165_spill] sm:$0xff] %v4850_v62  ;;  %7265 = vst [vmem:[#allocation166_spill] sm:$0xff] %v4854_v36  ;;  %v4870_v12 = vsel %vm607_vm1, %v689_v63, %v691_v60  ;;  %v4875_v48 = vsel %vm607_vm1, %v1150_v29, %v4538_v19  ;;  %v4887_v60 = vsel %vm607_vm1, %v699_v61, %v4841_v58 }
  0x70   : > { %3271 = vrot.lane.b32.xlu0 %v4801_v21, %s4058_s21  ;;  %7266 = vst [vmem:[#allocation167_spill] sm:$0xff] %v4860_v18  ;;  %7267 = vst [vmem:[#allocation168_spill] sm:$0xff] %v4867_v53  ;;  %v704_v63 = vsel %vm607_vm1, %v4841_v58, %v703_v57  ;;  %v4895_v19 = vpack.i.bf16 %v4870_v12, %v4867_v53  ;;  %v4898_v29 = vsel %vm607_vm1, %v695_v17, %v697_v47 }
  0x71   : > { %7268 = vst [vmem:[#allocation169_spill] sm:$0xff] %v4870_v12  ;;  %7270 = vst [vmem:[#allocation171_spill] sm:$0xff] %v4887_v60  ;;  %v3305_v52 = vpack.i.bf16 %v704_v63, %v4887_v60  ;;  %v4910_v57 = vpack.i.bf16 %v4901_v7, %v4898_v29  ;;  %v3315_v17 = vpack.i.bf16 %v4116_v4, %v4114_v3  ;;  %v7282_v7 = vld [vmem:[#allocation57_spill] sm:$0xff]  ;;  %v7293_v3 = vld [vmem:[#allocation86_spill] sm:$0xff] }
  0x72   : > { %3286 = vrot.lane.b32.xlu1 %v4819_v25, %s4058_s21  ;;  %7271 = vst [vmem:[#allocation172_spill] sm:$0xff] %v4895_v19  ;;  %7272 = vst [vmem:[#allocation173_spill] sm:$0xff] %v4898_v29  ;;  %v3310_v47 = vpack.i.bf16 %v4120_v6, %v4125_v8  ;;  %v3325_v63 = vpack.i.bf16 %v4170_v37, %v4180_v42  ;;  %v3335_v61 = vpack.i.bf16 %v4182_v43, %v4205_v55  ;;  %v7286_v12 = vld [vmem:[#allocation65_spill] sm:$0xff]  ;;  %v7290_v25 = vld [vmem:[#allocation75_spill] sm:$0xff] }
  0x73   : > { %7274 = vst [vmem:[#allocation175_spill] sm:$0xff] %v4910_v57  ;;  %v3330_v58 = vpack.i.bf16 %v4178_v41, %v4172_v38  ;;  %v3385_v60 = vpack.i.bf16 %v4375_v26, %v4384_v32  ;;  %v3380_v53 = vpack.i.bf16 %v7282_v7, %v4341_v2  ;;  %v7291_v8 = vld [vmem:[#allocation76_spill] sm:$0xff]  ;;  %v7297_v59 = vld [vmem:[#allocation157_spill] sm:$0xff]  ;;  %v7327_v2 = vld [vmem:[#allocation50_spill] sm:$0xff] }
  0x74   : > { %3281 = vrot.lane.b32.xlu0 %v4860_v18, %s4058_s21  ;;  %v7292_v6 = vld [vmem:[#allocation84_spill] sm:$0xff]  ;;  %v3420_v51 = vpack.i.bf16 %v7297_v59, %v7260_v45  ;;  %v7299_v18 = vld [vmem:[#allocation13_spill] sm:$0xff]  ;;  %v7305_v59 = vld [vmem:[#allocation11_spill] sm:$0xff] }
  0x75   : > { %v7315_v26 = vld [vmem:[#allocation32_spill] sm:$0xff]  ;;  %v7351_v4 = vld [vmem:[#allocation106_spill] sm:$0xff] }
  0x76   : > { %3296 = vrot.lane.b32.xlu1 %v4881_v1, %s4058_s21 }
  0x78   : > { %3291 = vrot.lane.b32.xlu0 %v4895_v19, %s4058_s21  ;;  %v7287_v19 = vld [vmem:[#allocation67_spill] sm:$0xff] }
  0x7a   : > { %3306 = vrot.lane.b32.xlu1 %v3305_v52, %s4058_s21  ;;  %v3320_v52 = vpack.i.bf16 %v4149_v23, %v4118_v5 }
  0x7c   : > { %3301 = vrot.lane.b32.xlu0 %v4910_v57, %s4058_s21  ;;  %v7276_v57 = vld [vmem:[#allocation21_spill] sm:$0xff] }
  0x7e   : > { %3316 = vrot.lane.b32.xlu1 %v3315_v17, %s4059_s22  ;;  %v3345_v17 = vpack.i.bf16 %v4207_v56, %v4255_v20 }
  0x80   : > { %3311 = vrot.lane.b32.xlu0 %v3310_v47, %s4059_s22  ;;  %v7275_v47 = vld [vmem:[#allocation20_spill] sm:$0xff] }
  0x81   : > { %v3340_v1 = vpack.i.bf16 %v7276_v57, %v7275_v47 }
  0x82   : > { %3326 = vrot.lane.b32.xlu1 %v3325_v63, %s4059_s22  ;;  %v3355_v63 = vpack.i.bf16 %v4264_v30, %v4273_v35 }
  0x84   : > { %3321 = vrot.lane.b32.xlu0 %v3320_v52, %s4059_s22  ;;  %v3350_v52 = vpack.i.bf16 %v4239_v14, %v4237_v13 }
  0x86   : > { %3336 = vrot.lane.b32.xlu1 %v3335_v61, %s4059_s22  ;;  %v3365_v61 = vpack.i.bf16 %v4282_v46, %v4314_v9  ;;  %v7288_v9 = vld [vmem:[#allocation87_spill] sm:$0xff]  ;;  %v7289_v46 = vld [vmem:[#allocation80_spill] sm:$0xff] }
  0x87   : > { %v3405_v28 = vpack.i.bf16 %v7289_v46, %v7288_v9 }
  0x88   : > { %3331 = vrot.lane.b32.xlu0 %v3330_v58, %s4059_s22 }
  0x8a   : > { %3346 = vrot.lane.b32.xlu1 %v3345_v17, %s4059_s22  ;;  %v3360_v17 = vpack.i.bf16 %v4271_v34, %v4269_v33  ;;  %v3390_v34 = vpack.i.bf16 %v7287_v19, %v7286_v12 }
  0x8c   : > { %3341 = vrot.lane.b32.xlu0 %v3340_v1, %s4059_s22  ;;  %v3375_v1 = vpack.i.bf16 %v4339_v44, %v4358_v50  ;;  %v7284_v50 = vld [vmem:[#allocation79_spill] sm:$0xff]  ;;  %v7330_v44 = vld [vmem:[#allocation74_spill] sm:$0xff] }
  0x8d   : > { %v3395_v49 = vpack.i.bf16 %v7285_v15, %v7284_v50 }
  0x8e   : > { %3356 = vrot.lane.b32.xlu1 %v3355_v63, %s4059_s22  ;;  %v4949_v58 = vpop.permute.xlu1 %3081 }
  0x8f   : > { %7277 = vst [vmem:[#allocation20_spill] sm:$0xff] %v4949_v58 }
  0x90   : > { %3351 = vrot.lane.b32.xlu0 %v3350_v52, %s4059_s22  ;;  %v4953_v29 = vpop.permute.xlu0 %3071 }
  0x91   : > { %7278 = vst [vmem:[#allocation21_spill] sm:$0xff] %v4953_v29  ;;  %v7295_v29 = vld [vmem:[#allocation156_spill] sm:$0xff] }
  0x92   : > { %3366 = vrot.lane.b32.xlu1 %v3365_v61, %s4059_s22  ;;  %v4959_v63 = vpop.permute.xlu1 %3086 }
  0x93   : > { %7279 = vst [vmem:[#allocation176_spill] sm:$0xff] %v4959_v63  ;;  %v7294_v63 = vld [vmem:[#allocation154_spill] sm:$0xff] }
  0x94   : > { %3361 = vrot.lane.b32.xlu0 %v3360_v17, %s4059_s22  ;;  %v4963_v52 = vpop.permute.xlu0 %3076  ;;  %v3425_v58 = vpack.i.bf16 %v7295_v29, %v7294_v63  ;;  %v7304_v29 = vld [vmem:[#allocation22_spill] sm:$0xff] }
  0x95   : > { %7280 = vst [vmem:[#allocation177_spill] sm:$0xff] %v4963_v52  ;;  %v3410_v52 = vpack.i.bf16 %v7293_v3, %v7292_v6 }
  0x96   : > { %3376 = vrot.lane.b32.xlu1 %v3375_v1, %s4059_s22  ;;  %v4969_v61 = vpop.permute.xlu1 %3096 }
  0x97   : > { %7281 = vst [vmem:[#allocation178_spill] sm:$0xff] %v4969_v61  ;;  %v3415_v61 = vpack.i.bf16 %v7259_v22, %v4495_v27  ;;  %v7352_v27 = vld [vmem:[#allocation98_spill] sm:$0xff] }
  0x98   : > { %3371 = vrot.lane.b32.xlu0 %v3370_v0, %s4059_s22  ;;  %v4973_v17 = vpop.permute.xlu0 %3091 }
  0x99   : > { %7283 = vst [vmem:[#allocation179_spill] sm:$0xff] %v4973_v17  ;;  %v3400_v17 = vpack.i.bf16 %v7291_v8, %v7290_v25 }
  0x9a   : > { %3386 = vrot.lane.b32.xlu1 %v3385_v60, %s4059_s22  ;;  %v4979_v1 = vpop.permute.xlu1 %3106 }
  0x9c   : > { %3381 = vrot.lane.b32.xlu0 %v3380_v53, %s4059_s22  ;;  %v4983_v0 = vpop.permute.xlu0 %3101 }
  0x9d   : > { %v3103_v23 = vunpack.i.l.bf16 %v4983_v0 }
  0x9e   : > { %3396 = vrot.lane.b32.xlu1 %v3395_v49, %s4059_s22  ;;  %v4989_v60 = vpop.permute.xlu1 %3116 }
  0xa0   : > { %3391 = vrot.lane.b32.xlu0 %v3390_v34, %s4059_s22  ;;  %v4993_v53 = vpop.permute.xlu0 %3111 }
  0xa2   : > { %3406 = vrot.lane.b32.xlu1 %v3405_v28, %s4059_s22  ;;  %v4999_v49 = vpop.permute.xlu1 %3126 }
  0xa4   : > { %3401 = vrot.lane.b32.xlu0 %v3400_v17, %s4059_s22  ;;  %v5003_v34 = vpop.permute.xlu0 %3121  ;;  %v7298_v17 = vld [vmem:[#allocation10_spill] sm:$0xff] }
  0xa5   : > { %v3435_v38 = vpack.i.bf16 %v7299_v18, %v7298_v17  ;;  %7332 = vst [vmem:[#allocation10_spill] sm:$0xff] %v5080_v39 }
  0xa6   : > { %3416 = vrot.lane.b32.xlu1 %v3415_v61, %s4059_s22  ;;  %v5009_v28 = vpop.permute.xlu1 %3136 }
  0xa7   : > { %7296 = vst [vmem:[#allocation79_spill] sm:$0xff] %v5009_v28  ;;  %v7306_v28 = vld [vmem:[#allocation14_spill] sm:$0xff] }
  0xa8   : > { %3411 = vrot.lane.b32.xlu0 %v3410_v52, %s4059_s22  ;;  %v5015_v37 = vpop.permute.xlu0 %3131  ;;  %v7303_v52 = vld [vmem:[#allocation25_spill] sm:$0xff]  ;;  %v7307_v18 = vpack.i.bf16 %v7305_v59, %v7306_v28 }
  0xa9   : > { %7300 = vst [vmem:[#allocation69_spill] sm:$0xff] %v5015_v37  ;;  %v3445_v63 = vpack.i.bf16 %v7304_v29, %v7303_v52  ;;  %v7310_v37 = vld [vmem:[#allocation24_spill] sm:$0xff]  ;;  %v7314_v52 = vld [vmem:[#allocation23_spill] sm:$0xff] }
  0xaa   : > { %3426 = vrot.lane.b32.xlu1 %v3425_v58, %s4059_s22  ;;  %v5019_v61 = vpop.permute.xlu1 %3146  ;;  %v7309_v58 = vld [vmem:[#allocation17_spill] sm:$0xff]  ;;  %v3450_v59 = vpack.i.bf16 %v7315_v26, %v7314_v52  ;;  %v7320_v26 = vld [vmem:[#allocation52_spill] sm:$0xff]  ;;  %v7321_v52 = vld [vmem:[#allocation47_spill] sm:$0xff] }
  0xab   : > { %7301 = vst [vmem:[#allocation67_spill] sm:$0xff] %v5019_v61  ;;  %v7313_v61 = vld [vmem:[#allocation28_spill] sm:$0xff] }
  0xac   : > { %3421 = vrot.lane.b32.xlu0 %v3420_v51, %s4059_s22  ;;  %v5021_v21 = vpop.permute.xlu0 %3141  ;;  %v3440_v51 = vpack.i.bf16 %v7310_v37, %v7309_v58  ;;  %v7317_v37 = vld [vmem:[#allocation39_spill] sm:$0xff] }
  0xad   : > { %7302 = vst [vmem:[#allocation87_spill] sm:$0xff] %v5021_v21  ;;  %v7312_v21 = vld [vmem:[#allocation33_spill] sm:$0xff] }
  0xae   : > { %3436 = vrot.lane.b32.xlu1 %v3435_v38, %s4060_s23  ;;  %v3455_v38 = vpack.i.bf16 %v7313_v61, %v7312_v21  ;;  %v7319_v21 = vld [vmem:[#allocation43_spill] sm:$0xff] }
  0xaf   : > { %v5030_v17 = vpop.permute.xlu1 %3156 }
  0xb0   : > { %3431 = vrot.lane.b32.xlu0 %v7307_v18, %s4060_s23  ;;  %7308 = vst [vmem:[#allocation80_spill] sm:$0xff] %v5030_v17  ;;  %v5034_v12 = vpop.permute.xlu0 %3151  ;;  %v7316_v18 = vld [vmem:[#allocation44_spill] sm:$0xff]  ;;  %v3475_v17 = vpack.i.bf16 %v7321_v52, %v7320_v26 }
  0xb1   : > { %7311 = vst [vmem:[#allocation75_spill] sm:$0xff] %v5034_v12  ;;  %v3465_v58 = vpack.i.bf16 %v7317_v37, %v7316_v18  ;;  %v7318_v12 = vld [vmem:[#allocation29_spill] sm:$0xff]  ;;  %v7322_v18 = vld [vmem:[#allocation40_spill] sm:$0xff]  ;;  %v7323_v37 = vld [vmem:[#allocation51_spill] sm:$0xff] }
  0xb2   : > { %3446 = vrot.lane.b32.xlu1 %v3445_v63, %s4060_s23  ;;  %v3460_v61 = vpack.i.bf16 %v7319_v21, %v7318_v12  ;;  %v7324_v12 = vld [vmem:[#allocation63_spill] sm:$0xff]  ;;  %v7325_v21 = vld [vmem:[#allocation54_spill] sm:$0xff]  ;;  %v7328_v26 = vld [vmem:[#allocation60_spill] sm:$0xff] }
  0xb3   : > { %v5040_v29 = vpop.permute.xlu1 %3166  ;;  %v3485_v7 = vpack.i.bf16 %v7325_v21, %v7324_v12  ;;  %v3480_v52 = vpack.i.bf16 %v7328_v26, %v7327_v2  ;;  %v7334_v12 = vld [vmem:[#allocation59_spill] sm:$0xff] }
  0xb4   : > { %3441 = vrot.lane.b32.xlu0 %v3440_v51, %s4060_s23  ;;  %v7337_v2 = vld [vmem:[#allocation83_spill] sm:$0xff] }
  0xb5   : > { %v5044_v28 = vpop.permute.xlu0 %3161 }
  0xb6   : > { %3456 = vrot.lane.b32.xlu1 %v3455_v38, %s4060_s23 }
  0xb7   : > { %v5050_v63 = vpop.permute.xlu1 %3176 }
  0xb8   : > { %3451 = vrot.lane.b32.xlu0 %v3450_v59, %s4060_s23  ;;  %v3470_v59 = vpack.i.bf16 %v7323_v37, %v7322_v18  ;;  %v7331_v18 = vld [vmem:[#allocation66_spill] sm:$0xff] }
  0xb9   : > { %v3495_v37 = vpack.i.bf16 %v7331_v18, %v7330_v44  ;;  %v7340_v18 = vld [vmem:[#allocation71_spill] sm:$0xff] }
  0xba   : > { %v5054_v51 = vpop.permute.xlu0 %3171  ;;  %3466 = vrot.lane.b32.xlu1 %v3465_v58, %s4060_s23 }
  0xbc   : > { %3461 = vrot.lane.b32.xlu0 %v3460_v61, %s4060_s23  ;;  %v5060_v38 = vpop.permute.xlu1 %3186 }
  0xbe   : > { %v5064_v32 = vpop.permute.xlu0 %3181  ;;  %3476 = vrot.lane.b32.xlu1 %v3475_v17, %s4060_s23 }
  0xc0   : > { %3471 = vrot.lane.b32.xlu0 %v3470_v59, %s4060_s23  ;;  %v5070_v58 = vpop.permute.xlu1 %3196  ;;  %v7335_v59 = vld [vmem:[#allocation72_spill] sm:$0xff] }
  0xc1   : > { %7326 = vst [vmem:[#allocation76_spill] sm:$0xff] %v5070_v58  ;;  %v3490_v21 = vpack.i.bf16 %v7335_v59, %v7334_v12  ;;  %v7036_v58 = vunpack.c.l.bf16 %v5080_v39  ;;  %v3109_v12 = vunpack.i.h.bf16 %v4979_v1  ;;  %v3108_v59 = vunpack.i.l.bf16 %v4979_v1 }
  0xc2   : > { %v5074_v61 = vpop.permute.xlu0 %3191  ;;  %3486 = vrot.lane.b32.xlu1 %v3485_v7, %s4060_s23  ;;  %v7338_v7 = vld [vmem:[#allocation77_spill] sm:$0xff] }
  0xc3   : > { %7329 = vst [vmem:[#allocation84_spill] sm:$0xff] %v5074_v61  ;;  %v3505_v26 = vpack.i.bf16 %v7338_v7, %v7337_v2  ;;  %v7344_v2 = vld [vmem:[#allocation88_spill] sm:$0xff] }
  0xc4   : > { %3481 = vrot.lane.b32.xlu0 %v3480_v52, %s4060_s23  ;;  %v5083_v17 = vpop.permute.xlu1 %3206  ;;  %v7341_v52 = vld [vmem:[#allocation82_spill] sm:$0xff] }
  0xc5   : > { %7333 = vst [vmem:[#allocation13_spill] sm:$0xff] %v5083_v17  ;;  %v3500_v61 = vpack.i.bf16 %v7341_v52, %v7340_v18  ;;  %v1003_v17 = vrot.slane %v7036_v58, 1  ;;  %v7347_v18 = vld [vmem:[#allocation101_spill] sm:$0xff]  ;;  %v3104_v58 = vunpack.i.h.bf16 %v4983_v0  ;;  %v1775_v0 = vsel %vm1759_vm2, %v7275_v47, %v3109_v12 }
  0xc6   : > { %v5088_v10 = vpop.permute.xlu0 %3201  ;;  %3496 = vrot.lane.b32.xlu1 %v3495_v37, %s4060_s23  ;;  %v7343_v37 = vld [vmem:[#allocation92_spill] sm:$0xff]  ;;  %v7348_v52 = vld [vmem:[#allocation97_spill] sm:$0xff] }
  0xc7   : > { %7336 = vst [vmem:[#allocation25_spill] sm:$0xff] %v5088_v10  ;;  %v3515_v7 = vpack.i.bf16 %v7344_v2, %v7343_v37  ;;  %v3525_v39 = vpack.i.bf16 %v7348_v52, %v7347_v18  ;;  %v3535_v37 = vpack.i.bf16 %v4533_v31, %v7351_v4  ;;  %v1004_v18 = vsel %vm364_vm0, %v4829_v24, %v1003_v17  ;;  %v7372_v31 = vld [vmem:[#allocation116_spill] sm:$0xff] }
  0xc8   : > { %3491 = vrot.lane.b32.xlu0 %v3490_v21, %s4060_s23  ;;  %v5094_v44 = vpop.permute.xlu1 %3216  ;;  %v7345_v21 = vld [vmem:[#allocation78_spill] sm:$0xff]  ;;  %v3119_v52 = vunpack.i.h.bf16 %v4989_v60  ;;  %v1773_v12 = vsel %vm1759_vm2, %v4205_v55, %v3104_v58 }
  0xc9   : > { %7339 = vst [vmem:[#allocation22_spill] sm:$0xff] %v5094_v44  ;;  %v7346_v44 = vld [vmem:[#allocation91_spill] sm:$0xff] }
  0xca   : > { %v5102_v10 = vpop.permute.xlu0 %3211  ;;  %3506 = vrot.lane.b32.xlu1 %v3505_v26, %s4060_s23  ;;  %v3510_v42 = vpack.i.bf16 %v7346_v44, %v7345_v21  ;;  %v7350_v26 = vld [vmem:[#allocation100_spill] sm:$0xff]  ;;  %v7353_v44 = vld [vmem:[#allocation105_spill] sm:$0xff]  ;;  %v1779_v58 = vsel %vm1759_vm2, %v4237_v13, %v3119_v52 }
  0xcb   : > { %7342 = vst [vmem:[#allocation11_spill] sm:$0xff] %v5102_v10  ;;  %v7349_v10 = vld [vmem:[#allocation89_spill] sm:$0xff]  ;;  %v3530_v21 = vpack.i.bf16 %v7353_v44, %v7352_v27  ;;  %v3114_v44 = vunpack.i.h.bf16 %v4993_v53 }
  0xcc   : > { %3501 = vrot.lane.b32.xlu0 %v3500_v61, %s4060_s23  ;;  %v3227_v1 = vpop.permute.xlu1 %3226  ;;  %v3520_v5 = vpack.i.bf16 %v7350_v26, %v7349_v10  ;;  %v1774_v61 = vsel %vm1759_vm2, %v4182_v43, %v3108_v59  ;;  %v3118_v10 = vunpack.i.l.bf16 %v4989_v60  ;;  %v1772_v59 = vsel %vm1759_vm2, %v4178_v41, %v3103_v23 }
  0xcd   : > { %v3229_v2 = vunpack.i.h.bf16 %v3227_v1  ;;  %v3228_v3 = vunpack.i.l.bf16 %v3227_v1  ;;  %v3113_v60 = vunpack.i.l.bf16 %v4993_v53  ;;  %v3128_v53 = vunpack.i.l.bf16 %v4999_v49 }
  0xce   : > { %v3222_v26 = vpop.permute.xlu0 %3221  ;;  %3516 = vrot.lane.b32.xlu1 %v3515_v7, %s4060_s23  ;;  %v1778_v23 = vsel %vm1759_vm2, %v4207_v56, %v3118_v10  ;;  %v1777_v52 = vsel %vm1759_vm2, %v4255_v20, %v3114_v44 }
  0xcf   : > { %v5130_v4 = vsel %vm1808_vm3, %v1775_v0, %v3229_v2  ;;  %v5133_v27 = vsel %vm1808_vm3, %v1774_v61, %v3228_v3  ;;  %v3224_v17 = vunpack.i.h.bf16 %v3222_v26  ;;  %v3223_v1 = vunpack.i.l.bf16 %v3222_v26 }
  0xd0   : > { %3511 = vrot.lane.b32.xlu0 %v3510_v42, %s4060_s23  ;;  %v3237_v7 = vpop.permute.xlu1 %3236  ;;  %v3129_v26 = vunpack.i.h.bf16 %v4999_v49  ;;  %v1776_v10 = vsel %vm1759_vm2, %v7276_v57, %v3113_v60  ;;  %v3123_v49 = vunpack.i.l.bf16 %v5003_v34  ;;  %v1782_v60 = vsel %vm1759_vm2, %v4264_v30, %v3128_v53  ;;  %v7376_v30 = vld [vmem:[#allocation122_spill] sm:$0xff] }
  0xd1   : > { %v5143_v2 = vsel %vm1808_vm3, %v1772_v59, %v3223_v1  ;;  %v5146_v3 = vsel %vm1808_vm3, %v1773_v12, %v3224_v17  ;;  %v3239_v0 = vunpack.i.h.bf16 %v3237_v7  ;;  %v3238_v61 = vunpack.i.l.bf16 %v3237_v7 }
  0xd2   : > { %v3232_v42 = vpop.permute.xlu0 %3231  ;;  %3526 = vrot.lane.b32.xlu1 %v3525_v39, %s4060_s23  ;;  %v3124_v7 = vunpack.i.h.bf16 %v5003_v34  ;;  %v1783_v44 = vsel %vm1759_vm2, %v4269_v33, %v3129_v26  ;;  %v1780_v26 = vsel %vm1759_vm2, %v4239_v14, %v3123_v49  ;;  %v7358_v49 = vpack.i.bf16 %v4578_v40, %v4592_v54  ;;  %v7366_v40 = vld [vmem:[#allocation119_spill] sm:$0xff] }
  0xd3   : > { %v5156_v1 = vsel %vm1808_vm3, %v1779_v58, %v3239_v0  ;;  %v5159_v17 = vsel %vm1808_vm3, %v1778_v23, %v3238_v61  ;;  %v3234_v12 = vunpack.i.h.bf16 %v3232_v42  ;;  %v3233_v59 = vunpack.i.l.bf16 %v3232_v42  ;;  %v7367_v54 = vld [vmem:[#allocation115_spill] sm:$0xff] }
  0xd4   : > { %3521 = vrot.lane.b32.xlu0 %v3520_v5, %s4060_s23  ;;  %v3247_v39 = vpop.permute.xlu1 %3246  ;;  %v3545_v5 = vpack.i.bf16 %v1004_v18, %v4847_v11  ;;  %v7371_v11 = vld [vmem:[#allocation121_spill] sm:$0xff]  ;;  %v7374_v33 = vld [vmem:[#allocation131_spill] sm:$0xff] }
  0xd5   : > { %v5169_v0 = vsel %vm1808_vm3, %v1776_v10, %v3233_v59  ;;  %v5172_v61 = vsel %vm1808_vm3, %v1777_v52, %v3234_v12  ;;  %v3249_v58 = vunpack.i.h.bf16 %v3247_v39  ;;  %v3248_v23 = vunpack.i.l.bf16 %v3247_v39 }
  0xd6   : > { %v3242_v42 = vpop.permute.xlu0 %3241  ;;  %3536 = vrot.lane.b32.xlu1 %v3535_v37, %s4060_s23  ;;  %v1781_v10 = vsel %vm1759_vm2, %v4273_v35, %v3124_v7  ;;  %v3540_v37 = vpack.i.bf16 %v4850_v62, %v4854_v36 }
  0xd7   : > { %v5181_v34 = vsel %vm1808_vm3, %v1783_v44, %v3249_v58  ;;  %v5184_v59 = vsel %vm1808_vm3, %v1782_v60, %v3248_v23  ;;  %v3244_v12 = vunpack.i.h.bf16 %v3242_v42  ;;  %v3243_v52 = vunpack.i.l.bf16 %v3242_v42  ;;  %v7359_v23 = vld [vmem:[#allocation113_spill] sm:$0xff]  ;;  %v7360_v44 = vld [vmem:[#allocation110_spill] sm:$0xff] }
  0xd8   : > { %3531 = vrot.lane.b32.xlu0 %v3530_v21, %s4060_s23  ;;  %v5191_v53 = vpop.permute.xlu1 %3256  ;;  %v3565_v60 = vpack.i.bf16 %v7360_v44, %v7359_v23  ;;  %v7361_v42 = vpack.i.bf16 %v4589_v16, %v4875_v48  ;;  %v7368_v23 = vld [vmem:[#allocation111_spill] sm:$0xff]  ;;  %v7369_v44 = vld [vmem:[#allocation118_spill] sm:$0xff]  ;;  %v3164_v48 = vunpack.i.h.bf16 %v5044_v28 }
  0xd9   : > { %7354 = vst [vmem:[#allocation14_spill] sm:$0xff] %v5191_v53  ;;  %v5196_v18 = vsel %vm1808_vm3, %v1780_v26, %v3243_v52  ;;  %v5199_v39 = vsel %vm1808_vm3, %v1781_v10, %v3244_v12  ;;  %v7363_v12 = vld [vmem:[#allocation109_spill] sm:$0xff]  ;;  %v7364_v52 = vld [vmem:[#allocation112_spill] sm:$0xff]  ;;  %v3169_v26 = vunpack.i.h.bf16 %v5040_v29  ;;  %v3570_v16 = vpack.i.bf16 %v7369_v44, %v7368_v23  ;;  %v7377_v23 = vld [vmem:[#allocation130_spill] sm:$0xff] }
  0xda   : > { %v5201_v58 = vpop.permute.xlu0 %3251  ;;  %3546 = vrot.lane.b32.xlu1 %v3545_v5, %s4060_s23  ;;  %v3560_v10 = vpack.i.bf16 %v7364_v52, %v7363_v12  ;;  %v3590_v44 = vpack.i.bf16 %v7377_v23, %v7376_v30  ;;  %v4031_v53 = vld [vmem:[%s6820_s1 + $0x8] sm:$0xff]  }
  0xdb   : > { %7355 = vst [vmem:[#allocation17_spill] sm:$0xff] %v5201_v58 }
  0xdc   : > { %3541 = vrot.lane.b32.xlu0 %v3540_v37, %s4060_s23  ;;  %v5205_v7 = vpop.permute.xlu1 %3266  ;;  %v3168_v37 = vunpack.i.l.bf16 %v5040_v29 }
  0xdd   : > { %7356 = vst [vmem:[#allocation24_spill] sm:$0xff] %v5205_v7 }
  0xde   : > { %v5207_v21 = vpop.permute.xlu0 %3261  ;;  %3556 = vrot.lane.b32.xlu1 %v7358_v49, %s4061_s24  ;;  %v3575_v49 = vpack.i.bf16 %v7367_v54, %v7366_v40  ;;  %v7375_v40 = vld [vmem:[#allocation127_spill] sm:$0xff] }
  0xdf   : > { %7357 = vst [vmem:[#allocation33_spill] sm:$0xff] %v5207_v21  ;;  %v3595_v54 = vpack.i.bf16 %v7375_v40, %v7374_v33  ;;  %v3179_v21 = vunpack.i.h.bf16 %v5050_v63 }
  0xe0   : > { %3551 = vrot.lane.b32.xlu0 %v7361_v42, %s4061_s24  ;;  %v5219_v5 = vpop.permute.xlu1 %3276  ;;  %v3163_v42 = vunpack.i.l.bf16 %v5044_v28  ;;  %v1799_v28 = vsel %vm1759_vm2, %v7290_v25, %v3169_v26  ;;  %v1797_v26 = vsel %vm1759_vm2, %v7284_v50, %v3164_v48 }
  0xe1   : > { %7362 = vst [vmem:[#allocation28_spill] sm:$0xff] %v5219_v5  ;;  %v7370_v5 = vld [vmem:[#allocation125_spill] sm:$0xff]  ;;  %v1803_v48 = vsel %vm1759_vm2, %v7292_v6, %v3179_v21 }
  0xe2   : > { %v5225_v62 = vpop.permute.xlu0 %3271  ;;  %3566 = vrot.lane.b32.xlu1 %v3565_v60, %s4061_s24  ;;  %v3585_v29 = vpack.i.bf16 %v7371_v11, %v7370_v5  ;;  %v3178_v11 = vunpack.i.l.bf16 %v5050_v63  ;;  %v3173_v63 = vunpack.i.l.bf16 %v5054_v51 }
  0xe3   : > { %7365 = vst [vmem:[#allocation23_spill] sm:$0xff] %v5225_v62  ;;  %v7373_v62 = vld [vmem:[#allocation124_spill] sm:$0xff] }
  0xe4   : > { %3561 = vrot.lane.b32.xlu0 %v3560_v10, %s4061_s24  ;;  %v3287_v52 = vpop.permute.xlu1 %3286  ;;  %v3580_v36 = vpack.i.bf16 %v7373_v62, %v7372_v31  ;;  %v1798_v10 = vsel %vm1759_vm2, %v7285_v15, %v3168_v37  ;;  %v1796_v37 = vsel %vm1759_vm2, %v7287_v19, %v3163_v42  ;;  %v1802_v42 = vsel %vm1759_vm2, %v7289_v46, %v3178_v11 }
  0xe5   : > { %v3289_v60 = vunpack.i.h.bf16 %v3287_v52  ;;  %v3288_v24 = vunpack.i.l.bf16 %v3287_v52  ;;  %v3174_v52 = vunpack.i.h.bf16 %v5054_v51  ;;  %v3188_v51 = vunpack.i.l.bf16 %v5060_v38 }
  0xe6   : > { %v3282_v5 = vpop.permute.xlu0 %3281  ;;  %3576 = vrot.lane.b32.xlu1 %v3575_v49, %s4061_s24  ;;  %v1800_v11 = vsel %vm1759_vm2, %v7291_v8, %v3173_v63 }
  0xe7   : > { %v5251_v31 = vsel %vm1808_vm3, %v1799_v28, %v3289_v60  ;;  %v5254_v33 = vsel %vm1808_vm3, %v1798_v10, %v3288_v24  ;;  %v3284_v30 = vunpack.i.h.bf16 %v3282_v5  ;;  %v3283_v62 = vunpack.i.l.bf16 %v3282_v5 }
  0xe8   : > { %3571 = vrot.lane.b32.xlu0 %v3570_v16, %s4061_s24  ;;  %v3297_v49 = vpop.permute.xlu1 %3296  ;;  %v3189_v28 = vunpack.i.h.bf16 %v5060_v38  ;;  %v1801_v21 = vsel %vm1759_vm2, %v7288_v9, %v3174_v52  ;;  %v3183_v38 = vunpack.i.l.bf16 %v5064_v32  ;;  %v1806_v63 = vsel %vm1759_vm2, %v7259_v22, %v3188_v51  ;;  %v7390_v22 = vld [vmem:[#allocation142_spill] sm:$0xff] }
  0xe9   : > { %v5264_v60 = vsel %vm1808_vm3, %v1796_v37, %v3283_v62  ;;  %v5267_v24 = vsel %vm1808_vm3, %v1797_v26, %v3284_v30  ;;  %v3299_v40 = vunpack.i.h.bf16 %v3297_v49  ;;  %v3298_v23 = vunpack.i.l.bf16 %v3297_v49 }
  0xea   : > { %v3292_v16 = vpop.permute.xlu0 %3291  ;;  %3586 = vrot.lane.b32.xlu1 %v3585_v29, %s4061_s24  ;;  %v3184_v26 = vunpack.i.h.bf16 %v5064_v32  ;;  %v1807_v52 = vsel %vm1759_vm2, %v7260_v45, %v3189_v28  ;;  %v7378_v32 = vld [vmem:[#allocation137_spill] sm:$0xff]  ;;  %v7389_v45 = vld [vmem:[#allocation134_spill] sm:$0xff] }
  0xeb   : > { %v5277_v10 = vsel %vm1808_vm3, %v1803_v48, %v3299_v40  ;;  %v5280_v5 = vsel %vm1808_vm3, %v1802_v42, %v3298_v23  ;;  %v3294_v30 = vunpack.i.h.bf16 %v3292_v16  ;;  %v3293_v62 = vunpack.i.l.bf16 %v3292_v16 }
  0xec   : > { %3581 = vrot.lane.b32.xlu0 %v3580_v36, %s4061_s24  ;;  %v3307_v29 = vpop.permute.xlu1 %3306  ;;  %v7379_v36 = vld [vmem:[#allocation133_spill] sm:$0xff] }
  0xed   : > { %v5290_v37 = vsel %vm1808_vm3, %v1800_v11, %v3293_v62  ;;  %v5293_v49 = vsel %vm1808_vm3, %v1801_v21, %v3294_v30  ;;  %v3309_v40 = vunpack.i.h.bf16 %v3307_v29  ;;  %v3308_v23 = vunpack.i.l.bf16 %v3307_v29  ;;  %v7380_v11 = vld [vmem:[#allocation96_spill] sm:$0xff]  ;;  %v7381_v29 = vld [vmem:[#allocation86_spill] sm:$0xff] }
  0xee   : > { %v3302_v48 = vpop.permute.xlu0 %3301  ;;  %3596 = vrot.lane.b32.xlu1 %v3595_v54, %s4061_s24  ;;  %v3605_v42 = vpack.i.bf16 %v7379_v36, %v7378_v32  ;;  %v1805_v28 = vsel %vm1759_vm2, %v7380_v11, %v3184_v26  ;;  %v1804_v51 = vsel %vm1759_vm2, %v7381_v29, %v3183_v38  ;;  %v7383_v32 = vld [vmem:[#allocation128_spill] sm:$0xff]  ;;  %v7386_v26 = vld [vmem:[#allocation143_spill] sm:$0xff] }
  0xef   : > { %v5303_v16 = vsel %vm1808_vm3, %v1807_v52, %v3309_v40  ;;  %v5306_v30 = vsel %vm1808_vm3, %v1806_v63, %v3308_v23  ;;  %v3304_v62 = vunpack.i.h.bf16 %v3302_v48  ;;  %v3303_v21 = vunpack.i.l.bf16 %v3302_v48  ;;  %v7384_v36 = vld [vmem:[#allocation136_spill] sm:$0xff]  ;;  %v7387_v48 = vld [vmem:[#allocation139_spill] sm:$0xff] }
  0xf0   : > { %3591 = vrot.lane.b32.xlu0 %v3590_v44, %s4061_s24  ;;  %v5313_v54 = vpop.permute.xlu1 %3316  ;;  %v3600_v40 = vpack.i.bf16 %v7384_v36, %v7383_v32  ;;  %v3615_v38 = vpack.i.bf16 %v7387_v48, %v7386_v26  ;;  %v3610_v32 = vpack.i.bf16 %v7390_v22, %v7389_v45  ;;  %v7397_v48 = vld [vmem:[#allocation18_spill] sm:$0xff] }
  0xf1   : > { %7382 = vst [vmem:[#allocation32_spill] sm:$0xff] %v5313_v54  ;;  %v5318_v52 = vsel %vm1808_vm3, %v1804_v51, %v3303_v21  ;;  %v5321_v23 = vsel %vm1808_vm3, %v1805_v28, %v3304_v62  ;;  %v7392_v62 = vld [vmem:[#allocation3_spill] sm:$0xff]  ;;  %v7393_v21 = vld [vmem:[#allocation4_spill] sm:$0xff]  ;;  %v313_v51 = vld [vmem:[%s4109_s19 + $0x18] sm:$0xe] }
  0xf2   : > { %v5323_v63 = vpop.permute.xlu0 %3311  ;;  %3606 = vrot.lane.b32.xlu1 %v3605_v42, %s4061_s24  ;;  %v3625_v28 = vpack.i.bf16 %v7393_v21, %v7392_v62  ;;  %v314_v22 = vunpack.c.l.bf16 %v313_v51  ;;  %v7402_v54 = vld [vmem:[#allocation56_spill] sm:$0xff] }
  0xf3   : > { %7385 = vst [vmem:[#allocation44_spill] sm:$0xff] %v5323_v63 }
  0xf4   : > { %3601 = vrot.lane.b32.xlu0 %v3600_v40, %s4061_s24  ;;  %v5329_v44 = vpop.permute.xlu1 %3326  ;;  %v7396_v40 = vld [vmem:[#allocation12_spill] sm:$0xff]  ;;  %v1605_v58 = vrot.slane %v314_v22, 2 }
  0xf5   : > { %7388 = vst [vmem:[#allocation39_spill] sm:$0xff] %v5329_v44  ;;  %v3635_v45 = vpack.i.bf16 %v7397_v48, %v7396_v40  ;;  %v7399_v44 = vld [vmem:[#allocation140_spill] sm:$0xff] }
  0xf6   : > { %v5333_v36 = vpop.permute.xlu0 %3321  ;;  %3616 = vrot.lane.b32.xlu1 %v3615_v38, %s4061_s24  ;;  %v4030_v38 = vld [vmem:[%s6820_s1] sm:$0xff]   ;;  %v7404_v22 = vld [vmem:[#allocation68_spill] sm:$0xff] }
  0xf7   : > { %7391 = vst [vmem:[#allocation29_spill] sm:$0xff] %v5333_v36  ;;  %v7398_v36 = vld [vmem:[#allocation147_spill] sm:$0xff]  ;;  %2974 = vmatprep.subr.bf16.mxu0 %v4030_v38  ;;  %3028 = vmatprep.subr.bf16.mxu1 %v4030_v38 }
  0xf8   : > { %3611 = vrot.lane.b32.xlu0 %v3610_v32, %s4061_s24  ;;  %v5340_v42 = vpop.permute.xlu1 %3336  ;;  %v7400_v63 = vpack.i.bf16 %v7398_v36, %v7399_v44  ;;  %2975 = vmatpush3.bf16.msra.mxu0 %v4030_v38 }
  0xf9   : > { %7394 = vst [vmem:[#allocation43_spill] sm:$0xff] %v5340_v42  ;;  %v7401_v42 = vld [vmem:[#allocation55_spill] sm:$0xff]  ;;  %3031 = vmatpush3.bf16.msra.mxu1 %v4030_v38  ;;  %2976 = vmatprep.subr.bf16.mxu0 %v4031_v53 }
  0xfa   : > { %v5342_v26 = vpop.permute.xlu0 %3331  ;;  %3626 = vrot.lane.b32.xlu1 %v3625_v28, %s4062_s25  ;;  %3029 = vmatprep.subr.bf16.mxu1 %v4031_v53 }
  0xfb   : > { %7395 = vst [vmem:[#allocation52_spill] sm:$0xff] %v5342_v26  ;;  %v3630_v26 = vpack.i.bf16 %v7402_v54, %v7401_v42 }
  0xfc   : > { %3621 = vrot.lane.b32.xlu0 %v7400_v63, %s4061_s24  ;;  %v3347_v32 = vpop.permute.xlu1 %3346  ;;  %2977 = vmatpush3.bf16.msra.mxu0 %v4031_v53 }
  0xfd   : > { %v3349_v7 = vunpack.i.h.bf16 %v3347_v32  ;;  %v3348_v28 = vunpack.i.l.bf16 %v3347_v32  ;;  %3032 = vmatpush3.bf16.msra.mxu1 %v4031_v53 }
  0xfe   : > { %v3342_v51 = vpop.permute.xlu0 %3341  ;;  %3636 = vrot.lane.b32.xlu1 %v3635_v45, %s4062_s25  ;;  %v7403_v45 = vld [vmem:[#allocation57_spill] sm:$0xff] }
  0xff   : > { %v5362_v63 = vsel %vm1857_vm4, %v5133_v27, %v3348_v28  ;;  %v5366_v44 = vsel %vm1857_vm4, %v5130_v4, %v3349_v7  ;;  %v3344_v36 = vunpack.i.h.bf16 %v3342_v51  ;;  %v3343_v32 = vunpack.i.l.bf16 %v3342_v51  ;;  %v7406_v51 = vld [vmem:[#allocation107_spill] sm:$0xff] }
 0x100   : > { %3631 = vrot.lane.b32.xlu0 %v3630_v26, %s4062_s25  ;;  %v3357_v35 = vpop.permute.xlu1 %3356  ;;  %v3640_v14 = vpack.i.bf16 %v7404_v22, %v7403_v45  ;;  %v7405_v26 = vld [vmem:[#allocation19_spill] sm:$0xff]  ;;  %v1606_v45 = vsel %vm607_vm1, %v1605_v58, %v7406_v51 }
 0x101   : > { %v5373_v38 = vsel %vm1857_vm4, %v5143_v2, %v3343_v32  ;;  %v5377_v27 = vsel %vm1857_vm4, %v5146_v3, %v3344_v36  ;;  %v3359_v28 = vunpack.i.h.bf16 %v3357_v35  ;;  %v3358_v4 = vunpack.i.l.bf16 %v3357_v35  ;;  %v4032_v2 = vld [vmem:[%s6820_s1 + $0x10] ss:$0 sps:$4 sm:$0x33]  }
 0x102   : > { %v3352_v7 = vpop.permute.xlu0 %3351  ;;  %3646 = vrot.lane.b32.xlu1 %v7405_v26, %s4063_s30  ;;  %3034 = vmatprep.subr.msk.bf16.mxu0 %vm2268_vm5, %v4032_v2 }
 0x103   : > { %v5388_v3 = vsel %vm1857_vm4, %v5159_v17, %v3358_v4  ;;  %v5392_v35 = vsel %vm1857_vm4, %v5156_v1, %v3359_v28  ;;  %v3354_v36 = vunpack.i.h.bf16 %v3352_v7  ;;  %v3353_v32 = vunpack.i.l.bf16 %v3352_v7  ;;  %3035 = vmatprep.subr.msk.bf16.mxu1 %vm2268_vm5, %v4032_v2  ;;  %v7407_v28 = vld [vmem:[#allocation27_spill] sm:$0xff] }
 0x104   : > { %3641 = vrot.lane.b32.xlu0 %v3640_v14, %s4062_s25  ;;  %v3367_v26 = vpop.permute.xlu1 %3366  ;;  %v3665_v14 = vpack.i.bf16 %v7363_v12, %v1606_v45  ;;  %v2270_v7 = vsel %vm2268_vm5, %v4032_v2, 0 }
 0x105   : > { %v5397_v58 = vsel %vm1857_vm4, %v5169_v0, %v3353_v32  ;;  %v5401_v53 = vsel %vm1857_vm4, %v5172_v61, %v3354_v36  ;;  %v3369_v17 = vunpack.i.h.bf16 %v3367_v26  ;;  %v3368_v4 = vunpack.i.l.bf16 %v3367_v26  ;;  %2979 = vmatpush3.bf16.msra.mxu0 %v2270_v7  ;;  %3033 = vmatpush3.bf16.msra.mxu1 %v2270_v7  ;;  %v7408_v32 = vld [vmem:[#allocation73_spill] sm:$0xff] }
 0x106   : > { %v3362_v1 = vpop.permute.xlu0 %3361  ;;  %3656 = vrot.lane.b32.xlu1 %v7407_v28, %s4063_s30 }
 0x107   : > { %v5408_v51 = vsel %vm1857_vm4, %v5184_v59, %v3368_v4  ;;  %v5412_v0 = vsel %vm1857_vm4, %v5181_v34, %v3369_v17  ;;  %v3364_v61 = vunpack.i.h.bf16 %v3362_v1  ;;  %v3363_v36 = vunpack.i.l.bf16 %v3362_v1  ;;  %v7411_v34 = vld [vmem:[#allocation90_spill] sm:$0xff]  ;;  %v7414_v4 = vld [vmem:[#allocation117_spill] sm:$0xff] }
 0x108   : > { %3651 = vrot.lane.b32.xlu0 %v7408_v32, %s4063_s30  ;;  %v5416_v26 = vpop.permute.xlu1 %3376  ;;  %v7416_v1 = vld [vmem:[#allocation145_spill] sm:$0xff] }
 0x109   : > { %7409 = vst [vmem:[#allocation47_spill] sm:$0xff] %v5416_v26  ;;  %v5420_v12 = vsel %vm1857_vm4, %v5196_v18, %v3363_v36  ;;  %v5424_v59 = vsel %vm1857_vm4, %v5199_v39, %v3364_v61  ;;  %v7415_v18 = vld [vmem:[#allocation148_spill] sm:$0xff]  ;;  %v7421_v36 = vld [vmem:[#allocation65_spill] sm:$0xff] }
 0x10a   : > { %v5426_v45 = vpop.permute.xlu0 %3371  ;;  %3666 = vrot.lane.b32.xlu1 %v3665_v14, %s4064_s6  ;;  %v3685_v28 = vpack.i.bf16 %v7416_v1, %v7415_v18  ;;  %v7417_v39 = vld [vmem:[#allocation144_spill] sm:$0xff] }
 0x10b   : > { %7410 = vst [vmem:[#allocation40_spill] sm:$0xff] %v5426_v45  ;;  %v7420_v14 = vld [vmem:[#allocation64_spill] sm:$0xff] }
 0x10c   : > { %3661 = vrot.lane.b32.xlu0 %v7411_v34, %s4063_s30  ;;  %v5431_v2 = vpop.permute.xlu1 %3386  ;;  %v3695_v32 = vpack.i.bf16 %v7421_v36, %v7420_v14  ;;  %v7422_v34 = vld [vmem:[#allocation153_spill] sm:$0xff] }
 0x10d   : > { %7412 = vst [vmem:[#allocation51_spill] sm:$0xff] %v5431_v2  ;;  %v7424_v2 = vld [vmem:[#allocation16_spill] sm:$0xff] }
 0x10e   : > { %v5433_v17 = vpop.permute.xlu0 %3381  ;;  %3676 = vrot.lane.b32.xlu1 %v7414_v4, %s4064_s6  ;;  %v7423_v4 = vld [vmem:[#allocation15_spill] sm:$0xff] }
 0x10f   : > { %7413 = vst [vmem:[#allocation63_spill] sm:$0xff] %v5433_v17  ;;  %v3690_v45 = vpack.i.bf16 %v7424_v2, %v7423_v4 }
 0x110   : > { %3671 = vrot.lane.b32.xlu0 %v7417_v39, %s4064_s6  ;;  %v5441_v7 = vpop.permute.xlu1 %3396  ;;  %v3705_v39 = vpack.i.bf16 %v7284_v50, %v7287_v19 }
 0x111   : > { %7418 = vst [vmem:[#allocation54_spill] sm:$0xff] %v5441_v7 }
 0x112   : > { %v5443_v61 = vpop.permute.xlu0 %3391  ;;  %3686 = vrot.lane.b32.xlu1 %v3685_v28, %s4061_s24 }
 0x113   : > { %7419 = vst [vmem:[#allocation50_spill] sm:$0xff] %v5443_v61 }
 0x114   : > { %3681 = vrot.lane.b32.xlu0 %v7422_v34, %s4064_s6  ;;  %v3407_v17 = vpop.permute.xlu1 %3406 }
 0x115   : > { %v3409_v18 = vunpack.i.h.bf16 %v3407_v17  ;;  %v3408_v1 = vunpack.i.l.bf16 %v3407_v17  ;;  %v3700_v17 = vpack.i.bf16 %v4205_v55, %v4178_v41 }
 0x116   : > { %v3402_v26 = vpop.permute.xlu0 %3401  ;;  %3696 = vrot.lane.b32.xlu1 %v3695_v32, %s4062_s25 }
 0x117   : > { %v5457_v28 = vsel %vm1857_vm4, %v5254_v33, %v3408_v1  ;;  %v5461_v61 = vsel %vm1857_vm4, %v5251_v31, %v3409_v18  ;;  %v3404_v34 = vunpack.i.h.bf16 %v3402_v26  ;;  %v3403_v7 = vunpack.i.l.bf16 %v3402_v26  ;;  %v7425_v1 = vld [vmem:[#allocation85_spill] sm:$0xff] }
 0x118   : > { %3691 = vrot.lane.b32.xlu0 %v3690_v45, %s4062_s25  ;;  %v3417_v22 = vpop.permute.xlu1 %3416 }
 0x119   : > { %v5468_v32 = vsel %vm1857_vm4, %v5264_v60, %v3403_v7  ;;  %v5472_v50 = vsel %vm1857_vm4, %v5267_v24, %v3404_v34  ;;  %v3419_v19 = vunpack.i.h.bf16 %v3417_v22  ;;  %v3418_v33 = vunpack.i.l.bf16 %v3417_v22 }
 0x11a   : > { %v3412_v31 = vpop.permute.xlu0 %3411  ;;  %3706 = vrot.lane.b32.xlu1 %v3705_v39, %s4062_s25 }
 0x11b   : > { %v5477_v26 = vsel %vm1857_vm4, %v5280_v5, %v3418_v33  ;;  %v5481_v41 = vsel %vm1857_vm4, %v5277_v10, %v3419_v19  ;;  %v3414_v55 = vunpack.i.h.bf16 %v3412_v31  ;;  %v3413_v60 = vunpack.i.l.bf16 %v3412_v31  ;;  %v7430_v31 = vld [vmem:[#allocation34_spill] sm:$0xff] }
 0x11c   : > { %3701 = vrot.lane.b32.xlu0 %v3700_v17, %s4062_s25  ;;  %v3427_v45 = vpop.permute.xlu1 %3426  ;;  %v7426_v17 = vld [vmem:[#allocation26_spill] sm:$0xff] }
 0x11d   : > { %v5486_v24 = vsel %vm1857_vm4, %v5290_v37, %v3413_v60  ;;  %v5490_v22 = vsel %vm1857_vm4, %v5293_v49, %v3414_v55  ;;  %v3429_v7 = vunpack.i.h.bf16 %v3427_v45  ;;  %v3428_v5 = vunpack.i.l.bf16 %v3427_v45  ;;  %v7433_v45 = vld [vmem:[#allocation152_spill] sm:$0xff] }
 0x11e   : > { %v3422_v18 = vpop.permute.xlu0 %3421  ;;  %3716 = vrot.lane.b32.xlu1 %v7425_v1, %s4063_s30  ;;  %v7439_v1 = vld [vmem:[#allocation150_spill] sm:$0xff] }
 0x11f   : > { %v5496_v10 = vsel %vm1857_vm4, %v5306_v30, %v3428_v5  ;;  %v5500_v39 = vsel %vm1857_vm4, %v5303_v16, %v3429_v7  ;;  %v3424_v37 = vunpack.i.h.bf16 %v3422_v18  ;;  %v3423_v34 = vunpack.i.l.bf16 %v3422_v18  ;;  %v7429_v16 = vld [vmem:[#allocation99_spill] sm:$0xff] }
 0x120   : > { %3711 = vrot.lane.b32.xlu0 %v7426_v17, %s4063_s30  ;;  %v5504_v49 = vpop.permute.xlu1 %3436  ;;  %v7437_v5 = vld [vmem:[#allocation167_spill] sm:$0xff] }
 0x121   : > { %7427 = vst [vmem:[#allocation60_spill] sm:$0xff] %v5504_v49  ;;  %v5508_v19 = vsel %vm1857_vm4, %v5318_v52, %v3423_v34  ;;  %v5512_v33 = vsel %vm1857_vm4, %v5321_v23, %v3424_v37  ;;  %v7434_v52 = vld [vmem:[#allocation114_spill] sm:$0xff]  ;;  %v7438_v18 = vld [vmem:[#allocation159_spill] sm:$0xff]  ;;  %v7482_v49 = vld [vmem:[#allocation169_spill] sm:$0xff] }
 0x122   : > { %v5514_v30 = vpop.permute.xlu0 %3431  ;;  %3726 = vrot.lane.b32.xlu1 %v7429_v16, %s4063_s30  ;;  %v3755_v37 = vpack.i.bf16 %v7439_v1, %v7438_v18  ;;  %v7440_v34 = vld [vmem:[#allocation123_spill] sm:$0xff]  ;;  %v7441_v16 = vld [vmem:[#allocation146_spill] sm:$0xff] }
 0x123   : > { %7428 = vst [vmem:[#allocation74_spill] sm:$0xff] %v5514_v30 }
 0x124   : > { %3721 = vrot.lane.b32.xlu0 %v7430_v31, %s4063_s30  ;;  %v5520_v55 = vpop.permute.xlu1 %3446  ;;  %v7442_v31 = vld [vmem:[#allocation155_spill] sm:$0xff] }
 0x125   : > { %7431 = vst [vmem:[#allocation66_spill] sm:$0xff] %v5520_v55 }
 0x126   : > { %v5522_v60 = vpop.permute.xlu0 %3441  ;;  %3736 = vrot.lane.b32.xlu1 %v7433_v45, %s4064_s6  ;;  %v3750_v45 = vpack.i.bf16 %v7442_v31, %v7441_v16  ;;  %v3760_v16 = vpack.i.bf16 %v7275_v47, %v4182_v43  ;;  %v3770_v31 = vpack.i.bf16 %v4255_v20, %v7276_v57 }
 0x127   : > { %7432 = vst [vmem:[#allocation59_spill] sm:$0xff] %v5522_v60 }
 0x128   : > { %3731 = vrot.lane.b32.xlu0 %v7434_v52, %s4064_s6  ;;  %v5528_v23 = vpop.permute.xlu1 %3456 }
 0x129   : > { %7435 = vst [vmem:[#allocation72_spill] sm:$0xff] %v5528_v23  ;;  %v7458_v23 = vld [vmem:[#allocation179_spill] sm:$0xff] }
 0x12a   : > { %v5530_v7 = vpop.permute.xlu0 %3451  ;;  %3746 = vrot.lane.b32.xlu1 %v7437_v5, %s4064_s6 }
 0x12b   : > { %7436 = vst [vmem:[#allocation83_spill] sm:$0xff] %v5530_v7  ;;  %v3765_v7 = vpack.i.bf16 %v7290_v25, %v7285_v15 }
 0x12c   : > { %3741 = vrot.lane.b32.xlu0 %v7440_v34, %s4064_s6  ;;  %v3467_v17 = vpop.permute.xlu1 %3466 }
 0x12d   : > { %v3469_v60 = vunpack.i.h.bf16 %v3467_v17  ;;  %v3468_v55 = vunpack.i.l.bf16 %v3467_v17 }
 0x12e   : > { %v3462_v52 = vpop.permute.xlu0 %3461  ;;  %3756 = vrot.lane.b32.xlu1 %v3755_v37, %s4061_s24 }
 0x12f   : > { %v5545_v5 = vsel %vm1906_vm6, %v5362_v63, %v3468_v55  ;;  %v5549_v18 = vsel %vm1906_vm6, %v5366_v44, %v3469_v60  ;;  %v3464_v1 = vunpack.i.h.bf16 %v3462_v52  ;;  %v3463_v34 = vunpack.i.l.bf16 %v3462_v52 }
 0x130   : > { %3751 = vrot.lane.b32.xlu0 %v3750_v45, %s4061_s24  ;;  %v3477_v17 = vpop.permute.xlu1 %3476  ;;  %v3775_v55 = vpack.i.bf16 %v7288_v9, %v7291_v8 }
 0x131   : > { %v5556_v37 = vsel %vm1906_vm6, %v5373_v38, %v3463_v34  ;;  %v5560_v15 = vsel %vm1906_vm6, %v5377_v27, %v3464_v1  ;;  %v3479_v25 = vunpack.i.h.bf16 %v3477_v17  ;;  %v3478_v63 = vunpack.i.l.bf16 %v3477_v17 }
 0x132   : > { %v3472_v44 = vpop.permute.xlu0 %3471  ;;  %3766 = vrot.lane.b32.xlu1 %v3765_v7, %s4062_s25 }
 0x133   : > { %v5567_v60 = vsel %vm1906_vm6, %v5388_v3, %v3478_v63  ;;  %v5571_v43 = vsel %vm1906_vm6, %v5392_v35, %v3479_v25  ;;  %v3474_v47 = vunpack.i.h.bf16 %v3472_v44  ;;  %v3473_v38 = vunpack.i.l.bf16 %v3472_v44  ;;  %v7448_v25 = vld [vmem:[#allocation21_spill] sm:$0xff] }
 0x134   : > { %3761 = vrot.lane.b32.xlu0 %v3760_v16, %s4062_s25  ;;  %v3487_v27 = vpop.permute.xlu1 %3486  ;;  %v7447_v16 = vld [vmem:[#allocation95_spill] sm:$0xff]  ;;  %v3074_v63 = vunpack.i.h.bf16 %v7448_v25  ;;  %v3073_v44 = vunpack.i.l.bf16 %v7448_v25  ;;  %v7457_v25 = vld [vmem:[#allocation178_spill] sm:$0xff] }
 0x135   : > { %v5578_v7 = vsel %vm1906_vm6, %v5397_v58, %v3473_v38  ;;  %v5582_v8 = vsel %vm1906_vm6, %v5401_v53, %v3474_v47  ;;  %v3489_v9 = vunpack.i.h.bf16 %v3487_v27  ;;  %v3488_v3 = vunpack.i.l.bf16 %v3487_v27  ;;  %v7450_v47 = vld [vmem:[#allocation31_spill] sm:$0xff]  ;;  %v7452_v27 = vld [vmem:[#allocation177_spill] sm:$0xff] }
 0x136   : > { %v3482_v35 = vpop.permute.xlu0 %3481  ;;  %3776 = vrot.lane.b32.xlu1 %v3775_v55, %s4062_s25  ;;  %v7449_v55 = vld [vmem:[#allocation176_spill] sm:$0xff] }
 0x137   : > { %v5587_v45 = vsel %vm1906_vm6, %v5408_v51, %v3488_v3  ;;  %v5591_v20 = vsel %vm1906_vm6, %v5412_v0, %v3489_v9  ;;  %v3484_v57 = vunpack.i.h.bf16 %v3482_v35  ;;  %v3483_v58 = vunpack.i.l.bf16 %v3482_v35  ;;  %v7445_v51 = vld [vmem:[#allocation20_spill] sm:$0xff]  ;;  %v7453_v9 = vld [vmem:[#allocation2_spill] sm:$0xff]  ;;  %v7454_v35 = vld [vmem:[#allocation5_spill] sm:$0xff] }
 0x138   : > { %3771 = vrot.lane.b32.xlu0 %v3770_v31, %s4062_s25  ;;  %v5594_v52 = vpop.permute.xlu1 %3496  ;;  %v3084_v34 = vunpack.i.h.bf16 %v7445_v51  ;;  %v3083_v17 = vunpack.i.l.bf16 %v7445_v51  ;;  %v3088_v38 = vunpack.i.l.bf16 %v7449_v55  ;;  %v3079_v31 = vunpack.i.h.bf16 %v7452_v27 }
 0x139   : > { %7443 = vst [vmem:[#allocation77_spill] sm:$0xff] %v5594_v52  ;;  %v5598_v53 = vsel %vm1906_vm6, %v5420_v12, %v3483_v58  ;;  %v5602_v1 = vsel %vm1906_vm6, %v5424_v59, %v3484_v57  ;;  %v3089_v12 = vunpack.i.h.bf16 %v7449_v55  ;;  %v3078_v58 = vunpack.i.l.bf16 %v7452_v27 }
 0x13a   : > { %7444 = vst [vmem:[#allocation71_spill] sm:$0xff] %v5602_v1  ;;  %v5606_v0 = vpop.permute.xlu0 %3491  ;;  %3786 = vrot.lane.b32.xlu1 %v7447_v16, %s4063_s30  ;;  %v5621_v3 = vsel %vm1759_vm2, %v7453_v9, %v3084_v34  ;;  %v5625_v57 = vsel %vm1759_vm2, %v7454_v35, %v3083_v17  ;;  %v7456_v16 = vld [vmem:[#allocation104_spill] sm:$0xff]  ;;  %v3098_v55 = vunpack.i.l.bf16 %v7457_v25  ;;  %v3093_v34 = vunpack.i.l.bf16 %v7458_v23  ;;  %v7460_v17 = vld [vmem:[#allocation6_spill] sm:$0xff]  ;;  %v7486_v1 = vld [vmem:[#allocation61_spill] sm:$0xff] }
 0x13b   : > { %7446 = vst [vmem:[#allocation82_spill] sm:$0xff] %v5606_v0  ;;  %v7459_v9 = vld [vmem:[#allocation8_spill] sm:$0xff]  ;;  %v7461_v35 = vunpack.c.l.bf16 %v7460_v17  ;;  %v7465_v17 = vld [vmem:[#allocation79_spill] sm:$0xff]  ;;  %v7466_v0 = vld [vmem:[#allocation9_spill] sm:$0xff] }
 0x13c   : > { %3781 = vrot.lane.b32.xlu0 %v7450_v47, %s4063_s30  ;;  %v5615_v59 = vpop.permute.xlu1 %3506  ;;  %v3099_v47 = vunpack.i.h.bf16 %v7457_v25  ;;  %v5638_v52 = vsel %vm1759_vm2, %v7459_v9, %v3074_v63  ;;  %v7464_v63 = vld [vmem:[#allocation7_spill] sm:$0xff] }
 0x13d   : > { %7451 = vst [vmem:[#allocation92_spill] sm:$0xff] %v5615_v59  ;;  %v3094_v59 = vunpack.i.h.bf16 %v7458_v23  ;;  %v5643_v27 = vsel %vm1759_vm2, %v7461_v35, %v3073_v44  ;;  %v5655_v23 = vsel %vm1759_vm2, %v7392_v62, %v3088_v38  ;;  %v5659_v9 = vsel %vm1759_vm2, %v7464_v63, %v3079_v31  ;;  %v7469_v62 = vld [vmem:[#allocation158_spill] sm:$0xff]  ;;  %v7474_v63 = vld [vmem:[#allocation67_spill] sm:$0xff] }
 0x13e   : > { %v5628_v51 = vpop.permute.xlu0 %3501  ;;  %3796 = vrot.lane.b32.xlu1 %v7456_v16, %s4063_s30  ;;  %v5647_v16 = vsel %vm1759_vm2, %v7393_v21, %v3089_v12  ;;  %v3139_v44 = vunpack.i.h.bf16 %v7465_v17  ;;  %v3138_v35 = vunpack.i.l.bf16 %v7465_v17  ;;  %v5665_v21 = vsel %vm1759_vm2, %v7466_v0, %v3078_v58  ;;  %v7467_v12 = vld [vmem:[#allocation69_spill] sm:$0xff] }
 0x13f   : > { %7455 = vst [vmem:[#allocation88_spill] sm:$0xff] %v5628_v51  ;;  %v7462_v51 = vld [vmem:[#allocation45_spill] sm:$0xff]  ;;  %v5675_v38 = vsel %vm1759_vm2, %v7424_v2, %v3099_v47  ;;  %v5679_v31 = vsel %vm1759_vm2, %v7423_v4, %v3098_v55  ;;  %v5683_v0 = vsel %vm1759_vm2, %v7397_v48, %v3094_v59  ;;  %v5687_v58 = vsel %vm1759_vm2, %v7396_v40, %v3093_v34  ;;  %v7476_v2 = vld [vmem:[#allocation120_spill] sm:$0xff]  ;;  %v7477_v4 = vld [vmem:[#allocation46_spill] sm:$0xff] }
 0x140   : > { %3791 = vrot.lane.b32.xlu0 %v7462_v51, %s4063_s30  ;;  %v5651_v25 = vpop.permute.xlu1 %3516  ;;  %v3134_v51 = vunpack.i.h.bf16 %v7467_v12  ;;  %7470 = vst [vmem:[#allocation101_spill] sm:$0xff] %v5675_v38  ;;  %7471 = vst [vmem:[#allocation97_spill] sm:$0xff] %v5679_v31  ;;  %v3149_v17 = vunpack.i.h.bf16 %v7474_v63  ;;  %v5696_v55 = vsel %vm1759_vm2, %v7477_v4, %v3139_v44  ;;  %v7478_v48 = vld [vmem:[#allocation41_spill] sm:$0xff]  ;;  %v7481_v44 = vld [vmem:[#allocation172_spill] sm:$0xff] }
 0x141   : > { %7463 = vst [vmem:[#allocation78_spill] sm:$0xff] %v5651_v25  ;;  %v3133_v25 = vunpack.i.l.bf16 %v7467_v12  ;;  %7472 = vst [vmem:[#allocation89_spill] sm:$0xff] %v5683_v0  ;;  %v3148_v12 = vunpack.i.l.bf16 %v7474_v63  ;;  %v5700_v59 = vsel %vm1759_vm2, %v7478_v48, %v3138_v35  ;;  %v7479_v0 = vld [vmem:[#allocation49_spill] sm:$0xff]  ;;  %v7483_v4 = vld [vmem:[#allocation160_spill] sm:$0xff] }
 0x142   : > { %v5669_v30 = vpop.permute.xlu0 %3511  ;;  %3806 = vrot.lane.b32.xlu1 %v7469_v62, %s4064_s6  ;;  %7473 = vst [vmem:[#allocation100_spill] sm:$0xff] %v5687_v58  ;;  %v7475_v62 = vld [vmem:[#allocation87_spill] sm:$0xff]  ;;  %v5704_v58 = vsel %vm1759_vm2, %v7479_v0, %v3134_v51  ;;  %v7480_v63 = vld [vmem:[#allocation37_spill] sm:$0xff]  ;;  %v3825_v35 = vpack.i.bf16 %v7483_v4, %v7482_v49 }
 0x143   : > { %7468 = vst [vmem:[#allocation91_spill] sm:$0xff] %v5669_v30  ;;  %v3144_v30 = vunpack.i.h.bf16 %v7475_v62  ;;  %v5708_v31 = vsel %vm1759_vm2, %v7480_v63, %v3133_v25 }
 0x144   : > { %3801 = vrot.lane.b32.xlu0 %v7476_v2, %s4064_s6  ;;  %v3527_v47 = vpop.permute.xlu1 %3526  ;;  %v3143_v2 = vunpack.i.l.bf16 %v7475_v62  ;;  %v5725_v62 = vsel %vm1759_vm2, %v7402_v54, %v3149_v17 }
 0x145   : > { %v3529_v40 = vunpack.i.h.bf16 %v3527_v47  ;;  %v3528_v34 = vunpack.i.l.bf16 %v3527_v47  ;;  %v5733_v49 = vsel %vm1759_vm2, %v7486_v1, %v3144_v30 }
 0x146   : > { %v3522_v38 = vpop.permute.xlu0 %3521  ;;  %3816 = vrot.lane.b32.xlu1 %v7481_v44, %s4064_s6  ;;  %v5729_v44 = vsel %vm1759_vm2, %v7401_v42, %v3148_v12  ;;  %v7492_v12 = vld [vmem:[#allocation48_spill] sm:$0xff] }
 0x147   : > { %v5717_v47 = vsel %vm1906_vm6, %v5457_v28, %v3528_v34  ;;  %v5721_v51 = vsel %vm1906_vm6, %v5461_v61, %v3529_v40  ;;  %v3524_v48 = vunpack.i.h.bf16 %v3522_v38  ;;  %v3523_v25 = vunpack.i.l.bf16 %v3522_v38  ;;  %v7487_v28 = vld [vmem:[#allocation129_spill] sm:$0xff]  ;;  %v7488_v61 = vld [vmem:[#allocation151_spill] sm:$0xff]  ;;  %v7489_v40 = vld [vmem:[#allocation168_spill] sm:$0xff] }
 0x148   : > { %7484 = vst [vmem:[#allocation106_spill] sm:$0xff] %v5717_v47  ;;  %7485 = vst [vmem:[#allocation98_spill] sm:$0xff] %v5721_v51  ;;  %3811 = vrot.lane.b32.xlu0 %v7487_v28, %s4064_s6  ;;  %v3537_v4 = vpop.permute.xlu1 %3536  ;;  %v3820_v34 = vpack.i.bf16 %v7489_v40, %v7488_v61  ;;  %v5749_v30 = vsel %vm1759_vm2, %v7492_v12, %v3143_v2  ;;  %v7493_v51 = vld [vmem:[#allocation80_spill] sm:$0xff] }
 0x149   : > { %v5741_v38 = vsel %vm1906_vm6, %v5468_v32, %v3523_v25  ;;  %v5745_v54 = vsel %vm1906_vm6, %v5472_v50, %v3524_v48  ;;  %v3539_v42 = vunpack.i.h.bf16 %v3537_v4  ;;  %v3538_v17 = vunpack.i.l.bf16 %v3537_v4  ;;  %v7496_v4 = vld [vmem:[#allocation75_spill] sm:$0xff]  ;;  %v7497_v40 = vld [vmem:[#allocation76_spill] sm:$0xff] }
 0x14a   : > { %7490 = vst [vmem:[#allocation105_spill] sm:$0xff] %v5741_v38  ;;  %7491 = vst [vmem:[#allocation113_spill] sm:$0xff] %v5745_v54  ;;  %v3159_v28 = vunpack.i.h.bf16 %v7493_v51  ;;  %v3158_v47 = vunpack.i.l.bf16 %v7493_v51  ;;  %v3532_v1 = vpop.permute.xlu0 %3531  ;;  %3826 = vrot.lane.b32.xlu1 %v3825_v35, %s4061_s24  ;;  %v3835_v32 = vpack.i.bf16 %v7292_v6, %v7289_v46  ;;  %v3154_v61 = vunpack.i.h.bf16 %v7496_v4 }
 0x14b   : > { %v5758_v50 = vsel %vm1906_vm6, %v5477_v26, %v3538_v17  ;;  %v5762_v48 = vsel %vm1906_vm6, %v5481_v41, %v3539_v42  ;;  %v3534_v2 = vunpack.i.h.bf16 %v3532_v1  ;;  %v3533_v25 = vunpack.i.l.bf16 %v3532_v1  ;;  %v7500_v42 = vld [vmem:[#allocation84_spill] sm:$0xff] }
 0x14c   : > { %7494 = vst [vmem:[#allocation110_spill] sm:$0xff] %v5758_v50  ;;  %7495 = vst [vmem:[#allocation109_spill] sm:$0xff] %v5762_v48  ;;  %v3199_v51 = vunpack.i.h.bf16 %v7497_v40  ;;  %v3198_v54 = vunpack.i.l.bf16 %v7497_v40  ;;  %3821 = vrot.lane.b32.xlu0 %v3820_v34, %s4061_s24  ;;  %v3547_v35 = vpop.permute.xlu1 %3546  ;;  %v3830_v6 = vpack.i.bf16 %v4237_v13, %v4207_v56  ;;  %v3194_v17 = vunpack.i.h.bf16 %v7500_v42  ;;  %v7501_v48 = vld [vmem:[#allocation13_spill] sm:$0xff] }
 0x14d   : > { %v5772_v46 = vsel %vm1906_vm6, %v5486_v24, %v3533_v25  ;;  %v5776_v26 = vsel %vm1906_vm6, %v5490_v22, %v3534_v2  ;;  %v3549_v41 = vunpack.i.h.bf16 %v3547_v35  ;;  %v3548_v1 = vunpack.i.l.bf16 %v3547_v35 }
 0x14e   : > { %7498 = vst [vmem:[#allocation112_spill] sm:$0xff] %v5772_v46  ;;  %7499 = vst [vmem:[#allocation119_spill] sm:$0xff] %v5776_v26  ;;  %v3193_v40 = vunpack.i.l.bf16 %v7500_v42  ;;  %v3209_v34 = vunpack.i.h.bf16 %v7501_v48  ;;  %v3542_v50 = vpop.permute.xlu0 %3541  ;;  %3836 = vrot.lane.b32.xlu1 %v3835_v32, %s4062_s25  ;;  %v3845_v56 = vpack.i.bf16 %v7380_v11, %v7381_v29  ;;  %v5794_v25 = vsel %vm1759_vm2, %v7421_v36, %v3159_v28  ;;  %v7505_v32 = vld [vmem:[#allocation25_spill] sm:$0xff]  ;;  %v7506_v29 = vld [vmem:[#allocation30_spill] sm:$0xff] }
 0x14f   : > { %v5786_v13 = vsel %vm1906_vm6, %v5496_v10, %v3548_v1  ;;  %v5790_v24 = vsel %vm1906_vm6, %v5500_v39, %v3549_v41  ;;  %v3544_v22 = vunpack.i.h.bf16 %v3542_v50  ;;  %v3543_v2 = vunpack.i.l.bf16 %v3542_v50  ;;  %7504 = vst [vmem:[#allocation118_spill] sm:$0xff] %v5794_v25  ;;  %v7507_v10 = vld [vmem:[#allocation38_spill] sm:$0xff]  ;;  %v7535_v46 = vld [vmem:[#allocation36_spill] sm:$0xff] }
 0x150   : > { %7502 = vst [vmem:[#allocation115_spill] sm:$0xff] %v5786_v13  ;;  %7503 = vst [vmem:[#allocation111_spill] sm:$0xff] %v5790_v24  ;;  %v3208_v35 = vunpack.i.l.bf16 %v7501_v48  ;;  %v3204_v42 = vunpack.i.h.bf16 %v7505_v32  ;;  %3831 = vrot.lane.b32.xlu0 %v3830_v6, %s4062_s25  ;;  %v5799_v11 = vpop.permute.xlu1 %3556  ;;  %v3840_v1 = vpack.i.bf16 %v7507_v10, %v7506_v29  ;;  %v5805_v39 = vsel %vm1759_vm2, %v7420_v14, %v3158_v47  ;;  %v7511_v48 = vld [vmem:[#allocation68_spill] sm:$0xff]  ;;  %v7532_v24 = vld [vmem:[#allocation94_spill] sm:$0xff] }
 0x151   : > { %7508 = vst [vmem:[#allocation125_spill] sm:$0xff] %v5805_v39  ;;  %v3203_v50 = vunpack.i.l.bf16 %v7505_v32  ;;  %v5810_v36 = vsel %vm1906_vm6, %v5508_v19, %v3543_v2  ;;  %v5814_v28 = vsel %vm1906_vm6, %v5512_v33, %v3544_v22  ;;  %v5818_v6 = vsel %vm1759_vm2, %v7511_v48, %v3154_v61  ;;  %v7516_v2 = vld [vmem:[#allocation33_spill] sm:$0xff]  ;;  %v7533_v26 = vld [vmem:[#allocation170_spill] sm:$0xff] }
 0x152   : > { %7509 = vst [vmem:[#allocation121_spill] sm:$0xff] %v5810_v36  ;;  %7510 = vst [vmem:[#allocation116_spill] sm:$0xff] %v5814_v28  ;;  %v1811_v14 = vsel %vm1808_vm3, %v5665_v21, %v3198_v54  ;;  %v5823_v47 = vpop.permute.xlu0 %3551  ;;  %3846 = vrot.lane.b32.xlu1 %v3845_v56, %s4062_s25  ;;  %v1812_v19 = vsel %vm1808_vm3, %v5659_v9, %v3199_v51  ;;  %v1809_v33 = vsel %vm1808_vm3, %v5643_v27, %v3193_v40  ;;  %v7513_v56 = vld [vmem:[#allocation14_spill] sm:$0xff]  ;;  %v7514_v51 = vld [vmem:[#allocation17_spill] sm:$0xff] }
 0x153   : > { %7512 = vst [vmem:[#allocation124_spill] sm:$0xff] %v5818_v6  ;;  %v1810_v22 = vsel %vm1808_vm3, %v5638_v52, %v3194_v17  ;;  %v5834_v61 = vsel %vm1808_vm3, %v5647_v16, %v3209_v34  ;;  %v5838_v21 = vsel %vm1808_vm3, %v5655_v23, %v3208_v35  ;;  %v5842_v54 = vsel %vm1808_vm3, %v5621_v3, %v3204_v42  ;;  %v7515_v40 = vld [vmem:[#allocation24_spill] sm:$0xff]  ;;  %v7517_v42 = vld [vmem:[#allocation102_spill] sm:$0xff]  ;;  %v7531_v36 = vld [vmem:[#allocation93_spill] sm:$0xff] }
 0x154   : > { %v3259_v9 = vunpack.i.h.bf16 %v7513_v56  ;;  %3841 = vrot.lane.b32.xlu0 %v3840_v1, %s4062_s25  ;;  %v5846_v27 = vpop.permute.xlu1 %3566  ;;  %v5850_v52 = vsel %vm1808_vm3, %v5625_v57, %v3203_v50  ;;  %v3258_v16 = vunpack.i.l.bf16 %v7513_v56  ;;  %v3254_v17 = vunpack.i.h.bf16 %v7514_v51  ;;  %v7529_v28 = vld [vmem:[#allocation162_spill] sm:$0xff] }
 0x155   : > { %v3253_v23 = vunpack.i.l.bf16 %v7514_v51  ;;  %v3269_v34 = vunpack.i.h.bf16 %v7515_v40  ;;  %v3268_v3 = vunpack.i.l.bf16 %v7515_v40  ;;  %v3263_v35 = vunpack.i.l.bf16 %v7516_v2  ;;  %v7520_v40 = vld [vmem:[#allocation42_spill] sm:$0xff] }
 0x156   : > { %v5858_v32 = vpop.permute.xlu0 %3561  ;;  %3856 = vrot.lane.b32.xlu1 %v7517_v42, %s4063_s30  ;;  %v3264_v48 = vunpack.i.h.bf16 %v7516_v2  ;;  %v5869_v51 = vsel %vm1808_vm3, %v5696_v55, %v3259_v9  ;;  %v5877_v42 = vsel %vm1808_vm3, %v5700_v59, %v3258_v16  ;;  %v5885_v2 = vsel %vm1808_vm3, %v5704_v58, %v3254_v17  ;;  %v7524_v17 = vld [vmem:[#allocation174_spill] sm:$0xff] }
 0x157   : > { %v5881_v50 = vsel %vm1808_vm3, %v5708_v31, %v3253_v23  ;;  %v5889_v55 = vsel %vm1808_vm3, %v5725_v62, %v3269_v34  ;;  %v5893_v9 = vsel %vm1808_vm3, %v5729_v44, %v3268_v3  ;;  %v5897_v59 = vsel %vm1808_vm3, %v5749_v30, %v3263_v35  ;;  %v7523_v31 = vld [vmem:[#allocation108_spill] sm:$0xff]  ;;  %v7525_v62 = vld [vmem:[#allocation171_spill] sm:$0xff]  ;;  %v7528_v35 = vld [vmem:[#allocation58_spill] sm:$0xff] }
 0x158   : > { %3851 = vrot.lane.b32.xlu0 %v7520_v40, %s4063_s30  ;;  %v5873_v41 = vpop.permute.xlu1 %3576  ;;  %v5905_v58 = vsel %vm1808_vm3, %v5733_v49, %v3264_v48  ;;  %v3895_v23 = vpack.i.bf16 %v7525_v62, %v7524_v17  ;;  %v7526_v34 = vld [vmem:[#allocation32_spill] sm:$0xff]  ;;  %v7530_v49 = vld [vmem:[#allocation173_spill] sm:$0xff]  ;;  %v3905_v17 = vpack.i.bf16 %v7532_v24, %v7531_v36  ;;  %v3554_v39 = vunpack.i.h.bf16 %v5823_v47 }
 0x159   : > { %7521 = vst [vmem:[#allocation131_spill] sm:$0xff] %v5873_v41  ;;  %v3319_v40 = vunpack.i.h.bf16 %v7526_v34  ;;  %v3318_v44 = vunpack.i.l.bf16 %v7526_v34  ;;  %v7527_v3 = vld [vmem:[#allocation44_spill] sm:$0xff]  ;;  %v3890_v48 = vpack.i.bf16 %v7530_v49, %v7529_v28  ;;  %v7534_v34 = vld [vmem:[#allocation35_spill] sm:$0xff] }
 0x15a   : > { %v5899_v16 = vpop.permute.xlu0 %3571  ;;  %3866 = vrot.lane.b32.xlu1 %v7523_v31, %s4063_s30  ;;  %v3314_v56 = vunpack.i.h.bf16 %v7527_v3  ;;  %v3313_v30 = vunpack.i.l.bf16 %v7527_v3  ;;  %v7536_v3 = vld [vmem:[#allocation157_spill] sm:$0xff] }
 0x15b   : > { %7522 = vst [vmem:[#allocation127_spill] sm:$0xff] %v5899_v16  ;;  %v7537_v16 = vld [vmem:[#allocation154_spill] sm:$0xff]  ;;  %v5939_v49 = vsel %vm1857_vm4, %v1812_v19, %v3319_v40 }
 0x15c   : > { %3861 = vrot.lane.b32.xlu0 %v7528_v35, %s4063_s30  ;;  %v3587_v10 = vpop.permute.xlu1 %3586  ;;  %v5942_v41 = vsel %vm1857_vm4, %v1809_v33, %v3313_v30  ;;  %v5945_v35 = vsel %vm1857_vm4, %v1810_v22, %v3314_v56  ;;  %v7543_v33 = vld [vmem:[#allocation39_spill] sm:$0xff]  ;;  %v1152_v30 = vrot.slane %v7536_v3, 2 }
 0x15d   : > { %v3589_v31 = vunpack.i.h.bf16 %v3587_v10  ;;  %v3588_v57 = vunpack.i.l.bf16 %v3587_v10  ;;  %v3329_v40 = vunpack.i.h.bf16 %v7543_v33  ;;  %v3328_v22 = vunpack.i.l.bf16 %v7543_v33 }
 0x15e   : > { %v3582_v13 = vpop.permute.xlu0 %3581  ;;  %3876 = vrot.lane.b32.xlu1 %v7533_v26, %s4064_s6  ;;  %v5936_v26 = vsel %vm1857_vm4, %v1811_v14, %v3318_v44  ;;  %v7544_v44 = vld [vmem:[#allocation175_spill] sm:$0xff] }
 0x15f   : > { %v5929_v10 = vsel %vm1955_vm7, %v5545_v5, %v3588_v57  ;;  %v5933_v24 = vsel %vm1955_vm7, %v5549_v18, %v3589_v31  ;;  %v3584_v36 = vunpack.i.h.bf16 %v3582_v13  ;;  %v3583_v28 = vunpack.i.l.bf16 %v3582_v13  ;;  %v7540_v5 = vld [vmem:[#allocation126_spill] sm:$0xff] }
 0x160   : > { %7538 = vst [vmem:[#allocation122_spill] sm:$0xff] %v5929_v10  ;;  %7539 = vst [vmem:[#allocation130_spill] sm:$0xff] %v5933_v24  ;;  %3871 = vrot.lane.b32.xlu0 %v7540_v5, %s4064_s6  ;;  %v3597_v18 = vpop.permute.xlu1 %3596  ;;  %v7547_v5 = vld [vmem:[#allocation29_spill] sm:$0xff]  ;;  %v1154_v10 = vrot.slane %v7537_v16, 2 }
 0x161   : > { %v5951_v13 = vsel %vm1955_vm7, %v5556_v37, %v3583_v28  ;;  %v5955_v14 = vsel %vm1955_vm7, %v5560_v15, %v3584_v36  ;;  %v3599_v19 = vunpack.i.h.bf16 %v3597_v18  ;;  %v3598_v57 = vunpack.i.l.bf16 %v3597_v18  ;;  %v2946_v28 = vld [vmem:[%s4109_s19 + $0xd0] sm:$0xff]  }
 0x162   : > { %7541 = vst [vmem:[#allocation137_spill] sm:$0xff] %v5951_v13  ;;  %7542 = vst [vmem:[#allocation133_spill] sm:$0xff] %v5955_v14  ;;  %v3592_v56 = vpop.permute.xlu0 %3591  ;;  %3886 = vrot.lane.b32.xlu1 %v7544_v44, %s4064_s6  ;;  %v3324_v18 = vunpack.i.h.bf16 %v7547_v5  ;;  %v3323_v33 = vunpack.i.l.bf16 %v7547_v5  ;;  %v7548_v44 = vld [vmem:[#allocation135_spill] sm:$0xff]  ;;  %v5989_v5 = vsel %vm1857_vm4, %v5838_v21, %v3328_v22  ;;  %v7553_v14 = vld [vmem:[#allocation10_spill] sm:$0xff]  ;;  %v5999_v13 = vunpack.c.l.bf16 %v2946_v28 }
 0x163   : > { %v5964_v37 = vsel %vm1955_vm7, %v5567_v60, %v3598_v57  ;;  %v5968_v15 = vsel %vm1955_vm7, %v5571_v43, %v3599_v19  ;;  %v3594_v31 = vunpack.i.h.bf16 %v3592_v56  ;;  %v3593_v36 = vunpack.i.l.bf16 %v3592_v56  ;;  %v7549_v60 = vld [vmem:[#allocation156_spill] sm:$0xff] }
 0x164   : > { %7545 = vst [vmem:[#allocation96_spill] sm:$0xff] %v5964_v37  ;;  %7546 = vst [vmem:[#allocation86_spill] sm:$0xff] %v5968_v15  ;;  %3881 = vrot.lane.b32.xlu0 %v7548_v44, %s4064_s6  ;;  %v3607_v38 = vpop.permute.xlu1 %3606  ;;  %v5977_v57 = vrot.slane %v7549_v60, 2  ;;  %v7552_v15 = vld [vmem:[#allocation163_spill] sm:$0xff]  ;;  %v6011_v22 = vsel %vm1857_vm4, %v5834_v61, %v3329_v40 }
 0x165   : > { %v5981_v43 = vsel %vm1955_vm7, %v5578_v7, %v3593_v36  ;;  %v5985_v19 = vsel %vm1955_vm7, %v5582_v8, %v3594_v31  ;;  %v3609_v56 = vunpack.i.h.bf16 %v3607_v38  ;;  %v3608_v37 = vunpack.i.l.bf16 %v3607_v38  ;;  %v7563_v31 = vld [vmem:[#allocation51_spill] sm:$0xff] }
 0x166   : > { %7550 = vst [vmem:[#allocation128_spill] sm:$0xff] %v5981_v43  ;;  %7551 = vst [vmem:[#allocation136_spill] sm:$0xff] %v5985_v19  ;;  %v3602_v44 = vpop.permute.xlu0 %3601  ;;  %3896 = vrot.lane.b32.xlu1 %v3895_v23, %s4061_s24  ;;  %v5994_v24 = vsel %vm607_vm1, %v7552_v15, %v1152_v30  ;;  %v7554_v7 = vunpack.c.l.bf16 %v7553_v14  ;;  %v305_v43 = vld [vmem:[%s4109_s19 + $0xcc] sm:$0xf]  ;;  %v6015_v14 = vsel %vm1857_vm4, %v5850_v52, %v3323_v33  ;;  %v7569_v19 = vld [vmem:[#allocation161_spill] sm:$0xff] }
 0x167   : > { %v6003_v8 = vsel %vm1955_vm7, %v5587_v45, %v3608_v37  ;;  %v6007_v38 = vsel %vm1955_vm7, %v5591_v20, %v3609_v56  ;;  %v3604_v21 = vunpack.i.h.bf16 %v3602_v44  ;;  %v3603_v23 = vunpack.i.l.bf16 %v3602_v44  ;;  %v7558_v52 = vld [vmem:[#allocation71_spill] sm:$0xff]  ;;  %v7561_v44 = vld [vmem:[#allocation40_spill] sm:$0xff] }
 0x168   : > { %v1158_v36 = vrot.slane %v7554_v7, 2  ;;  %7555 = vst [vmem:[#allocation143_spill] sm:$0xff] %v6003_v8  ;;  %7556 = vst [vmem:[#allocation139_spill] sm:$0xff] %v6007_v38  ;;  %3891 = vrot.lane.b32.xlu0 %v3890_v48, %s4061_s24  ;;  %v6018_v15 = vpop.permute.xlu1 %3616  ;;  %v6021_v45 = vsel %vm607_vm1, %v1152_v30, %v1154_v10  ;;  %v6025_v20 = vsel %vm607_vm1, %v1154_v10, %v5977_v57  ;;  %v6039_v40 = vunpack.c.l.bf16 %v305_v43  ;;  %v7560_v43 = vld [vmem:[#allocation47_spill] sm:$0xff] }
 0x169   : > { %v6029_v37 = vsel %vm1857_vm4, %v5842_v54, %v3324_v18  ;;  %v6033_v61 = vsel %vm1955_vm7, %v5598_v53, %v3603_v23  ;;  %v6037_v48 = vsel %vm1955_vm7, %v7558_v52, %v3604_v21  ;;  %v6050_v53 = vunpack.c.h.bf16 %v2946_v28  ;;  %v6068_v23 = vld [vmem:[%s4109_s19 + $0xd8] sm:$0x1]  ;;  %v7566_v21 = vld [vmem:[#allocation46_spill] sm:$0xff]  ;;  %v7568_v33 = vld [vmem:[#allocation63_spill] sm:$0xff] }
 0x16a   : > { %7557 = vst [vmem:[#allocation134_spill] sm:$0xff] %v6033_v61  ;;  %7559 = vst [vmem:[#allocation142_spill] sm:$0xff] %v6037_v48  ;;  %v6041_v30 = vpop.permute.xlu0 %3611  ;;  %3906 = vrot.lane.b32.xlu1 %v3905_v17, %s4062_s25  ;;  %v6048_v54 = vsel %vm607_vm1, %v5977_v57, %v1158_v36  ;;  %v1452_v18 = vrot.slane %v6039_v40, 1  ;;  %v3379_v56 = vunpack.i.h.bf16 %v7560_v43  ;;  %v3378_v17 = vunpack.i.l.bf16 %v7560_v43 }
 0x16b   : > { %v3373_v7 = vunpack.i.l.bf16 %v7561_v44  ;;  %v7562_v36 = vpack.i.bf16 %v7535_v46, %v7534_v34  ;;  %v3374_v52 = vunpack.i.h.bf16 %v7561_v44  ;;  %v3389_v10 = vunpack.i.h.bf16 %v7563_v31 }
 0x16c   : > { %v6063_v28 = vpop.permute.xlu1 %3626  ;;  %v3388_v43 = vunpack.i.l.bf16 %v7563_v31  ;;  %v7564_v46 = vpack.i.bf16 %v7537_v16, %v7536_v3  ;;  %v7567_v31 = vld [vmem:[#allocation61_spill] sm:$0xff]  ;;  %v3383_v61 = vunpack.i.l.bf16 %v7568_v33  ;;  %v6092_v6 = vsel %vm364_vm0, %v7569_v19, %v1452_v18 }
 0x16d   : > { %3901 = vrot.lane.b32.xlu0 %v7562_v36, %s4062_s25  ;;  %v7565_v36 = vld [vmem:[#allocation41_spill] sm:$0xff]  ;;  %v7570_v16 = vrot.slane %v5999_v13, 1  ;;  %v6102_v44 = vsel %vm1857_vm4, %v5877_v42, %v3378_v17  ;;  %v6106_v48 = vsel %vm1857_vm4, %v5869_v51, %v3379_v56  ;;  %v1882_v38 = vsel %vm1857_vm4, %v5881_v50, %v3373_v7  ;;  %v7572_v50 = vld [vmem:[#allocation60_spill] sm:$0xff]  ;;  %v7574_v7 = vld [vmem:[#allocation103_spill] sm:$0xff] }
 0x16e   : > { %v6075_v8 = vpop.permute.xlu0 %3621  ;;  %3916 = vrot.lane.b32.xlu1 %v7564_v46, %s4062_s25  ;;  %v7091_v46 = vunpack.c.l.bf16 %v6068_v23  ;;  %v3384_v19 = vunpack.i.h.bf16 %v7568_v33  ;;  %v1883_v42 = vsel %vm1857_vm4, %v5885_v2, %v3374_v52  ;;  %v6121_v17 = vsel %vm1857_vm4, %v5893_v9, %v3388_v43  ;;  %v7578_v2 = vld [vmem:[#allocation53_spill] sm:$0xff] }
 0x16f   : > { %v6097_v3 = vsel %vm364_vm0, %v1452_v18, %v7570_v16  ;;  %v7571_v18 = vpack.i.bf16 %v7479_v0, %v7480_v63  ;;  %v6125_v51 = vsel %vm1857_vm4, %v5889_v55, %v3389_v10  ;;  %v3439_v33 = vunpack.i.h.bf16 %v7572_v50  ;;  %v7573_v63 = vld [vmem:[#allocation166_spill] sm:$0xff] }
 0x170   : > { %v6115_v16 = vpop.permute.xlu1 %3636  ;;  %v3438_v56 = vunpack.i.l.bf16 %v7572_v50  ;;  %v6140_v55 = vsel %vm1857_vm4, %v5897_v59, %v3383_v61  ;;  %v7576_v10 = vld [vmem:[#allocation74_spill] sm:$0xff]  ;;  %v6146_v50 = vrot.slane %v7091_v46, 1  ;;  %v3559_v46 = vunpack.i.h.bf16 %v5799_v11  ;;  %v7580_v61 = vld [vmem:[#allocation165_spill] sm:$0xff] }
 0x171   : > { %3911 = vrot.lane.b32.xlu0 %v7571_v18, %s4062_s25  ;;  %v7575_v18 = vpack.i.bf16 %v7573_v63, %v7574_v7  ;;  %v3434_v52 = vunpack.i.h.bf16 %v7576_v10  ;;  %v3433_v43 = vunpack.i.l.bf16 %v7576_v10  ;;  %v6150_v63 = vsel %vm1857_vm4, %v5905_v58, %v3384_v19  ;;  %v7577_v7 = vld [vmem:[#allocation82_spill] sm:$0xff] }
 0x172   : > { %v6129_v0 = vpop.permute.xlu0 %3631  ;;  %v3494_v10 = vunpack.i.h.bf16 %v7577_v7  ;;  %v3558_v34 = vunpack.i.l.bf16 %v5799_v11  ;;  %v1909_v19 = vsel %vm1906_vm6, %v5936_v26, %v3438_v56  ;;  %v3553_v59 = vunpack.i.l.bf16 %v5823_v47  ;;  %v7582_v56 = vld [vmem:[#allocation77_spill] sm:$0xff] }
 0x173   : > { %3926 = vrot.lane.b32.xlu1 %v7575_v18, %s4063_s30  ;;  %v3493_v18 = vunpack.i.l.bf16 %v7577_v7  ;;  %v7579_v7 = vld [vmem:[#allocation164_spill] sm:$0xff]  ;;  %v1907_v11 = vsel %vm1906_vm6, %v5942_v41, %v3433_v43  ;;  %v1908_v26 = vsel %vm1906_vm6, %v5945_v35, %v3434_v52  ;;  %v3629_v29 = vunpack.i.h.bf16 %v6063_v28 }
 0x174   : > { %v3647_v9 = vpop.permute.xlu1 %3646  ;;  %v7581_v1 = vpack.i.bf16 %v7579_v7, %v7580_v61  ;;  %v3628_v61 = vunpack.i.l.bf16 %v6063_v28  ;;  %v1932_v43 = vsel %vm1906_vm6, %v1883_v42, %v3494_v10  ;;  %v1958_v35 = vsel %vm1955_vm7, %v1909_v19, %v3558_v34 }
 0x175   : > { %3921 = vrot.lane.b32.xlu0 %v7578_v2, %s4063_s30  ;;  %v1910_v2 = vsel %vm1906_vm6, %v5939_v49, %v3439_v33  ;;  %v3613_v49 = vunpack.i.l.bf16 %v6041_v30  ;;  %v1931_v33 = vsel %vm1906_vm6, %v1882_v38, %v3493_v18  ;;  %v3648_v7 = vunpack.i.l.bf16 %v3647_v9 }
 0x176   : > { %v6167_v25 = vpop.permute.xlu0 %3641  ;;  %v1959_v52 = vsel %vm1955_vm7, %v1910_v2, %v3559_v46  ;;  %v1956_v58 = vsel %vm1955_vm7, %v1907_v11, %v3553_v59  ;;  %v1957_v47 = vsel %vm1955_vm7, %v1908_v26, %v3554_v39  ;;  %v3619_v38 = vunpack.i.h.bf16 %v6018_v15  ;;  %v7585_v2 = vld [vmem:[#allocation132_spill] sm:$0xff] }
 0x177   : > { %3936 = vrot.lane.b32.xlu1 %v7581_v1, %s4063_s30  ;;  %v7583_v1 = vld [vmem:[#allocation70_spill] sm:$0xff]  ;;  %v3649_v18 = vunpack.i.h.bf16 %v3647_v9  ;;  %v7584_v28 = vpack.i.bf16 %v5994_v24, %v7525_v62  ;;  %v3618_v42 = vunpack.i.l.bf16 %v6018_v15  ;;  %v3614_v34 = vunpack.i.h.bf16 %v6041_v30 }
 0x178   : > { %v3657_v41 = vpop.permute.xlu1 %3656  ;;  %v1980_v46 = vsel %vm1955_vm7, %v1931_v33, %v3613_v49  ;;  %v3638_v10 = vunpack.i.l.bf16 %v6115_v16  ;;  %v2005_v59 = vsel %vm2004_vm8, %v1956_v58, %v3628_v61  ;;  %v2006_v39 = vsel %vm2004_vm8, %v1957_v47, %v3629_v29 }
 0x179   : > { %3931 = vrot.lane.b32.xlu0 %v7583_v1, %s4063_s30  ;;  %v3639_v9 = vunpack.i.h.bf16 %v6115_v16  ;;  %v3633_v19 = vunpack.i.l.bf16 %v6129_v0  ;;  %v3634_v15 = vunpack.i.h.bf16 %v6129_v0  ;;  %v2054_v26 = vsel %vm2053_vm9, %v2005_v59, %v3648_v7 }
 0x17a   : > { %v3652_v4 = vpop.permute.xlu0 %3651  ;;  %v3659_v49 = vunpack.i.h.bf16 %v3657_v41  ;;  %v3658_v33 = vunpack.i.l.bf16 %v3657_v41  ;;  %v7586_v29 = vpack.i.bf16 %v6025_v20, %v6021_v45  ;;  %v2055_v16 = vsel %vm2053_vm9, %v2006_v39, %v3649_v18 }
 0x17b   : > { %3946 = vrot.lane.b32.xlu1 %v7584_v28, %s4064_s6  ;;  %v3653_v1 = vunpack.i.l.bf16 %v3652_v4  ;;  %v1981_v47 = vsel %vm1955_vm7, %v1932_v43, %v3614_v34  ;;  %v2007_v61 = vsel %vm2004_vm8, %v1958_v35, %v3638_v10  ;;  %v2008_v7 = vsel %vm2004_vm8, %v1959_v52, %v3639_v9 }
 0x17c   : > { %v3667_v62 = vpop.permute.xlu1 %3666  ;;  %v2029_v41 = vsel %vm2004_vm8, %v1980_v46, %v3633_v19  ;;  %v3654_v59 = vunpack.i.h.bf16 %v3652_v4  ;;  %v2030_v18 = vsel %vm2004_vm8, %v1981_v47, %v3634_v15  ;;  %v3644_v43 = vunpack.i.h.bf16 %v6167_v25 }
 0x17d   : > { %3941 = vrot.lane.b32.xlu0 %v7585_v2, %s4064_s6  ;;  %v3669_v11 = vunpack.i.h.bf16 %v3667_v62  ;;  %v3668_v30 = vunpack.i.l.bf16 %v3667_v62  ;;  %v7587_v2 = vld [vmem:[#allocation141_spill] sm:$0xff]  ;;  %v3643_v10 = vunpack.i.l.bf16 %v6167_v25  ;;  %v2056_v39 = vsel %vm2053_vm9, %v2007_v61, %v3658_v33 }
 0x17e   : > { %v3662_v58 = vpop.permute.xlu0 %3661  ;;  %v2057_v52 = vsel %vm2053_vm9, %v2008_v7, %v3659_v49  ;;  %v7588_v4 = vpack.i.bf16 %v6048_v54, %v6025_v20  ;;  %v2078_v46 = vsel %vm2053_vm9, %v2029_v41, %v3653_v1  ;;  %v7589_v49 = vpack.i.bf16 %v6021_v45, %v5994_v24 }
 0x17f   : > { %3956 = vrot.lane.b32.xlu1 %v7586_v29, %s4064_s6  ;;  %v2103_v0 = vsel %vm2102_vm10, %v2054_v26, %v3668_v30  ;;  %v2104_v28 = vsel %vm2102_vm10, %v2055_v16, %v3669_v11  ;;  %v3664_v30 = vunpack.i.h.bf16 %v3662_v58  ;;  %v3663_v26 = vunpack.i.l.bf16 %v3662_v58 }
 0x180   : > { %v3677_v62 = vpop.permute.xlu1 %3676  ;;  %v2151_v29 = vpack.c.bf16 %v2104_v28, %v2103_v0  ;;  %v2079_v54 = vsel %vm2053_vm9, %v2030_v18, %v3654_v59  ;;  %v7590_v1 = vunpack.i.l.bf16 %v7582_v56  ;;  %v7591_v47 = vunpack.i.h.bf16 %v7582_v56 }
 0x181   : > { %3951 = vrot.lane.b32.xlu0 %v7587_v2, %s4064_s6  ;;  %v3679_v34 = vunpack.i.h.bf16 %v3677_v62  ;;  %v3678_v35 = vunpack.i.l.bf16 %v3677_v62  ;;  %v7592_v7 = vpack.i.bf16 %v6039_v40, %v7549_v60  ;;  %v7593_v56 = vunpack.c.l.bf16 %v6068_v23  ;;  %v7594_v62 = vld [vmem:[#allocation28_spill] sm:$0xff] }
 0x182   : > { %v3672_v9 = vpop.permute.xlu0 %3671  ;;  %2980 = vmatprep.mubr.msk.bf16.mxu0 %vm2195_vm11, %v2151_v29  ;;  %v1933_v16 = vsel %vm1906_vm6, %v6102_v44, %v7590_v1  ;;  %v1934_v58 = vsel %vm1906_vm6, %v6106_v48, %v7591_v47  ;;  %v7595_v60 = vpack.i.bf16 %v7566_v21, %v7565_v36  ;;  %v7599_v36 = vrot.slane %v6039_v40, 2 }
 0x183   : > { %3966 = vrot.lane.b32.xlu1 %v7588_v4, %s4061_s24  ;;  %v2105_v19 = vsel %vm2102_vm10, %v2056_v39, %v3678_v35  ;;  %v2106_v15 = vsel %vm2102_vm10, %v2057_v52, %v3679_v34  ;;  %v3674_v11 = vunpack.i.h.bf16 %v3672_v9  ;;  %v3673_v25 = vunpack.i.l.bf16 %v3672_v9 }
 0x184   : > { %v2152_v33 = vpack.c.bf16 %v2106_v15, %v2105_v19  ;;  %v6237_v20 = vpop.permute.xlu1 %3686  ;;  %v1982_v24 = vsel %vm1955_vm7, %v1933_v16, %v3618_v42  ;;  %v1983_v45 = vsel %vm1955_vm7, %v1934_v58, %v3619_v38  ;;  %v1613_v48 = vrot.slane %v7593_v56, 2  ;;  %v7607_v16 = vld [vmem:[#allocation59_spill] sm:$0xff]  ;;  %v7608_v58 = vld [vmem:[#allocation92_spill] sm:$0xff] }
 0x185   : > { %3961 = vrot.lane.b32.xlu0 %v7589_v49, %s4061_s24  ;;  %v2127_v61 = vsel %vm2102_vm10, %v2078_v46, %v3673_v25  ;;  %v2128_v0 = vsel %vm2102_vm10, %v2079_v54, %v3674_v11  ;;  %v2032_v41 = vsel %vm2004_vm8, %v1983_v45, %v3644_v43  ;;  %v2031_v59 = vsel %vm2004_vm8, %v1982_v24, %v3643_v10  ;;  %v7606_v49 = vld [vmem:[#allocation66_spill] sm:$0xff]  ;;  %v7610_v45 = vld [vmem:[#allocation88_spill] sm:$0xff] }
 0x186   : > { %v3682_v28 = vpop.permute.xlu0 %3681  ;;  %2981 = vmatmul.mubr.msk.bf16.vlgmr.msra.gmra.mrb[0].mxu0 %vm2195_vm11, %v2152_v33  ;;  %v2163_v44 = vpack.c.bf16 %v2128_v0, %v2127_v61  ;;  %v3279_v38 = vunpack.i.h.bf16 %v7594_v62  ;;  %v2080_v29 = vsel %vm2053_vm9, %v2031_v59, %v3663_v26  ;;  %v2081_v18 = vsel %vm2053_vm9, %v2032_v41, %v3664_v30 }
 0x187   : > { %3976 = vrot.lane.b32.xlu1 %v7592_v7, %s4062_s25  ;;  %v3684_v2 = vunpack.i.h.bf16 %v3682_v28  ;;  %v3683_v42 = vunpack.i.l.bf16 %v3682_v28  ;;  %v7596_v43 = vrot.slane %v6050_v53, 1  ;;  %v7597_v34 = vrot.slane %v5999_v13, 1 }
 0x188   : > { %3004 = vmatprep.mubr.msk.bf16.mxu1 %vm2195_vm11, %v2163_v44  ;;  %v6269_v23 = vpop.permute.xlu1 %3696  ;;  %v6286_v9 = vsel %vm607_vm1, %v5977_v57, %v7599_v36  ;;  %v7600_v19 = vpack.i.bf16 %v6050_v53, %v5999_v13  ;;  %v7601_v15 = vrot.slane %v5999_v13, 2  ;;  %v7602_v11 = vmov %v7599_v36 }
 0x189   : > { %3971 = vrot.lane.b32.xlu0 %v7595_v60, %s4062_s25  ;;  %v1457_v35 = vsel %vm364_vm0, %v7597_v34, %v7596_v43  ;;  %v2129_v10 = vsel %vm2102_vm10, %v2080_v29, %v3683_v42  ;;  %v2130_v39 = vsel %vm2102_vm10, %v2081_v18, %v3684_v2  ;;  %v7598_v52 = vmov %v7596_v43 }
 0x18a   : > { %v1459_v21 = vsel %vm364_vm0, %v7598_v52, %v6146_v50  ;;  %v2164_v4 = vpack.c.bf16 %v2130_v39, %v2129_v10  ;;  %v6288_v46 = vpop.permute.xlu0 %3691  ;;  %v1610_v50 = vsel %vm607_vm1, %v7602_v11, %v7601_v15  ;;  %v7603_v25 = vrot.slane %v6050_v53, 2 }
 0x18b   : > { %3986 = vrot.lane.b32.xlu1 %v7600_v19, %s4062_s25  ;;  %v7604_v30 = vmov %v7601_v15  ;;  %v3449_v54 = vunpack.i.h.bf16 %v7606_v49  ;;  %v3448_v1 = vunpack.i.l.bf16 %v7606_v49  ;;  %v3444_v40 = vunpack.i.h.bf16 %v7607_v16 }
 0x18c   : > { %v6304_v57 = vsel %vm607_vm1, %v7604_v30, %v7603_v25  ;;  %v7605_v26 = vmov %v7603_v25  ;;  %v3443_v47 = vunpack.i.l.bf16 %v7607_v16  ;;  %v3509_v61 = vunpack.i.h.bf16 %v7608_v58  ;;  %3005 = vmatmul.mubr.msk.bf16.vlgmr.msra.gmra.mrb[0].mxu1 %vm2195_vm11, %v2164_v4  ;;  %v3707_v53 = vpop.permute.xlu1 %3706 }
 0x18d   : > { %v6309_v33 = vsel %vm607_vm1, %v7605_v26, %v1613_v48  ;;  %v3508_v13 = vunpack.i.l.bf16 %v7608_v58  ;;  %v7609_v0 = vpack.i.bf16 %v7567_v31, %v7492_v12  ;;  %v4005_v24 = vpack.i.bf16 %v1459_v21, %v1457_v35 }
 0x18e   : > { %v3504_v28 = vunpack.i.h.bf16 %v7610_v45  ;;  %v3503_v7 = vunpack.i.l.bf16 %v7610_v45  ;;  %v4015_v44 = vpack.i.bf16 %v1610_v50, %v6286_v9  ;;  %v3569_v56 = vunpack.i.h.bf16 %v5846_v27  ;;  %v6327_v41 = vpop.permute.xlu0 %3701  ;;  %v7613_v9 = vld [vmem:[#allocation81_spill] sm:$0xff] }
 0x18f   : > { %3981 = vrot.lane.b32.xlu0 %v7609_v0, %s4062_s25  ;;  %v3568_v48 = vunpack.i.l.bf16 %v5846_v27  ;;  %v7611_v12 = vpack.i.bf16 %v6097_v3, %v6092_v6  ;;  %v4025_v31 = vpack.i.bf16 %v6309_v33, %v6304_v57  ;;  %v1913_v59 = vsel %vm1906_vm6, %v5989_v5, %v3448_v1  ;;  %v7612_v5 = vld [vmem:[#allocation62_spill] sm:$0xff] }
 0x190   : > { %v1914_v2 = vsel %vm1906_vm6, %v6011_v22, %v3449_v54  ;;  %v1911_v42 = vsel %vm1906_vm6, %v6015_v14, %v3443_v47  ;;  %v1912_v27 = vsel %vm1906_vm6, %v6029_v37, %v3444_v40  ;;  %v1937_v29 = vsel %vm1906_vm6, %v6121_v17, %v3508_v13  ;;  %v3717_v22 = vpop.permute.xlu1 %3716  ;;  %v7614_v47 = vld [vmem:[#allocation138_spill] sm:$0xff] }
 0x191   : > { %3996 = vrot.lane.b32.xlu1 %v7611_v12, %s4063_s30  ;;  %v1938_v6 = vsel %vm1906_vm6, %v6125_v51, %v3509_v61  ;;  %v3564_v3 = vunpack.i.h.bf16 %v5858_v32  ;;  %v3563_v18 = vunpack.i.l.bf16 %v5858_v32  ;;  %v1935_v14 = vsel %vm1906_vm6, %v6140_v55, %v3503_v7 }
 0x192   : > { %v1936_v37 = vsel %vm1906_vm6, %v6150_v63, %v3504_v28  ;;  %v3624_v60 = vunpack.i.h.bf16 %v6075_v8  ;;  %v3623_v17 = vunpack.i.l.bf16 %v6075_v8  ;;  %v1962_v51 = vsel %vm1955_vm7, %v1913_v59, %v3568_v48  ;;  %v3712_v35 = vpop.permute.xlu0 %3711 }
 0x193   : > { %3991 = vrot.lane.b32.xlu0 %v7612_v5, %s4063_s30  ;;  %v1963_v43 = vsel %vm1955_vm7, %v1914_v2, %v3569_v56  ;;  %v3689_v32 = vunpack.i.h.bf16 %v6237_v20  ;;  %v3688_v34 = vunpack.i.l.bf16 %v6237_v20  ;;  %v3699_v55 = vunpack.i.h.bf16 %v6269_v23 }
 0x194   : > { %v3698_v10 = vunpack.i.l.bf16 %v6269_v23  ;;  %v3694_v63 = vunpack.i.h.bf16 %v6288_v46  ;;  %v3693_v39 = vunpack.i.l.bf16 %v6288_v46  ;;  %v1960_v8 = vsel %vm1955_vm7, %v1911_v42, %v3563_v18  ;;  %v3727_v20 = vpop.permute.xlu1 %3726 }
 0x195   : > { %4006 = vrot.lane.b32.xlu1 %v4005_v24, %s4063_s30  ;;  %v1961_v52 = vsel %vm1955_vm7, %v1912_v27, %v3564_v3  ;;  %v3709_v21 = vunpack.i.h.bf16 %v3707_v53  ;;  %v3708_v36 = vunpack.i.l.bf16 %v3707_v53  ;;  %v1984_v4 = vsel %vm1955_vm7, %v1935_v14, %v3623_v17 }
 0x196   : > { %v1985_v19 = vsel %vm1955_vm7, %v1936_v37, %v3624_v60  ;;  %v3704_v23 = vunpack.i.h.bf16 %v6327_v41  ;;  %v3718_v15 = vunpack.i.l.bf16 %v3717_v22  ;;  %v1986_v11 = vsel %vm1955_vm7, %v1937_v29, %v3688_v34  ;;  %v3722_v30 = vpop.permute.xlu0 %3721  ;;  %v7615_v29 = vld [vmem:[#allocation149_spill] sm:$0xff] }
 0x197   : > { %4001 = vrot.lane.b32.xlu0 %v7613_v9, %s4063_s30  ;;  %v1987_v46 = vsel %vm1955_vm7, %v1938_v6, %v3689_v32  ;;  %v3719_v50 = vunpack.i.h.bf16 %v3717_v22  ;;  %v3713_v25 = vunpack.i.l.bf16 %v3712_v35  ;;  %v2033_v57 = vsel %vm2004_vm8, %v1984_v4, %v3698_v10 }
 0x198   : > { %v2034_v26 = vsel %vm2004_vm8, %v1985_v19, %v3699_v55  ;;  %v2009_v33 = vsel %vm2004_vm8, %v1960_v8, %v3693_v39  ;;  %v2010_v49 = vsel %vm2004_vm8, %v1961_v52, %v3694_v63  ;;  %v2035_v54 = vsel %vm2004_vm8, %v1986_v11, %v3708_v36  ;;  %v3737_v58 = vpop.permute.xlu1 %3736  ;;  %v7616_v8 = vld [vmem:[#allocation23_spill] sm:$0xff]  ;;  %v7619_v19 = vld [vmem:[#allocation57_spill] sm:$0xff] }
 0x199   : > { %4016 = vrot.lane.b32.xlu1 %v4015_v44, %s4064_s6  ;;  %v2036_v1 = vsel %vm2004_vm8, %v1987_v46, %v3709_v21  ;;  %v3703_v16 = vunpack.i.l.bf16 %v6327_v41  ;;  %v3714_v40 = vunpack.i.h.bf16 %v3712_v35  ;;  %v2012_v61 = vsel %vm2004_vm8, %v1963_v43, %v3704_v23 }
 0x19a   : > { %v2082_v13 = vsel %vm2053_vm9, %v2033_v57, %v3718_v15  ;;  %v3739_v0 = vunpack.i.h.bf16 %v3737_v58  ;;  %v3738_v53 = vunpack.i.l.bf16 %v3737_v58  ;;  %v2083_v24 = vsel %vm2053_vm9, %v2034_v26, %v3719_v50  ;;  %v3732_v44 = vpop.permute.xlu0 %3731  ;;  %v7620_v15 = vld [vmem:[#allocation43_spill] sm:$0xff]  ;;  %v7623_v26 = vld [vmem:[#allocation101_spill] sm:$0xff] }
 0x19b   : > { %4011 = vrot.lane.b32.xlu0 %v7614_v47, %s4064_s6  ;;  %v2058_v45 = vsel %vm2053_vm9, %v2009_v33, %v3713_v25  ;;  %v3729_v28 = vunpack.i.h.bf16 %v3727_v20  ;;  %v3728_v7 = vunpack.i.l.bf16 %v3727_v20  ;;  %v3734_v41 = vunpack.i.h.bf16 %v3732_v44  ;;  %v7617_v20 = vld [vmem:[#allocation75_spill] sm:$0xff]  ;;  %v7628_v47 = vld [vmem:[#allocation100_spill] sm:$0xff] }
 0x19c   : > { %v2131_v56 = vsel %vm2102_vm10, %v2082_v13, %v3738_v53  ;;  %v2132_v48 = vsel %vm2102_vm10, %v2083_v24, %v3739_v0  ;;  %v3733_v12 = vunpack.i.l.bf16 %v3732_v44  ;;  %v2059_v59 = vsel %vm2053_vm9, %v2010_v49, %v3714_v40  ;;  %v3747_v6 = vpop.permute.xlu1 %3746  ;;  %v7630_v13 = vld [vmem:[#allocation89_spill] sm:$0xff]  ;;  %v7631_v53 = vld [vmem:[#allocation118_spill] sm:$0xff] }
 0x19d   : > { %4026 = vrot.lane.b32.xlu1 %v4025_v31, %s4064_s6  ;;  %v3724_v2 = vunpack.i.h.bf16 %v3722_v30  ;;  %v3723_v42 = vunpack.i.l.bf16 %v3722_v30  ;;  %v2165_v27 = vpack.c.bf16 %v2132_v48, %v2131_v56  ;;  %v2108_v18 = vsel %vm2102_vm10, %v2059_v59, %v3734_v41  ;;  %v7621_v30 = vld [vmem:[#allocation22_spill] sm:$0xff] }
 0x19e   : > { %v2107_v3 = vsel %vm2102_vm10, %v2058_v45, %v3733_v12  ;;  %v3749_v31 = vunpack.i.h.bf16 %v3747_v6  ;;  %v3748_v5 = vunpack.i.l.bf16 %v3747_v6  ;;  %v2011_v22 = vsel %vm2004_vm8, %v1962_v51, %v3703_v16  ;;  %v3742_v17 = vpop.permute.xlu0 %3741  ;;  %v7626_v16 = vld [vmem:[#allocation11_spill] sm:$0xff]  ;;  %v7632_v45 = vld [vmem:[#allocation125_spill] sm:$0xff]  ;;  %v7634_v12 = vld [vmem:[#allocation124_spill] sm:$0xff] }
 0x19f   : > { %4021 = vrot.lane.b32.xlu0 %v7615_v29, %s4064_s6  ;;  %v2084_v14 = vsel %vm2053_vm9, %v2035_v54, %v3728_v7  ;;  %v2085_v37 = vsel %vm2053_vm9, %v2036_v1, %v3729_v28  ;;  %v2153_v60 = vpack.c.bf16 %v2108_v18, %v2107_v3  ;;  %3008 = vmatprep.mubr.msk.bf16.mxu1 %vm2195_vm11, %v2165_v27  ;;  %v3744_v34 = vunpack.i.h.bf16 %v3742_v17  ;;  %v7625_v54 = vld [vmem:[#allocation97_spill] sm:$0xff]  ;;  %v7633_v7 = vld [vmem:[#allocation52_spill] sm:$0xff]  ;;  %v7636_v29 = vld [vmem:[#allocation50_spill] sm:$0xff] }
 0x1a0   : > { %v2133_v43 = vsel %vm2102_vm10, %v2084_v14, %v3748_v5  ;;  %v2134_v32 = vsel %vm2102_vm10, %v2085_v37, %v3749_v31  ;;  %v3743_v35 = vunpack.i.l.bf16 %v3742_v17  ;;  %v3278_v55 = vunpack.i.l.bf16 %v7594_v62  ;;  %v6407_v39 = vpop.permute.xlu1 %3756  ;;  %v7635_v62 = vld [vmem:[#allocation54_spill] sm:$0xff]  ;;  %v7637_v31 = vld [vmem:[#allocation72_spill] sm:$0xff]  ;;  %v7638_v14 = vld [vmem:[#allocation83_spill] sm:$0xff] }
 0x1a1   : > { %v2060_v10 = vsel %vm2053_vm9, %v2011_v22, %v3723_v42  ;;  %v2061_v51 = vsel %vm2053_vm9, %v2012_v61, %v3724_v2  ;;  %v2166_v63 = vpack.c.bf16 %v2134_v32, %v2133_v43  ;;  %2984 = vmatprep.mubr.msk.bf16.mxu0 %vm2195_vm11, %v2153_v60  ;;  %v3274_v52 = vunpack.i.h.bf16 %v7616_v8  ;;  %v7639_v32 = vld [vmem:[#allocation78_spill] sm:$0xff] }
 0x1a2   : > { %v3273_v21 = vunpack.i.l.bf16 %v7616_v8  ;;  %v2109_v36 = vsel %vm2102_vm10, %v2060_v10, %v3743_v35  ;;  %v2110_v9 = vsel %vm2102_vm10, %v2061_v51, %v3744_v34  ;;  %v7618_v4 = vunpack.i.l.bf16 %v7617_v20  ;;  %v6419_v25 = vpop.permute.xlu0 %3751 }
 0x1a3   : > { %v3339_v11 = vunpack.i.h.bf16 %v7620_v15  ;;  %v3338_v46 = vunpack.i.l.bf16 %v7620_v15  ;;  %v2154_v50 = vpack.c.bf16 %v2110_v9, %v2109_v36  ;;  %3009 = vmatmul.mubr.msk.bf16.gmra.mrb[4].mxu1 %vm2195_vm11, %v2166_v63  ;;  %v7622_v57 = vunpack.i.h.bf16 %v7621_v30  ;;  %v7640_v63 = vld [vmem:[#allocation91_spill] sm:$0xff] }
 0x1a4   : > { %v1792_v23 = vsel %vm1759_vm2, %v7619_v19, %v7618_v4  ;;  %v7624_v49 = vunpack.i.l.bf16 %v7621_v30  ;;  %v7627_v40 = vunpack.i.l.bf16 %v7626_v16  ;;  %v7629_v61 = vunpack.i.h.bf16 %v7626_v16  ;;  %v6447_v48 = vpop.permute.xlu1 %3766  ;;  %v7641_v9 = vld [vmem:[#allocation131_spill] sm:$0xff] }
 0x1a5   : > { %v1820_v33 = vsel %vm1808_vm3, %v7623_v26, %v7622_v57  ;;  %v1844_v24 = vsel %vm1808_vm3, %v7631_v53, %v3279_v38  ;;  %v1843_v28 = vsel %vm1808_vm3, %v7632_v45, %v3278_v55  ;;  %v3334_v44 = vunpack.i.h.bf16 %v7633_v7  ;;  %2985 = vmatmul.mubr.msk.bf16.gmra.mrb[4].mxu0 %vm2195_vm11, %v2154_v50  ;;  %v7642_v57 = vld [vmem:[#allocation127_spill] sm:$0xff] }
 0x1a6   : > { %v1819_v1 = vsel %vm1808_vm3, %v7625_v54, %v7624_v49  ;;  %v1817_v58 = vsel %vm1808_vm3, %v7628_v47, %v7627_v40  ;;  %v1818_v0 = vsel %vm1808_vm3, %v7630_v13, %v7629_v61  ;;  %v3333_v56 = vunpack.i.l.bf16 %v7633_v7  ;;  %v3762_v18 = vpop.permute.xlu0 %3761 }
 0x1a7   : > { %v1841_v41 = vsel %vm1808_vm3, %v1792_v23, %v3273_v21  ;;  %v1842_v59 = vsel %vm1808_vm3, %v7634_v12, %v3274_v52  ;;  %v3399_v2 = vunpack.i.h.bf16 %v7635_v62  ;;  %v3398_v38 = vunpack.i.l.bf16 %v7635_v62 }
 0x1a8   : > { %v1868_v42 = vsel %vm1857_vm4, %v1819_v1, %v3338_v46  ;;  %v1869_v27 = vsel %vm1857_vm4, %v1820_v33, %v3339_v11  ;;  %v3394_v6 = vunpack.i.h.bf16 %v7636_v29  ;;  %v3393_v3 = vunpack.i.l.bf16 %v7636_v29  ;;  %v3777_v55 = vpop.permute.xlu1 %3776 }
 0x1a9   : > { %v3459_v5 = vunpack.i.h.bf16 %v7637_v31  ;;  %v3458_v22 = vunpack.i.l.bf16 %v7637_v31  ;;  %v3454_v37 = vunpack.i.h.bf16 %v7638_v14  ;;  %v3453_v60 = vunpack.i.l.bf16 %v7638_v14 }
 0x1aa   : > { %v1866_v17 = vsel %vm1857_vm4, %v1817_v58, %v3333_v56  ;;  %v1867_v43 = vsel %vm1857_vm4, %v1818_v0, %v3334_v44  ;;  %v3519_v34 = vunpack.i.h.bf16 %v7639_v32  ;;  %v3518_v35 = vunpack.i.l.bf16 %v7639_v32  ;;  %v6474_v19 = vpop.permute.xlu0 %3771 }
 0x1ab   : > { %v1892_v10 = vsel %vm1857_vm4, %v1843_v28, %v3398_v38  ;;  %v1893_v51 = vsel %vm1857_vm4, %v1844_v24, %v3399_v2  ;;  %v3514_v8 = vunpack.i.h.bf16 %v7640_v63  ;;  %v3513_v52 = vunpack.i.l.bf16 %v7640_v63 }
 0x1ac   : > { %v1890_v21 = vsel %vm1857_vm4, %v1841_v41, %v3393_v3  ;;  %v1891_v36 = vsel %vm1857_vm4, %v1842_v59, %v3394_v6  ;;  %v3579_v20 = vunpack.i.h.bf16 %v7641_v9  ;;  %v3578_v4 = vunpack.i.l.bf16 %v7641_v9  ;;  %v3787_v49 = vpop.permute.xlu1 %3786 }
 0x1ad   : > { %v1917_v23 = vsel %vm1906_vm6, %v1868_v42, %v3458_v22  ;;  %v1918_v15 = vsel %vm1906_vm6, %v1869_v27, %v3459_v5  ;;  %v1915_v11 = vsel %vm1906_vm6, %v1866_v17, %v3453_v60  ;;  %v1916_v46 = vsel %vm1906_vm6, %v1867_v43, %v3454_v37 }
 0x1ae   : > { %v1941_v50 = vsel %vm1906_vm6, %v1892_v10, %v3518_v35  ;;  %v1942_v30 = vsel %vm1906_vm6, %v1893_v51, %v3519_v34  ;;  %v3574_v26 = vunpack.i.h.bf16 %v7642_v57  ;;  %v3573_v33 = vunpack.i.l.bf16 %v7642_v57  ;;  %v3782_v0 = vpop.permute.xlu0 %3781 }
 0x1af   : > { %v1939_v54 = vsel %vm1906_vm6, %v1890_v21, %v3513_v52  ;;  %v1940_v1 = vsel %vm1906_vm6, %v1891_v36, %v3514_v8  ;;  %v3759_v16 = vunpack.i.h.bf16 %v6407_v39  ;;  %v3758_v40 = vunpack.i.l.bf16 %v6407_v39 }
 0x1b0   : > { %v1966_v47 = vsel %vm1955_vm7, %v1917_v23, %v3578_v4  ;;  %v1967_v58 = vsel %vm1955_vm7, %v1918_v15, %v3579_v20  ;;  %v3754_v61 = vunpack.i.h.bf16 %v6419_v25  ;;  %v3753_v13 = vunpack.i.l.bf16 %v6419_v25  ;;  %v3797_v41 = vpop.permute.xlu1 %3796 }
 0x1b1   : > { %v3769_v53 = vunpack.i.h.bf16 %v6447_v48  ;;  %v3768_v24 = vunpack.i.l.bf16 %v6447_v48  ;;  %v3764_v45 = vunpack.i.h.bf16 %v3762_v18  ;;  %v3763_v28 = vunpack.i.l.bf16 %v3762_v18 }
 0x1b2   : > { %v1964_v7 = vsel %vm1955_vm7, %v1915_v11, %v3573_v33  ;;  %v1965_v44 = vsel %vm1955_vm7, %v1916_v46, %v3574_v26  ;;  %v3779_v39 = vunpack.i.h.bf16 %v3777_v55  ;;  %v3778_v56 = vunpack.i.l.bf16 %v3777_v55  ;;  %v3792_v27 = vpop.permute.xlu0 %3791 }
 0x1b3   : > { %v1990_v12 = vsel %vm1955_vm7, %v1941_v50, %v3758_v40  ;;  %v1991_v59 = vsel %vm1955_vm7, %v1942_v30, %v3759_v16  ;;  %v3774_v25 = vunpack.i.h.bf16 %v6474_v19  ;;  %v3788_v62 = vunpack.i.l.bf16 %v3787_v49 }
 0x1b4   : > { %v1988_v2 = vsel %vm1955_vm7, %v1939_v54, %v3753_v13  ;;  %v1989_v48 = vsel %vm1955_vm7, %v1940_v1, %v3754_v61  ;;  %v3789_v38 = vunpack.i.h.bf16 %v3787_v49  ;;  %v3783_v42 = vunpack.i.l.bf16 %v3782_v0  ;;  %v3807_v37 = vpop.permute.xlu1 %3806 }
 0x1b5   : > { %v2037_v29 = vsel %vm2004_vm8, %v1988_v2, %v3768_v24  ;;  %v2038_v6 = vsel %vm2004_vm8, %v1989_v48, %v3769_v53  ;;  %v2013_v3 = vsel %vm2004_vm8, %v1964_v7, %v3763_v28  ;;  %v2014_v18 = vsel %vm2004_vm8, %v1965_v44, %v3764_v45 }
 0x1b6   : > { %v2039_v31 = vsel %vm2004_vm8, %v1990_v12, %v3778_v56  ;;  %v2040_v5 = vsel %vm2004_vm8, %v1991_v59, %v3779_v39  ;;  %v3773_v22 = vunpack.i.l.bf16 %v6474_v19  ;;  %v3784_v14 = vunpack.i.h.bf16 %v3782_v0  ;;  %v3802_v51 = vpop.permute.xlu0 %3801 }
 0x1b7   : > { %v2016_v60 = vsel %vm2004_vm8, %v1967_v58, %v3774_v25  ;;  %v2086_v17 = vsel %vm2053_vm9, %v2037_v29, %v3788_v62  ;;  %v3809_v43 = vunpack.i.h.bf16 %v3807_v37  ;;  %v3808_v32 = vunpack.i.l.bf16 %v3807_v37 }
 0x1b8   : > { %v2087_v34 = vsel %vm2053_vm9, %v2038_v6, %v3789_v38  ;;  %v2062_v35 = vsel %vm2053_vm9, %v2013_v3, %v3783_v42  ;;  %v3799_v55 = vunpack.i.h.bf16 %v3797_v41  ;;  %v3798_v10 = vunpack.i.l.bf16 %v3797_v41  ;;  %v3817_v19 = vpop.permute.xlu1 %3816  ;;  %v7643_v6 = vld [vmem:[#allocation106_spill] sm:$0xff] }
 0x1b9   : > { %v2135_v63 = vsel %vm2102_vm10, %v2086_v17, %v3808_v32  ;;  %v2136_v8 = vsel %vm2102_vm10, %v2087_v34, %v3809_v43  ;;  %v3804_v52 = vunpack.i.h.bf16 %v3802_v51  ;;  %v3803_v21 = vunpack.i.l.bf16 %v3802_v51 }
 0x1ba   : > { %v2063_v36 = vsel %vm2053_vm9, %v2014_v18, %v3784_v14  ;;  %v3794_v9 = vunpack.i.h.bf16 %v3792_v27  ;;  %v3793_v20 = vunpack.i.l.bf16 %v3792_v27  ;;  %v2167_v4 = vpack.c.bf16 %v2136_v8, %v2135_v63  ;;  %v3812_v33 = vpop.permute.xlu0 %3811  ;;  %v7644_v18 = vld [vmem:[#allocation98_spill] sm:$0xff]  ;;  %v7645_v14 = vld [vmem:[#allocation105_spill] sm:$0xff] }
 0x1bb   : > { %v2111_v23 = vsel %vm2102_vm10, %v2062_v35, %v3803_v21  ;;  %v2112_v15 = vsel %vm2102_vm10, %v2063_v36, %v3804_v52  ;;  %v3819_v11 = vunpack.i.h.bf16 %v3817_v19  ;;  %v3818_v46 = vunpack.i.l.bf16 %v3817_v19  ;;  %v7648_v63 = vld [vmem:[#allocation133_spill] sm:$0xff] }
 0x1bc   : > { %v2015_v50 = vsel %vm2004_vm8, %v1966_v47, %v3773_v22  ;;  %v2088_v30 = vsel %vm2053_vm9, %v2039_v31, %v3798_v10  ;;  %v2089_v57 = vsel %vm2053_vm9, %v2040_v5, %v3799_v55  ;;  %v2155_v26 = vpack.c.bf16 %v2112_v15, %v2111_v23  ;;  %3012 = vmatprep.mubr.msk.bf16.mxu1 %vm2195_vm11, %v2167_v4  ;;  %v3827_v47 = vpop.permute.xlu1 %3826  ;;  %v7647_v10 = vld [vmem:[#allocation137_spill] sm:$0xff]  ;;  %v7649_v4 = vld [vmem:[#allocation130_spill] sm:$0xff] }
 0x1bd   : > { %v2137_v49 = vsel %vm2102_vm10, %v2088_v30, %v3818_v46  ;;  %v2138_v54 = vsel %vm2102_vm10, %v2089_v57, %v3819_v11  ;;  %v3814_v1 = vunpack.i.h.bf16 %v3812_v33  ;;  %v3813_v16 = vunpack.i.l.bf16 %v3812_v33 }
 0x1be   : > { %v2064_v40 = vsel %vm2053_vm9, %v2015_v50, %v3793_v20  ;;  %v2065_v58 = vsel %vm2053_vm9, %v2016_v60, %v3794_v9  ;;  %v2168_v61 = vpack.c.bf16 %v2138_v54, %v2137_v49  ;;  %2988 = vmatprep.mubr.msk.bf16.mxu0 %vm2195_vm11, %v2155_v26  ;;  %v3822_v24 = vpop.permute.xlu0 %3821  ;;  %v3829_v56 = vunpack.i.h.bf16 %v3827_v47  ;;  %v7646_v60 = vld [vmem:[#allocation113_spill] sm:$0xff] }
 0x1bf   : > { %v2113_v13 = vsel %vm2102_vm10, %v2064_v40, %v3813_v16  ;;  %v2114_v0 = vsel %vm2102_vm10, %v2065_v58, %v3814_v1  ;;  %v3828_v41 = vunpack.i.l.bf16 %v3827_v47  ;;  %v3824_v12 = vunpack.i.h.bf16 %v3822_v24 }
 0x1c0   : > { %v2156_v53 = vpack.c.bf16 %v2114_v0, %v2113_v13  ;;  %3013 = vmatmul.mubr.msk.bf16.gmra.mrb[8].mxu1 %vm2195_vm11, %v2168_v61  ;;  %v3837_v45 = vpop.permute.xlu1 %3836  ;;  %v3823_v59 = vunpack.i.l.bf16 %v3822_v24  ;;  %v1995_v31 = vsel %vm1955_vm7, %v7644_v18, %v3829_v56 }
 0x1c1   : > { %v3839_v62 = vunpack.i.h.bf16 %v3837_v45  ;;  %v3838_v2 = vunpack.i.l.bf16 %v3837_v45  ;;  %v1994_v3 = vsel %vm1955_vm7, %v7643_v6, %v3828_v41  ;;  %v1993_v17 = vsel %vm1955_vm7, %v7646_v60, %v3824_v12  ;;  %v7650_v45 = vld [vmem:[#allocation122_spill] sm:$0xff] }
 0x1c2   : > { %2989 = vmatmul.mubr.msk.bf16.gmra.mrb[8].mxu0 %vm2195_vm11, %v2156_v53  ;;  %v3832_v28 = vpop.permute.xlu0 %3831  ;;  %v1992_v37 = vsel %vm1955_vm7, %v7645_v14, %v3823_v59 }
 0x1c3   : > { %v3834_v48 = vunpack.i.h.bf16 %v3832_v28  ;;  %v3833_v38 = vunpack.i.l.bf16 %v3832_v28  ;;  %v2041_v35 = vsel %vm2004_vm8, %v1992_v37, %v3838_v2  ;;  %v2042_v55 = vsel %vm2004_vm8, %v1993_v17, %v3839_v62 }
 0x1c4   : > { %v3847_v7 = vpop.permute.xlu1 %3846 }
 0x1c5   : > { %v3849_v42 = vunpack.i.h.bf16 %v3847_v7  ;;  %v3848_v27 = vunpack.i.l.bf16 %v3847_v7  ;;  %v2017_v51 = vsel %vm2004_vm8, %v7647_v10, %v3833_v38  ;;  %v2018_v8 = vsel %vm2004_vm8, %v7648_v63, %v3834_v48 }
 0x1c6   : > { %v3842_v44 = vpop.permute.xlu0 %3841 }
 0x1c7   : > { %v3844_v5 = vunpack.i.h.bf16 %v3842_v44  ;;  %v2043_v52 = vsel %vm2004_vm8, %v1994_v3, %v3848_v27  ;;  %v2044_v21 = vsel %vm2004_vm8, %v1995_v31, %v3849_v42  ;;  %v3843_v36 = vunpack.i.l.bf16 %v3842_v44 }
 0x1c8   : > { %v3857_v39 = vpop.permute.xlu1 %3856 }
 0x1c9   : > { %v3858_v22 = vunpack.i.l.bf16 %v3857_v39  ;;  %v3859_v43 = vunpack.i.h.bf16 %v3857_v39  ;;  %v2020_v19 = vsel %vm2004_vm8, %v7649_v4, %v3844_v5  ;;  %v2019_v28 = vsel %vm2004_vm8, %v7650_v45, %v3843_v36  ;;  %v7653_v4 = vld [vmem:[#allocation112_spill] sm:$0xff] }
 0x1ca   : > { %v3852_v25 = vpop.permute.xlu0 %3851 }
 0x1cb   : > { %v3853_v32 = vunpack.i.l.bf16 %v3852_v25  ;;  %v3854_v9 = vunpack.i.h.bf16 %v3852_v25  ;;  %v2090_v23 = vsel %vm2053_vm9, %v2041_v35, %v3858_v22  ;;  %v2091_v46 = vsel %vm2053_vm9, %v2042_v55, %v3859_v43 }
 0x1cc   : > { %v3867_v29 = vpop.permute.xlu1 %3866 }
 0x1cd   : > { %v2066_v50 = vsel %vm2053_vm9, %v2017_v51, %v3853_v32  ;;  %v3869_v30 = vunpack.i.h.bf16 %v3867_v29  ;;  %v3868_v57 = vunpack.i.l.bf16 %v3867_v29  ;;  %v2067_v16 = vsel %vm2053_vm9, %v2018_v8, %v3854_v9  ;;  %v7651_v8 = vld [vmem:[#allocation110_spill] sm:$0xff] }
 0x1ce   : > { %v3862_v34 = vpop.permute.xlu0 %3861 }
 0x1cf   : > { %v3864_v40 = vunpack.i.h.bf16 %v3862_v34  ;;  %v3863_v58 = vunpack.i.l.bf16 %v3862_v34  ;;  %v2092_v7 = vsel %vm2053_vm9, %v2043_v52, %v3868_v57  ;;  %v2093_v44 = vsel %vm2053_vm9, %v2044_v21, %v3869_v30  ;;  %v7652_v21 = vld [vmem:[#allocation109_spill] sm:$0xff] }
 0x1d0   : > { %v3877_v20 = vpop.permute.xlu1 %3876 }
 0x1d1   : > { %v3879_v15 = vunpack.i.h.bf16 %v3877_v20  ;;  %v3878_v11 = vunpack.i.l.bf16 %v3877_v20  ;;  %v2068_v62 = vsel %vm2053_vm9, %v2019_v28, %v3863_v58  ;;  %v2069_v2 = vsel %vm2053_vm9, %v2020_v19, %v3864_v40 }
 0x1d2   : > { %v3872_v26 = vpop.permute.xlu0 %3871 }
 0x1d3   : > { %v2139_v33 = vsel %vm2102_vm10, %v2090_v23, %v3878_v11  ;;  %v2140_v49 = vsel %vm2102_vm10, %v2091_v46, %v3879_v15  ;;  %v3874_v54 = vunpack.i.h.bf16 %v3872_v26  ;;  %v3873_v1 = vunpack.i.l.bf16 %v3872_v26  ;;  %v7654_v23 = vld [vmem:[#allocation119_spill] sm:$0xff]  ;;  %v7655_v26 = vld [vmem:[#allocation128_spill] sm:$0xff] }
 0x1d4   : > { %v2169_v61 = vpack.c.bf16 %v2140_v49, %v2139_v33  ;;  %v3887_v47 = vpop.permute.xlu1 %3886  ;;  %v7656_v49 = vld [vmem:[#allocation136_spill] sm:$0xff] }
 0x1d5   : > { %v2115_v13 = vsel %vm2102_vm10, %v2066_v50, %v3873_v1  ;;  %v2116_v0 = vsel %vm2102_vm10, %v2067_v16, %v3874_v54  ;;  %v3889_v53 = vunpack.i.h.bf16 %v3887_v47  ;;  %v3888_v24 = vunpack.i.l.bf16 %v3887_v47  ;;  %v7657_v47 = vld [vmem:[#allocation86_spill] sm:$0xff] }
 0x1d6   : > { %v2157_v39 = vpack.c.bf16 %v2116_v0, %v2115_v13  ;;  %v3882_v56 = vpop.permute.xlu0 %3881  ;;  %3016 = vmatprep.mubr.msk.bf16.mxu1 %vm2195_vm11, %v2169_v61 }
 0x1d7   : > { %v2141_v41 = vsel %vm2102_vm10, %v2092_v7, %v3888_v24  ;;  %v2142_v12 = vsel %vm2102_vm10, %v2093_v44, %v3889_v53  ;;  %v3884_v59 = vunpack.i.h.bf16 %v3882_v56  ;;  %v3883_v25 = vunpack.i.l.bf16 %v3882_v56 }
 0x1d8   : > { %v2170_v48 = vpack.c.bf16 %v2142_v12, %v2141_v41  ;;  %2992 = vmatprep.mubr.msk.bf16.mxu0 %vm2195_vm11, %v2157_v39  ;;  %v3897_v38 = vpop.permute.xlu1 %3896 }
 0x1d9   : > { %v2117_v42 = vsel %vm2102_vm10, %v2068_v62, %v3883_v25  ;;  %v2118_v27 = vsel %vm2102_vm10, %v2069_v2, %v3884_v59  ;;  %v3899_v14 = vunpack.i.h.bf16 %v3897_v38  ;;  %v3898_v37 = vunpack.i.l.bf16 %v3897_v38 }
 0x1da   : > { %v2158_v29 = vpack.c.bf16 %v2118_v27, %v2117_v42  ;;  %v3892_v6 = vpop.permute.xlu0 %3891  ;;  %3017 = vmatmul.mubr.msk.bf16.gmra.mrb[12].mxu1 %vm2195_vm11, %v2170_v48 }
 0x1db   : > { %v3894_v60 = vunpack.i.h.bf16 %v3892_v6  ;;  %v3893_v17 = vunpack.i.l.bf16 %v3892_v6  ;;  %v1998_v52 = vsel %vm1955_vm7, %v7651_v8, %v3898_v37  ;;  %v1999_v36 = vsel %vm1955_vm7, %v7652_v21, %v3899_v14 }
 0x1dc   : > { %2993 = vmatmul.mubr.msk.bf16.gmra.mrb[12].mxu0 %vm2195_vm11, %v2158_v29  ;;  %v3907_v3 = vpop.permute.xlu1 %3906 }
 0x1dd   : > { %v3909_v32 = vunpack.i.h.bf16 %v3907_v3  ;;  %v3908_v34 = vunpack.i.l.bf16 %v3907_v3  ;;  %v1996_v19 = vsel %vm1955_vm7, %v7653_v4, %v3893_v17  ;;  %v1997_v15 = vsel %vm1955_vm7, %v7654_v23, %v3894_v60  ;;  %v7658_v3 = vld [vmem:[#allocation96_spill] sm:$0xff] }
 0x1df   : > { %v3902_v18 = vpop.permute.xlu0 %3901  ;;  %v2045_v30 = vsel %vm2004_vm8, %v1996_v19, %v3908_v34  ;;  %v2046_v57 = vsel %vm2004_vm8, %v1997_v15, %v3909_v32 }
 0x1e0   : > { %v3917_v31 = vpop.permute.xlu1 %3916  ;;  %v3904_v35 = vunpack.i.h.bf16 %v3902_v18  ;;  %v3903_v55 = vunpack.i.l.bf16 %v3902_v18 }
 0x1e1   : > { %v3919_v10 = vunpack.i.h.bf16 %v3917_v31  ;;  %v3918_v51 = vunpack.i.l.bf16 %v3917_v31 }
 0x1e2   : > { %v2021_v33 = vsel %vm2004_vm8, %v7655_v26, %v3903_v55  ;;  %v2022_v54 = vsel %vm2004_vm8, %v7656_v49, %v3904_v35 }
 0x1e3   : > { %v3912_v5 = vpop.permute.xlu0 %3911  ;;  %v2047_v1 = vsel %vm2004_vm8, %v1998_v52, %v3918_v51  ;;  %v2048_v16 = vsel %vm2004_vm8, %v1999_v36, %v3919_v10 }
 0x1e4   : > { %v3914_v9 = vunpack.i.h.bf16 %v3912_v5  ;;  %v3913_v40 = vunpack.i.l.bf16 %v3912_v5 }
 0x1e5   : > { %v3927_v22 = vpop.permute.xlu1 %3926 }
 0x1e6   : > { %v3928_v20 = vunpack.i.l.bf16 %v3927_v22  ;;  %v3929_v11 = vunpack.i.h.bf16 %v3927_v22  ;;  %v2024_v13 = vsel %vm2004_vm8, %v7657_v47, %v3914_v9  ;;  %v2023_v18 = vsel %vm2004_vm8, %v7658_v3, %v3913_v40  ;;  %v7661_v47 = vld [vmem:[#allocation121_spill] sm:$0xff] }
 0x1e7   : > { %v3922_v43 = vpop.permute.xlu0 %3921 }
 0x1e8   : > { %v3923_v46 = vunpack.i.l.bf16 %v3922_v43  ;;  %v3924_v58 = vunpack.i.h.bf16 %v3922_v43  ;;  %v2094_v0 = vsel %vm2053_vm9, %v2045_v30, %v3928_v20  ;;  %v2095_v45 = vsel %vm2053_vm9, %v2046_v57, %v3929_v11 }
 0x1e9   : > { %v3937_v63 = vpop.permute.xlu1 %3936 }
 0x1ea   : > { %v2070_v28 = vsel %vm2053_vm9, %v2021_v33, %v3923_v46  ;;  %v3939_v7 = vunpack.i.h.bf16 %v3937_v63  ;;  %v3938_v44 = vunpack.i.l.bf16 %v3937_v63  ;;  %v2071_v25 = vsel %vm2053_vm9, %v2022_v54, %v3924_v58  ;;  %v7659_v54 = vld [vmem:[#allocation115_spill] sm:$0xff] }
 0x1eb   : > { %v3932_v50 = vpop.permute.xlu0 %3931 }
 0x1ec   : > { %v3934_v62 = vunpack.i.h.bf16 %v3932_v50  ;;  %v3933_v2 = vunpack.i.l.bf16 %v3932_v50  ;;  %v2096_v31 = vsel %vm2053_vm9, %v2047_v1, %v3938_v44  ;;  %v2097_v5 = vsel %vm2053_vm9, %v2048_v16, %v3939_v7  ;;  %v7660_v16 = vld [vmem:[#allocation111_spill] sm:$0xff] }
 0x1ed   : > { %v3947_v61 = vpop.permute.xlu1 %3946 }
 0x1ee   : > { %v3949_v53 = vunpack.i.h.bf16 %v3947_v61  ;;  %v3948_v24 = vunpack.i.l.bf16 %v3947_v61  ;;  %v2072_v32 = vsel %vm2053_vm9, %v2023_v18, %v3933_v2  ;;  %v2073_v34 = vsel %vm2053_vm9, %v2024_v13, %v3934_v62 }
 0x1ef   : > { %v3942_v39 = vpop.permute.xlu0 %3941 }
 0x1f0   : > { %v2143_v56 = vsel %vm2102_vm10, %v2094_v0, %v3948_v24  ;;  %v2144_v41 = vsel %vm2102_vm10, %v2095_v45, %v3949_v53  ;;  %v3944_v12 = vunpack.i.h.bf16 %v3942_v39  ;;  %v3943_v59 = vunpack.i.l.bf16 %v3942_v39  ;;  %v7662_v0 = vld [vmem:[#allocation116_spill] sm:$0xff]  ;;  %v7663_v39 = vld [vmem:[#allocation134_spill] sm:$0xff] }
 0x1f1   : > { %v2171_v48 = vpack.c.bf16 %v2144_v41, %v2143_v56  ;;  %v3957_v38 = vpop.permute.xlu1 %3956  ;;  %v7664_v41 = vld [vmem:[#allocation142_spill] sm:$0xff] }
 0x1f2   : > { %v2119_v42 = vsel %vm2102_vm10, %v2070_v28, %v3943_v59  ;;  %v2120_v27 = vsel %vm2102_vm10, %v2071_v25, %v3944_v12  ;;  %v3959_v29 = vunpack.i.h.bf16 %v3957_v38  ;;  %v3958_v6 = vunpack.i.l.bf16 %v3957_v38  ;;  %v7665_v38 = vld [vmem:[#allocation139_spill] sm:$0xff] }
 0x1f3   : > { %v2159_v22 = vpack.c.bf16 %v2120_v27, %v2119_v42  ;;  %v3952_v14 = vpop.permute.xlu0 %3951  ;;  %3020 = vmatprep.mubr.msk.bf16.mxu1 %vm2195_vm11, %v2171_v48 }
 0x1f4   : > { %v2145_v37 = vsel %vm2102_vm10, %v2096_v31, %v3958_v6  ;;  %v2146_v60 = vsel %vm2102_vm10, %v2097_v5, %v3959_v29  ;;  %v3954_v17 = vunpack.i.h.bf16 %v3952_v14  ;;  %v3953_v43 = vunpack.i.l.bf16 %v3952_v14 }
 0x1f5   : > { %v2172_v35 = vpack.c.bf16 %v2146_v60, %v2145_v37  ;;  %2996 = vmatprep.mubr.msk.bf16.mxu0 %vm2195_vm11, %v2159_v22  ;;  %v3967_v55 = vpop.permute.xlu1 %3966 }
 0x1f6   : > { %v2121_v10 = vsel %vm2102_vm10, %v2072_v32, %v3953_v43  ;;  %v2122_v51 = vsel %vm2102_vm10, %v2073_v34, %v3954_v17  ;;  %v3969_v4 = vunpack.i.h.bf16 %v3967_v55  ;;  %v3968_v19 = vunpack.i.l.bf16 %v3967_v55 }
 0x1f7   : > { %v2160_v63 = vpack.c.bf16 %v2122_v51, %v2121_v10  ;;  %v3962_v8 = vpop.permute.xlu0 %3961  ;;  %3021 = vmatmul.mubr.msk.bf16.gmra.mrb[16].mxu1 %vm2195_vm11, %v2172_v35 }
 0x1f8   : > { %v3964_v23 = vunpack.i.h.bf16 %v3962_v8  ;;  %v3963_v15 = vunpack.i.l.bf16 %v3962_v8  ;;  %v2002_v1 = vsel %vm1955_vm7, %v7659_v54, %v3968_v19  ;;  %v2003_v40 = vsel %vm1955_vm7, %v7660_v16, %v3969_v4 }
 0x1f9   : > { %2997 = vmatmul.mubr.msk.bf16.gmra.mrb[16].mxu0 %vm2195_vm11, %v2160_v63  ;;  %v3977_v52 = vpop.permute.xlu1 %3976 }
 0x1fa   : > { %v3979_v46 = vunpack.i.h.bf16 %v3977_v52  ;;  %v3978_v50 = vunpack.i.l.bf16 %v3977_v52  ;;  %v2000_v13 = vsel %vm1955_vm7, %v7661_v47, %v3963_v15  ;;  %v2001_v53 = vsel %vm1955_vm7, %v7662_v0, %v3964_v23  ;;  %v7666_v52 = vld [vmem:[#allocation143_spill] sm:$0xff] }
 0x1fb   : > { %v3972_v21 = vpop.permute.xlu0 %3971 }
 0x1fc   : > { %v3974_v30 = vunpack.i.h.bf16 %v3972_v21  ;;  %v3973_v57 = vunpack.i.l.bf16 %v3972_v21  ;;  %v2049_v7 = vsel %vm2004_vm8, %v2000_v13, %v3978_v50  ;;  %v2050_v44 = vsel %vm2004_vm8, %v2001_v53, %v3979_v46 }
 0x1fd   : > { %v3987_v36 = vpop.permute.xlu1 %3986 }
 0x1fe   : > { %v3989_v26 = vunpack.i.h.bf16 %v3987_v36  ;;  %v3988_v33 = vunpack.i.l.bf16 %v3987_v36  ;;  %v2025_v56 = vsel %vm2004_vm8, %v7663_v39, %v3973_v57  ;;  %v2026_v12 = vsel %vm2004_vm8, %v7664_v41, %v3974_v30 }
 0x200   : > { %v2051_v59 = vsel %vm2004_vm8, %v2002_v1, %v3988_v33  ;;  %v2052_v25 = vsel %vm2004_vm8, %v2003_v40, %v3989_v26  ;;  %v6659_v1 = vld [vmem:[%s6821_s2 + $0x1] ss:$0 sm:$0xff] }
 0x201   : > { %v3982_v9 = vpop.permute.xlu0 %3981 }
 0x202   : > { %v3984_v58 = vunpack.i.h.bf16 %v3982_v9  ;;  %v3983_v62 = vunpack.i.l.bf16 %v3982_v9 }
 0x203   : > { %v3997_v20 = vpop.permute.xlu1 %3996 }
 0x204   : > { %v3998_v61 = vunpack.i.l.bf16 %v3997_v20  ;;  %v3999_v24 = vunpack.i.h.bf16 %v3997_v20  ;;  %v2028_v42 = vsel %vm2004_vm8, %v7665_v38, %v3984_v58  ;;  %v2027_v21 = vsel %vm2004_vm8, %v7666_v52, %v3983_v62 }
 0x205   : > { %v3992_v11 = vpop.permute.xlu0 %3991 }
 0x206   : > { %v3993_v45 = vunpack.i.l.bf16 %v3992_v11  ;;  %v3994_v2 = vunpack.i.h.bf16 %v3992_v11  ;;  %v2098_v27 = vsel %vm2053_vm9, %v2049_v7, %v3998_v61  ;;  %v2099_v3 = vsel %vm2053_vm9, %v2050_v44, %v3999_v24 }
 0x207   : > { %v4007_v49 = vpop.permute.xlu1 %4006 }
 0x208   : > { %v2074_v18 = vsel %vm2053_vm9, %v2025_v56, %v3993_v45  ;;  %v4009_v31 = vunpack.i.h.bf16 %v4007_v49  ;;  %v4008_v5 = vunpack.i.l.bf16 %v4007_v49  ;;  %v2075_v43 = vsel %vm2053_vm9, %v2026_v12, %v3994_v2  ;;  %v6653_v49 = vld [vmem:[%s6821_s2] ss:$0 sm:$0xff] }
 0x209   : > { %v4002_v28 = vpop.permute.xlu0 %4001 }
 0x20a   : > { %v4004_v32 = vunpack.i.h.bf16 %v4002_v28  ;;  %v4003_v34 = vunpack.i.l.bf16 %v4002_v28  ;;  %v2100_v36 = vsel %vm2053_vm9, %v2051_v59, %v4008_v5  ;;  %v2101_v9 = vsel %vm2053_vm9, %v2052_v25, %v4009_v31 }
 0x20b   : > { %v4017_v48 = vpop.permute.xlu1 %4016 }
 0x20c   : > { %v4019_v29 = vunpack.i.h.bf16 %v4017_v48  ;;  %v4018_v6 = vunpack.i.l.bf16 %v4017_v48  ;;  %v2076_v46 = vsel %vm2053_vm9, %v2027_v21, %v4003_v34  ;;  %v2077_v50 = vsel %vm2053_vm9, %v2028_v42, %v4004_v32 }
 0x20d   : > { %v4012_v22 = vpop.permute.xlu0 %4011 }
 0x20e   : > { %v2147_v14 = vsel %vm2102_vm10, %v2098_v27, %v4018_v6  ;;  %v2148_v37 = vsel %vm2102_vm10, %v2099_v3, %v4019_v29  ;;  %v4014_v60 = vunpack.i.h.bf16 %v4012_v22  ;;  %v4013_v17 = vunpack.i.l.bf16 %v4012_v22 }
 0x20f   : > { %v2173_v35 = vpack.c.bf16 %v2148_v37, %v2147_v14  ;;  %v4027_v55 = vpop.permute.xlu1 %4026 }
 0x210   : > { %v2123_v10 = vsel %vm2102_vm10, %v2074_v18, %v4013_v17  ;;  %v2124_v51 = vsel %vm2102_vm10, %v2075_v43, %v4014_v60  ;;  %v4029_v63 = vunpack.i.h.bf16 %v4027_v55  ;;  %v4028_v8 = vunpack.i.l.bf16 %v4027_v55 }
 0x211   : > { %v2161_v20 = vpack.c.bf16 %v2124_v51, %v2123_v10  ;;  %v4022_v4 = vpop.permute.xlu0 %4021  ;;  %3024 = vmatprep.mubr.msk.bf16.mxu1 %vm2195_vm11, %v2173_v35 }
 0x212   : > { %v2149_v19 = vsel %vm2102_vm10, %v2100_v36, %v4028_v8  ;;  %v2150_v23 = vsel %vm2102_vm10, %v2101_v9, %v4029_v63  ;;  %v4024_v15 = vunpack.i.h.bf16 %v4022_v4  ;;  %v4023_v11 = vunpack.i.l.bf16 %v4022_v4 }
 0x213   : > { %v2174_v30 = vpack.c.bf16 %v2150_v23, %v2149_v19  ;;  %3000 = vmatprep.mubr.msk.bf16.mxu0 %vm2195_vm11, %v2161_v20 }
 0x214   : > { %v2125_v57 = vsel %vm2102_vm10, %v2076_v46, %v4023_v11  ;;  %v2126_v26 = vsel %vm2102_vm10, %v2077_v50, %v4024_v15 }
 0x215   : > { %v2162_v33 = vpack.c.bf16 %v2126_v26, %v2125_v57  ;;  %3025 = vmatmul.mubr.msk.bf16.gmra.mrb[20].mxu1 %vm2195_vm11, %v2174_v30 }
 0x217   : > { %3001 = vmatmul.mubr.msk.bf16.gmra.mrb[20].mxu0 %vm2195_vm11, %v2162_v33 }
 0x259   : > { %v2982_v54 = vpop.f32.mrb[0].mxu0 }
 0x25a   : > { %v2504_v16 = vmul.f32 %v2982_v54, %v6653_v49  ;;  %v2306_v40 = vpop.f32.mrb[1].mxu0 }
 0x25b   : > { %v2502_v58 = vmul.f32 %v6653_v49, %v2306_v40  ;;  %v2983_v61 = vpop.f32.mrb[2].mxu0 }
 0x25c   : > { %v2557_v47 = vadd.f32 %v6659_v1, %v2504_v16  ;;  %v2505_v13 = vmul.f32 %v2983_v61, %v6653_v49  ;;  %v2309_v0 = vpop.f32.mrb[3].mxu0 }
 0x25d   : > { %v2555_v53 = vadd.f32 %v6659_v1, %v2502_v58  ;;  %v2503_v24 = vmul.f32 %v6653_v49, %v2309_v0 }
 0x25e   : > { %v2605_v45 = vmax.f32 %v2557_v47, 0.0  ;;  %v2558_v28 = vadd.f32 %v6659_v1, %v2505_v13 }
 0x25f   : > { %v2603_v7 = vmax.f32 %v2555_v53, 0.0  ;;  %v2556_v44 = vadd.f32 %v6659_v1, %v2503_v24  ;;  %v3006_v39 = vpop.f32.mrb[0].mxu1 }
 0x260   : > { %2653 = vst [vmem:[%s6668_s12 + $0x10] sm:$0xff] %v2605_v45  ;;  %v2606_v56 = vmax.f32 %v2558_v28, 0.0  ;;  %v2528_v41 = vmul.f32 %v3006_v39, %v6653_v49  ;;  %v2402_v12 = vpop.f32.mrb[1].mxu1 }
 0x261   : > { %2651 = vst [vmem:[%s6668_s12] sm:$0xff] %v2603_v7  ;;  %v2604_v59 = vmax.f32 %v2556_v44, 0.0  ;;  %v2526_v25 = vmul.f32 %v6653_v49, %v2402_v12  ;;  %v3007_v62 = vpop.f32.mrb[2].mxu1 }
 0x262   : > { %2654 = vst [vmem:[%s6668_s12 + $0x18] sm:$0xff] %v2606_v56  ;;  %v2581_v2 = vadd.f32 %v6659_v1, %v2528_v41  ;;  %v2529_v48 = vmul.f32 %v3007_v62, %v6653_v49  ;;  %v2405_v38 = vpop.f32.mrb[3].mxu1 }
 0x263   : > { %2652 = vst [vmem:[%s6668_s12 + $0x8] sm:$0xff] %v2604_v59  ;;  %v2579_v42 = vadd.f32 %v6659_v1, %v2526_v25  ;;  %v2527_v27 = vmul.f32 %v6653_v49, %v2405_v38 }
 0x264   : > { %v2629_v29 = vmax.f32 %v2581_v2, 0.0  ;;  %v2582_v6 = vadd.f32 %v6659_v1, %v2529_v48 }
 0x265   : > { %v2627_v3 = vmax.f32 %v2579_v42, 0.0  ;;  %v2580_v18 = vadd.f32 %v6659_v1, %v2527_v27 }
 0x266   : > { %2677 = vst [vmem:[%s6668_s12 + $0xd0] sm:$0xff] %v2629_v29  ;;  %v2630_v31 = vmax.f32 %v2582_v6, 0.0 }
 0x267   : > { %2675 = vst [vmem:[%s6668_s12 + $0xc0] sm:$0xff] %v2627_v3  ;;  %v2628_v5 = vmax.f32 %v2580_v18, 0.0 }
 0x268   : > { %2678 = vst [vmem:[%s6668_s12 + $0xd8] sm:$0xff] %v2630_v31 }
 0x269   : > { %2676 = vst [vmem:[%s6668_s12 + $0xc8] sm:$0xff] %v2628_v5 }
 0x276   : > { %v3010_v22 = vpop.f32.mrb[4].mxu1 }
 0x277   : > { %v2532_v14 = vmul.f32 %v3010_v22, %v6653_v49  ;;  %v2418_v37 = vpop.f32.mrb[5].mxu1 }
 0x278   : > { %v2986_v60 = vpop.f32.mrb[4].mxu0  ;;  %v2530_v17 = vmul.f32 %v6653_v49, %v2418_v37  ;;  %v3011_v43 = vpop.f32.mrb[6].mxu1 }
 0x279   : > { %v2508_v32 = vmul.f32 %v2986_v60, %v6653_v49  ;;  %v2585_v34 = vadd.f32 %v6659_v1, %v2532_v14  ;;  %v2322_v35 = vpop.f32.mrb[5].mxu0  ;;  %v2533_v55 = vmul.f32 %v3011_v43, %v6653_v49  ;;  %v2421_v10 = vpop.f32.mrb[7].mxu1 }
 0x27a   : > { %v2506_v51 = vmul.f32 %v6653_v49, %v2322_v35  ;;  %v2583_v63 = vadd.f32 %v6659_v1, %v2530_v17  ;;  %v2987_v8 = vpop.f32.mrb[6].mxu0  ;;  %v2531_v52 = vmul.f32 %v6653_v49, %v2421_v10 }
 0x27b   : > { %v2561_v21 = vadd.f32 %v6659_v1, %v2508_v32  ;;  %v2633_v36 = vmax.f32 %v2585_v34, 0.0  ;;  %v2509_v9 = vmul.f32 %v2987_v8, %v6653_v49  ;;  %v2586_v20 = vadd.f32 %v6659_v1, %v2533_v55  ;;  %v2325_v4 = vpop.f32.mrb[7].mxu0 }
 0x27c   : > { %v2559_v19 = vadd.f32 %v6659_v1, %v2506_v51  ;;  %v2631_v23 = vmax.f32 %v2583_v63, 0.0  ;;  %v2507_v15 = vmul.f32 %v6653_v49, %v2325_v4  ;;  %v2584_v11 = vadd.f32 %v6659_v1, %v2531_v52 }
 0x27d   : > { %v2609_v46 = vmax.f32 %v2561_v21, 0.0  ;;  %2681 = vst [vmem:[%s6668_s12 + $0xf0] sm:$0xff] %v2633_v36  ;;  %v2562_v50 = vadd.f32 %v6659_v1, %v2509_v9  ;;  %v2634_v30 = vmax.f32 %v2586_v20, 0.0 }
 0x27e   : > { %v2607_v57 = vmax.f32 %v2559_v19, 0.0  ;;  %2679 = vst [vmem:[%s6668_s12 + $0xe0] sm:$0xff] %v2631_v23  ;;  %v2560_v26 = vadd.f32 %v6659_v1, %v2507_v15  ;;  %v2632_v33 = vmax.f32 %v2584_v11, 0.0 }
 0x27f   : > { %2657 = vst [vmem:[%s6668_s12 + $0x30] sm:$0xff] %v2609_v46  ;;  %v2610_v54 = vmax.f32 %v2562_v50, 0.0  ;;  %2682 = vst [vmem:[%s6668_s12 + $0xf8] sm:$0xff] %v2634_v30 }
 0x280   : > { %2655 = vst [vmem:[%s6668_s12 + $0x20] sm:$0xff] %v2607_v57  ;;  %v2608_v16 = vmax.f32 %v2560_v26, 0.0  ;;  %2680 = vst [vmem:[%s6668_s12 + $0xe8] sm:$0xff] %v2632_v33 }
 0x281   : > { %2658 = vst [vmem:[%s6668_s12 + $0x38] sm:$0xff] %v2610_v54 }
 0x282   : > { %2656 = vst [vmem:[%s6668_s12 + $0x28] sm:$0xff] %v2608_v16 }
 0x293   : > { %v3014_v40 = vpop.f32.mrb[8].mxu1 }
 0x294   : > { %v2536_v58 = vmul.f32 %v3014_v40, %v6653_v49  ;;  %v2434_v61 = vpop.f32.mrb[9].mxu1 }
 0x295   : > { %v2990_v47 = vpop.f32.mrb[8].mxu0  ;;  %v2534_v13 = vmul.f32 %v6653_v49, %v2434_v61  ;;  %v3015_v0 = vpop.f32.mrb[10].mxu1 }
 0x296   : > { %v2512_v53 = vmul.f32 %v2990_v47, %v6653_v49  ;;  %v2589_v24 = vadd.f32 %v6659_v1, %v2536_v58  ;;  %v2338_v45 = vpop.f32.mrb[9].mxu0  ;;  %v2537_v28 = vmul.f32 %v3015_v0, %v6653_v49  ;;  %v2437_v7 = vpop.f32.mrb[11].mxu1 }
 0x297   : > { %v2510_v44 = vmul.f32 %v6653_v49, %v2338_v45  ;;  %v2587_v39 = vadd.f32 %v6659_v1, %v2534_v13  ;;  %v2991_v56 = vpop.f32.mrb[10].mxu0  ;;  %v2535_v41 = vmul.f32 %v6653_v49, %v2437_v7 }
 0x298   : > { %v2565_v12 = vadd.f32 %v6659_v1, %v2512_v53  ;;  %v2637_v59 = vmax.f32 %v2589_v24, 0.0  ;;  %v2513_v25 = vmul.f32 %v2991_v56, %v6653_v49  ;;  %v2590_v62 = vadd.f32 %v6659_v1, %v2537_v28  ;;  %v2341_v2 = vpop.f32.mrb[11].mxu0 }
 0x299   : > { %v2563_v48 = vadd.f32 %v6659_v1, %v2510_v44  ;;  %v2635_v38 = vmax.f32 %v2587_v39, 0.0  ;;  %v2511_v42 = vmul.f32 %v6653_v49, %v2341_v2  ;;  %v2588_v27 = vadd.f32 %v6659_v1, %v2535_v41 }
 0x29a   : > { %v2613_v29 = vmax.f32 %v2565_v12, 0.0  ;;  %2685 = vst [vmem:[%s6668_s12 + $0x110] sm:$0xff] %v2637_v59  ;;  %v2566_v6 = vadd.f32 %v6659_v1, %v2513_v25  ;;  %v2638_v3 = vmax.f32 %v2590_v62, 0.0 }
 0x29b   : > { %v2611_v18 = vmax.f32 %v2563_v48, 0.0  ;;  %2683 = vst [vmem:[%s6668_s12 + $0x100] sm:$0xff] %v2635_v38  ;;  %v2564_v31 = vadd.f32 %v6659_v1, %v2511_v42  ;;  %v2636_v5 = vmax.f32 %v2588_v27, 0.0 }
 0x29c   : > { %2661 = vst [vmem:[%s6668_s12 + $0x50] sm:$0xff] %v2613_v29  ;;  %v2614_v22 = vmax.f32 %v2566_v6, 0.0  ;;  %2686 = vst [vmem:[%s6668_s12 + $0x118] sm:$0xff] %v2638_v3 }
 0x29d   : > { %2659 = vst [vmem:[%s6668_s12 + $0x40] sm:$0xff] %v2611_v18  ;;  %v2612_v14 = vmax.f32 %v2564_v31, 0.0  ;;  %2684 = vst [vmem:[%s6668_s12 + $0x108] sm:$0xff] %v2636_v5 }
 0x29e   : > { %2662 = vst [vmem:[%s6668_s12 + $0x58] sm:$0xff] %v2614_v22 }
 0x29f   : > { %2660 = vst [vmem:[%s6668_s12 + $0x48] sm:$0xff] %v2612_v14 }
 0x2ad   : > { %v3018_v37 = vpop.f32.mrb[12].mxu1 }
 0x2ae   : > { %v2540_v60 = vmul.f32 %v3018_v37, %v6653_v49  ;;  %v2450_v17 = vpop.f32.mrb[13].mxu1 }
 0x2af   : > { %v2994_v43 = vpop.f32.mrb[12].mxu0  ;;  %v2538_v32 = vmul.f32 %v6653_v49, %v2450_v17  ;;  %v3019_v34 = vpop.f32.mrb[14].mxu1 }
 0x2b0   : > { %v2516_v35 = vmul.f32 %v2994_v43, %v6653_v49  ;;  %v2593_v55 = vadd.f32 %v6659_v1, %v2540_v60  ;;  %v2354_v10 = vpop.f32.mrb[13].mxu0  ;;  %v2541_v51 = vmul.f32 %v3019_v34, %v6653_v49  ;;  %v2453_v63 = vpop.f32.mrb[15].mxu1 }
 0x2b1   : > { %v2514_v8 = vmul.f32 %v6653_v49, %v2354_v10  ;;  %v2591_v52 = vadd.f32 %v6659_v1, %v2538_v32  ;;  %v2995_v21 = vpop.f32.mrb[14].mxu0  ;;  %v2539_v36 = vmul.f32 %v6653_v49, %v2453_v63 }
 0x2b2   : > { %v2569_v9 = vadd.f32 %v6659_v1, %v2516_v35  ;;  %v2641_v20 = vmax.f32 %v2593_v55, 0.0  ;;  %v2517_v4 = vmul.f32 %v2995_v21, %v6653_v49  ;;  %v2594_v19 = vadd.f32 %v6659_v1, %v2541_v51  ;;  %v2357_v23 = vpop.f32.mrb[15].mxu0 }
 0x2b3   : > { %v2567_v15 = vadd.f32 %v6659_v1, %v2514_v8  ;;  %v2639_v11 = vmax.f32 %v2591_v52, 0.0  ;;  %v2515_v46 = vmul.f32 %v6653_v49, %v2357_v23  ;;  %v2592_v50 = vadd.f32 %v6659_v1, %v2539_v36 }
 0x2b4   : > { %v2617_v30 = vmax.f32 %v2569_v9, 0.0  ;;  %2689 = vst [vmem:[%s6668_s12 + $0x130] sm:$0xff] %v2641_v20  ;;  %v2570_v57 = vadd.f32 %v6659_v1, %v2517_v4  ;;  %v2642_v26 = vmax.f32 %v2594_v19, 0.0 }
 0x2b5   : > { %v2615_v33 = vmax.f32 %v2567_v15, 0.0  ;;  %2687 = vst [vmem:[%s6668_s12 + $0x120] sm:$0xff] %v2639_v11  ;;  %v2568_v54 = vadd.f32 %v6659_v1, %v2515_v46  ;;  %v2640_v16 = vmax.f32 %v2592_v50, 0.0 }
 0x2b6   : > { %2665 = vst [vmem:[%s6668_s12 + $0x70] sm:$0xff] %v2617_v30  ;;  %v2618_v40 = vmax.f32 %v2570_v57, 0.0  ;;  %2690 = vst [vmem:[%s6668_s12 + $0x138] sm:$0xff] %v2642_v26 }
 0x2b7   : > { %2663 = vst [vmem:[%s6668_s12 + $0x60] sm:$0xff] %v2615_v33  ;;  %v2616_v58 = vmax.f32 %v2568_v54, 0.0  ;;  %2688 = vst [vmem:[%s6668_s12 + $0x128] sm:$0xff] %v2640_v16 }
 0x2b8   : > { %2666 = vst [vmem:[%s6668_s12 + $0x78] sm:$0xff] %v2618_v40 }
 0x2b9   : > { %2664 = vst [vmem:[%s6668_s12 + $0x68] sm:$0xff] %v2616_v58 }
 0x2ca   : > { %v3022_v61 = vpop.f32.mrb[16].mxu1 }
 0x2cb   : > { %v2544_v47 = vmul.f32 %v3022_v61, %v6653_v49  ;;  %v2466_v13 = vpop.f32.mrb[17].mxu1 }
 0x2cc   : > { %v2998_v0 = vpop.f32.mrb[16].mxu0  ;;  %v2542_v53 = vmul.f32 %v6653_v49, %v2466_v13  ;;  %v3023_v24 = vpop.f32.mrb[18].mxu1 }
 0x2cd   : > { %v2520_v45 = vmul.f32 %v2998_v0, %v6653_v49  ;;  %v2597_v28 = vadd.f32 %v6659_v1, %v2544_v47  ;;  %v2370_v7 = vpop.f32.mrb[17].mxu0  ;;  %v2545_v44 = vmul.f32 %v3023_v24, %v6653_v49  ;;  %v2469_v39 = vpop.f32.mrb[19].mxu1 }
 0x2ce   : > { %v2518_v56 = vmul.f32 %v6653_v49, %v2370_v7  ;;  %v2595_v41 = vadd.f32 %v6659_v1, %v2542_v53  ;;  %v2999_v12 = vpop.f32.mrb[18].mxu0  ;;  %v2543_v59 = vmul.f32 %v6653_v49, %v2469_v39 }
 0x2cf   : > { %v2573_v25 = vadd.f32 %v6659_v1, %v2520_v45  ;;  %v2645_v62 = vmax.f32 %v2597_v28, 0.0  ;;  %v2521_v2 = vmul.f32 %v2999_v12, %v6653_v49  ;;  %v2598_v48 = vadd.f32 %v6659_v1, %v2545_v44  ;;  %v2373_v38 = vpop.f32.mrb[19].mxu0 }
 0x2d0   : > { %v2571_v42 = vadd.f32 %v6659_v1, %v2518_v56  ;;  %v2643_v27 = vmax.f32 %v2595_v41, 0.0  ;;  %v2519_v29 = vmul.f32 %v6653_v49, %v2373_v38  ;;  %v2596_v6 = vadd.f32 %v6659_v1, %v2543_v59 }
 0x2d1   : > { %v2621_v3 = vmax.f32 %v2573_v25, 0.0  ;;  %2693 = vst [vmem:[%s6668_s12 + $0x150] sm:$0xff] %v2645_v62  ;;  %v2574_v18 = vadd.f32 %v6659_v1, %v2521_v2  ;;  %v2646_v31 = vmax.f32 %v2598_v48, 0.0 }
 0x2d2   : > { %v2619_v5 = vmax.f32 %v2571_v42, 0.0  ;;  %2691 = vst [vmem:[%s6668_s12 + $0x140] sm:$0xff] %v2643_v27  ;;  %v2572_v22 = vadd.f32 %v6659_v1, %v2519_v29  ;;  %v2644_v14 = vmax.f32 %v2596_v6, 0.0 }
 0x2d3   : > { %2669 = vst [vmem:[%s6668_s12 + $0x90] sm:$0xff] %v2621_v3  ;;  %v2622_v37 = vmax.f32 %v2574_v18, 0.0  ;;  %2694 = vst [vmem:[%s6668_s12 + $0x158] sm:$0xff] %v2646_v31 }
 0x2d4   : > { %2667 = vst [vmem:[%s6668_s12 + $0x80] sm:$0xff] %v2619_v5  ;;  %v2620_v60 = vmax.f32 %v2572_v22, 0.0  ;;  %2692 = vst [vmem:[%s6668_s12 + $0x148] sm:$0xff] %v2644_v14 }
 0x2d5   : > { %2670 = vst [vmem:[%s6668_s12 + $0x98] sm:$0xff] %v2622_v37 }
 0x2d6   : > { %2668 = vst [vmem:[%s6668_s12 + $0x88] sm:$0xff] %v2620_v60 }
 0x2e8   : > { %v3026_v17 = vpop.f32.mrb[20].mxu1 }
 0x2e9   : > { %v2548_v43 = vmul.f32 %v3026_v17, %v6653_v49  ;;  %v2482_v32 = vpop.f32.mrb[21].mxu1 }
 0x2ea   : > { %v3002_v34 = vpop.f32.mrb[20].mxu0  ;;  %v2546_v35 = vmul.f32 %v6653_v49, %v2482_v32  ;;  %v3027_v55 = vpop.f32.mrb[22].mxu1 }
 0x2eb   : > { %v2524_v10 = vmul.f32 %v3002_v34, %v6653_v49  ;;  %v2601_v51 = vadd.f32 %v6659_v1, %v2548_v43  ;;  %v2386_v63 = vpop.f32.mrb[21].mxu0  ;;  %v2549_v8 = vmul.f32 %v3027_v55, %v6653_v49  ;;  %v2485_v52 = vpop.f32.mrb[23].mxu1 }
 0x2ec   : > { %v2522_v21 = vmul.f32 %v6653_v49, %v2386_v63  ;;  %v2599_v36 = vadd.f32 %v6659_v1, %v2546_v35  ;;  %v3003_v9 = vpop.f32.mrb[22].mxu0  ;;  %v2547_v20 = vmul.f32 %v6653_v49, %v2485_v52 }
 0x2ed   : > { %v2577_v4 = vadd.f32 %v6659_v1, %v2524_v10  ;;  %v2649_v19 = vmax.f32 %v2601_v51, 0.0  ;;  %v2525_v23 = vmul.f32 %v3003_v9, %v6653_v49  ;;  %v2602_v15 = vadd.f32 %v6659_v1, %v2549_v8  ;;  %v2389_v11 = vpop.f32.mrb[23].mxu0 }
 0x2ee   : > { %v2575_v46 = vadd.f32 %v6659_v1, %v2522_v21  ;;  %v2647_v50 = vmax.f32 %v2599_v36, 0.0  ;;  %v2523_v30 = vmul.f32 %v6653_v49, %v2389_v11  ;;  %v2600_v57 = vadd.f32 %v6659_v1, %v2547_v20 }
 0x2ef   : > { %v2625_v26 = vmax.f32 %v2577_v4, 0.0  ;;  %2697 = vst [vmem:[%s6668_s12 + $0x170] sm:$0xff] %v2649_v19  ;;  %v2578_v33 = vadd.f32 %v6659_v1, %v2525_v23  ;;  %v2650_v54 = vmax.f32 %v2602_v15, 0.0 }
 0x2f0   : > { %v2623_v16 = vmax.f32 %v2575_v46, 0.0  ;;  %2695 = vst [vmem:[%s6668_s12 + $0x160] sm:$0xff] %v2647_v50  ;;  %v2576_v40 = vadd.f32 %v6659_v1, %v2523_v30  ;;  %v2648_v58 = vmax.f32 %v2600_v57, 0.0 }
 0x2f1   : > { %2673 = vst [vmem:[%s6668_s12 + $0xb0] sm:$0xff] %v2625_v26  ;;  %v2626_v61 = vmax.f32 %v2578_v33, 0.0  ;;  %2698 = vst [vmem:[%s6668_s12 + $0x178] sm:$0xff] %v2650_v54 }
 0x2f2   : > { %2671 = vst [vmem:[%s6668_s12 + $0xa0] sm:$0xff] %v2623_v16  ;;  %v2624_v47 = vmax.f32 %v2576_v40, 0.0  ;;  %2696 = vst [vmem:[%s6668_s12 + $0x168] sm:$0xff] %v2648_v58 }
 0x2f3   : > { %2674 = vst [vmem:[%s6668_s12 + $0xb8] sm:$0xff] %v2626_v61 }
 0x2f4   : > { %2672 = vst [vmem:[%s6668_s12 + $0xa8] sm:$0xff] %v2624_v47 }
 0x2f5 PF: > { %s13_s14 = sadd.s32 1, %s4055_s14   ;;  %s7667_s12 = smov %s4051_s13 }
 0x2f6   : > { %p10_p5 = scmp.ge.s32.totalorder %s13_s14, 4   ;;  %s7668_s13 = smov %s7670_s15 }
 0x2f8   :  { %12 = sbr.rel (!%p10_p5) target bundleno = 2 (0x2), region = 62 }

// kernel: conv2d_block_forward.1
= control target key start
LH: loop header
LB: loop body
LE: loop exit
PB: predicated region body
PF: predicated region fallthrough
CT: control target
= control target key end

     0   :  { %s6761_s12 = smov 0   ;;  %s6763_s13 = smov 0   ;;  %s7942_s0 = inlined_call_operand.vmem [shape: bf16[2,456,4], index: 0, kind: input, shape index: {}]   ;;  %s7943_s1 = inlined_call_operand.vmem [shape: bf16[9,4,128], index: 1, kind: input, shape index: {}]   ;;  %s7944_s2 = inlined_call_operand.vmem [shape: f32[2,128], index: 2, kind: input, shape index: {}]   ;;  %s7945_s3 = inlined_call_operand.vmem [shape: f32[2,384,128], index: 3, kind: output, shape index: {}]  }
   0x1   :  { %s6765_s14 = smov 0  }
   0x2 LB: > { %s25_s15 = sadd.s32 1, %s6735_s13  ;;  %p5114_p0 = scmp.ge.s32.totalorder %s6739_s14, 1  ;;  %s6739_s14 = sphi %s6765_s14, %s13_s14   ;;  %s6735_s13 = sphi %s6763_s13, %s7947_s13   ;;  %s6731_s12 = sphi %s6761_s12, %s7946_s12  }
   0x3   : > { %p27_p1 = scmp.ge.s32.totalorder %s25_s15, 2  ;;  %p151_p2 = scmp.lt.s32.totalorder %s6739_s14, 3 }
   0x5   : > { %s7949_s15 = smov (%p27_p1, %s25_s15), 0  ;;  %p152_p3 = pnand %p5114_p0, %p151_p2 }
   0x6   : > { %v5117_v0 = vld [vmem:[%s7943_s1 + $0x2] sm:$0x3] (!%p152_p3)  ;;  %vm640_vm0 = vcmask (!%p152_p3), 1041408   ;;  %v5266_v1 = vld [vmem:[%s7943_s1 + $0x8] sm:$0x3] (!%p152_p3)  ;;  %p179_p4 = scmp.lt.s32.totalorder (!%p152_p3), %s6731_s12, 1 }
   0x7   : > { %155 = sbr.rel (%p152_p3) target bundleno = 679 (0x2a7), region = 32  ;;  %6532 = vmatprep.subr.msk.bf16.mxu1 (!%p152_p3), %vm640_vm0, %v5117_v0  ;;  %6536 = vmatprep.subr.msk.bf16.mxu0 (!%p152_p3), %vm640_vm0, %v5266_v1  ;;  %v642_v2 = vsel (!%p152_p3), %vm640_vm0, %v5117_v0, 0  ;;  %v6789_v3 = vsel (!%p152_p3), %vm640_vm0, %v5266_v1, 0  ;;  %v243_v4 = vld [vmem:[%s7943_s1] sm:$0x3] (!%p152_p3)  ;;  %vm567_vm2 = vcmask (!%p152_p3), 31744  }
   0x8   : > { %5697 = vmatpush3.bf16.msra.mxu1 (!%p152_p3), %v642_v2  ;;  %5897 = vmatpush3.bf16.msra.mxu0 (!%p152_p3), %v6789_v3  ;;  %v5316_v5 = vld [vmem:[%s7943_s1 + $0xa] sm:$0x3] (!%p152_p3)  ;;  %vm370_vm1 = vsmask.f32 (!%p152_p3), 7424  ;;  %v918_v6 = vsel (!%p152_p3), %vm640_vm0, %v243_v4, 0  ;;  %vm1151_vm3 = vcmask (!%p152_p3), 1046528  }
   0x9   : > { %6533 = vmatprep.subr.msk.bf16.mxu1 (!%p152_p3), %vm640_vm0, %v243_v4  ;;  %6538 = vmatprep.subr.msk.bf16.mxu0 (!%p152_p3), %vm640_vm0, %v5316_v5  ;;  %v2913_v12 = vsel (!%p152_p3), %vm640_vm0, %v5316_v5, 0  ;;  %v6844_v39 = vld [vmem:[%s7943_s1 + $0x4] sm:$0x3] (!%p152_p3)  ;;  %v6860_v53 = vld [vmem:[%s7943_s1 + $0xc] sm:$0x3] (!%p152_p3) }
   0xe   : > { %s7951_s12 = smov (!%p179_p4, %s6731_s12), 1 }
   0xf   : > { %s6542_s24 = smul.u32 228, %s7951_s12 }
  0x10   : > { %s6543_s19 = smul.u32 384, %s7951_s12 }
  0x11   : > { %s6806_s27 = scalar_lea.vmem %s7942_s0, %s6542_s24 }
  0x12   : > { %v195_v7 = vld [vmem:[%s6806_s27] sm:$0xf]  ;;  %v196_v8 = vld [vmem:[%s6806_s27 + $0x4] sm:$0xf]  ;;  %v6569_v10 = vld [vmem:[%s6806_s27 + $0x8] sm:$0xff]   ;;  %s7775_s23 = scalar_lea.vmem %s7945_s3, %s6543_s19 }
  0x13   : > { %v6811_v9 = vcombine.low %v195_v7, %v196_v8  ;;  %v2067_v11 = vld [vmem:[%s6806_s27 + $0xc] sm:$0xf]  ;;  %v6817_v13 = vld [vmem:[%s6806_s27 + $0x10] sm:$0xf]  ;;  %v379_v16 = vshll.u32 %v6569_v10, 16  ;;  %v383_v17 = vshrl.u32 %v6569_v10, 16 }
  0x14   : > { %v6822_v18 = vld [vmem:[%s6806_s27 + $0x14] sm:$0xff]   ;;  %v5267_v20 = vcombine.low %v2067_v11, %v6817_v13  ;;  %v6832_v28 = vld [vmem:[%s6806_s27 + $0x1c] sm:$0xff]   ;;  %v6837_v34 = vld [vmem:[%s6806_s27 + $0x24] sm:$0xff]  }
  0x15   : > { %v372_v14 = vshrl.u32 %v6811_v9, 16  ;;  %v374_v15 = vshll.u32 %v6811_v9, 16  ;;  %v6825_v19 = vld [vmem:[%s6806_s27 + $0x10] sm:$0xff]   ;;  %v381_v22 = vrot.slane %v379_v16, 1  ;;  %v2249_v23 = vshll.u32 %v6822_v18, 16  ;;  %v6574_v32 = vld [vmem:[%s6806_s27 + $0x18] sm:$0xff]  }
  0x16   : > { %v2253_v24 = vshrl.u32 %v6822_v18, 16  ;;  %v2242_v25 = vshrl.u32 %v5267_v20, 16  ;;  %v2244_v26 = vshll.u32 %v5267_v20, 16  ;;  %v387_v27 = vshll.u32 %v6825_v19, 16  ;;  %v6851_v48 = vld [vmem:[%s6806_s27 + $0x20] sm:$0xff]   ;;  %v6855_v52 = vld [vmem:[%s6806_s27 + $0x2c] sm:$0xff]  }
  0x17   : > { %v376_v21 = vrot.slane %v374_v15, 1  ;;  %v385_v30 = vor.u32 %v383_v17, %v381_v22  ;;  %v2251_v31 = vrot.slane %v2249_v23, 1  ;;  %v391_v33 = vshrl.u32 %v6825_v19, 16  ;;  %v6866_v58 = vld [vmem:[%s6806_s27 + $0x28] sm:$0xff]   ;;  %v6880_v4 = vld [vmem:[%s6806_s27 + $0x34] sm:$0xff]   ;;  %v6894_v20 = vld [vmem:[%s6806_s27 + $0x3c] sm:$0xff]  }
  0x18   : > { %v2246_v35 = vrot.slane %v2244_v26, 1  ;;  %v389_v36 = vrot.slane %v387_v27, 1  ;;  %v2257_v37 = vshll.u32 %v6832_v28, 16  ;;  %v2261_v38 = vshrl.u32 %v6832_v28, 16  ;;  %v6885_v8 = vld [vmem:[%s6806_s27 + $0x30] sm:$0xff]  }
  0x19   : > { %v377_v29 = vor.u32 %v376_v21, %v372_v14  ;;  %v2255_v41 = vor.u32 %v2253_v24, %v2251_v31  ;;  %v395_v42 = vshll.u32 %v6574_v32, 16  ;;  %v2265_v43 = vshll.u32 %v6837_v34, 16 }
  0x1a   : > { %v2247_v44 = vor.u32 %v2246_v35, %v2242_v25  ;;  %v390_v45 = vsel %vm370_vm1, %v385_v30, %v389_v36  ;;  %v2259_v46 = vrot.slane %v2257_v37, 1  ;;  %v393_v47 = vor.u32 %v391_v33, %v389_v36  ;;  %v6913_v36 = vld [vmem:[%s6806_s27 + $0x40] sm:$0xff]  }
  0x1b   : > { %v382_v40 = vsel %vm370_vm1, %v377_v29, %v381_v22  ;;  %v397_v49 = vrot.slane %v395_v42, 1  ;;  %v2267_v50 = vrot.slane %v2265_v43, 1  ;;  %v399_v51 = vshrl.u32 %v6574_v32, 16  ;;  %v6898_v22 = vld [vmem:[%s6806_s27 + $0x38] sm:$0xff]   ;;  %v6918_v42 = vld [vmem:[%s6806_s27 + $0x4c] sm:$0xff]  }
  0x1c   : > { %5698 = vmatprep.mubr.msk.bf16.mxu1 %vm567_vm2, %v382_v40  ;;  %v2252_v54 = vsel %vm370_vm1, %v2247_v44, %v2251_v31  ;;  %v2260_v55 = vsel %vm370_vm1, %v2255_v41, %v2259_v46  ;;  %v2263_v56 = vor.u32 %v2261_v38, %v2259_v46  ;;  %v403_v57 = vshll.u32 %v6851_v48, 16  ;;  %v6907_v31 = vld [vmem:[%s6806_s27 + $0x44] sm:$0xff]  }
  0x1d   : > { %5699 = vmatmul.mubr.msk.bf16.vlgmr.msra.gmra.mrb[0].mxu1 %vm567_vm2, %v390_v45  ;;  %5898 = vmatprep.mubr.msk.bf16.mxu0 %vm567_vm2, %v2252_v54  ;;  %v398_v59 = vsel %vm370_vm1, %v393_v47, %v397_v49  ;;  %v401_v60 = vor.u32 %v399_v51, %v397_v49  ;;  %v2269_v61 = vshrl.u32 %v6837_v34, 16  ;;  %v2273_v62 = vshll.u32 %v6855_v52, 16  ;;  %v6921_v43 = vld [vmem:[%s6806_s27 + $0x48] sm:$0xff]   ;;  %v6928_v51 = vld [vmem:[%s6806_s27 + $0x54] sm:$0xff]  }
  0x1e   : > { %5747 = vmatpush3.bf16.msra.mxu1 %v918_v6  ;;  %5899 = vmatmul.mubr.msk.bf16.vlgmr.msra.gmra.mrb[0].mxu0 %vm567_vm2, %v2260_v55  ;;  %v2268_v63 = vsel %vm370_vm1, %v2263_v56, %v2267_v50  ;;  %v405_v0 = vrot.slane %v403_v57, 1  ;;  %v407_v1 = vshrl.u32 %v6851_v48, 16  ;;  %v411_v2 = vshll.u32 %v6866_v58, 16 }
  0x1f   : > { %6534 = vmatprep.subr.msk.bf16.mxu1 %vm640_vm0, %v6844_v39  ;;  %5702 = vmatprep.mubr.msk.bf16.mxu1 %vm567_vm2, %v398_v59  ;;  %v2271_v5 = vor.u32 %v2269_v61, %v2267_v50  ;;  %v2275_v6 = vrot.slane %v2273_v62, 1  ;;  %v2277_v7 = vshrl.u32 %v6855_v52, 16  ;;  %v415_v10 = vshrl.u32 %v6866_v58, 16  ;;  %v6938_v62 = vld [vmem:[%s6806_s27 + $0x50] sm:$0xff]  }
  0x20   : > { %5947 = vmatpush3.bf16.msra.mxu0 %v2913_v12  ;;  %5902 = vmatprep.mubr.msk.bf16.mxu0 %vm567_vm2, %v2268_v63  ;;  %v406_v11 = vsel %vm370_vm1, %v401_v60, %v405_v0  ;;  %v409_v14 = vor.u32 %v407_v1, %v405_v0  ;;  %v413_v15 = vrot.slane %v411_v2, 1  ;;  %v2281_v16 = vshll.u32 %v6880_v4, 16 }
  0x21   : > { %6539 = vmatprep.subr.msk.bf16.mxu0 %vm640_vm0, %v6860_v53  ;;  %v2279_v12 = vor.u32 %v2277_v7, %v2275_v6  ;;  %v419_v17 = vshll.u32 %v6885_v8, 16  ;;  %v2285_v21 = vshrl.u32 %v6880_v4, 16  ;;  %v423_v25 = vshrl.u32 %v6885_v8, 16  ;;  %v6945_v7 = vld [vmem:[%s6806_s27 + $0x58] sm:$0xff]  }
  0x22   : > { %v414_v23 = vsel %vm370_vm1, %v409_v14, %v413_v15  ;;  %v2283_v24 = vrot.slane %v2281_v16, 1  ;;  %v2276_v26 = vsel %vm370_vm1, %v2271_v5, %v2275_v6  ;;  %v2289_v29 = vshll.u32 %v6894_v20, 16 }
  0x23   : > { %v421_v27 = vrot.slane %v419_v17, 1  ;;  %v427_v30 = vshll.u32 %v6898_v22, 16  ;;  %v417_v33 = vor.u32 %v415_v10, %v413_v15  ;;  %v2293_v35 = vshrl.u32 %v6894_v20, 16 }
  0x24   : > { %v2284_v32 = vsel %vm370_vm1, %v2279_v12, %v2283_v24  ;;  %v2291_v40 = vrot.slane %v2289_v29, 1  ;;  %v2297_v41 = vshll.u32 %v6907_v31, 16  ;;  %v2287_v44 = vor.u32 %v2285_v21, %v2283_v24 }
  0x25   : > { %5703 = vmatmul.mubr.msk.bf16.gmra.mrb[4].mxu1 %vm567_vm2, %v406_v11  ;;  %v425_v37 = vor.u32 %v423_v25, %v421_v27  ;;  %v429_v38 = vrot.slane %v427_v30, 1  ;;  %v435_v45 = vshll.u32 %v6913_v36, 16  ;;  %v422_v46 = vsel %vm370_vm1, %v417_v33, %v421_v27  ;;  %v6949_v11 = vld [vmem:[%s6806_s27 + $0x5c] sm:$0xff]  }
  0x26   : > { %5706 = vmatprep.mubr.msk.bf16.mxu1 %vm567_vm2, %v414_v23  ;;  %5903 = vmatmul.mubr.msk.bf16.gmra.mrb[4].mxu0 %vm567_vm2, %v2276_v26  ;;  %v2295_v47 = vor.u32 %v2293_v35, %v2291_v40  ;;  %v2299_v49 = vrot.slane %v2297_v41, 1  ;;  %v431_v50 = vshrl.u32 %v6898_v22, 16  ;;  %v439_v55 = vshrl.u32 %v6913_v36, 16  ;;  %v6956_v23 = vld [vmem:[%s6806_s27 + $0x64] sm:$0xff]  }
  0x27   : > { %5906 = vmatprep.mubr.msk.bf16.mxu0 %vm567_vm2, %v2284_v32  ;;  %v430_v54 = vsel %vm370_vm1, %v425_v37, %v429_v38  ;;  %v443_v56 = vshll.u32 %v6921_v43, 16  ;;  %v2305_v57 = vshll.u32 %v6918_v42, 16  ;;  %v2292_v59 = vsel %vm370_vm1, %v2287_v44, %v2291_v40  ;;  %v6966_v33 = vld [vmem:[%s6806_s27 + $0x60] sm:$0xff]  }
  0x28   : > { %v437_v60 = vrot.slane %v435_v45, 1  ;;  %v2301_v61 = vshrl.u32 %v6907_v31, 16  ;;  %v2300_v63 = vsel %vm370_vm1, %v2295_v47, %v2299_v49  ;;  %v433_v0 = vor.u32 %v431_v50, %v429_v38  ;;  %v6973_v45 = vld [vmem:[%s6806_s27 + $0x68] sm:$0xff]  }
  0x29   : > { %v2309_v1 = vshrl.u32 %v6918_v42, 16  ;;  %v2313_v2 = vshll.u32 %v6928_v51, 16  ;;  %v445_v6 = vrot.slane %v443_v56, 1  ;;  %v2307_v10 = vrot.slane %v2305_v57, 1  ;;  %v6979_v50 = vld [vmem:[%s6806_s27 + $0x6c] sm:$0xff]  }
  0x2a   : > { %v441_v5 = vor.u32 %v439_v55, %v437_v60  ;;  %v2303_v14 = vor.u32 %v2301_v61, %v2299_v49  ;;  %v451_v15 = vshll.u32 %v6938_v62, 16  ;;  %v438_v16 = vsel %vm370_vm1, %v433_v0, %v437_v60 }
  0x2b   : > { %v2311_v12 = vor.u32 %v2309_v1, %v2307_v10  ;;  %v2315_v17 = vrot.slane %v2313_v2, 1  ;;  %v447_v21 = vshrl.u32 %v6921_v43, 16  ;;  %v455_v25 = vshrl.u32 %v6938_v62, 16 }
  0x2c   : > { %v446_v24 = vsel %vm370_vm1, %v441_v5, %v445_v6  ;;  %v459_v26 = vshll.u32 %v6945_v7, 16  ;;  %v2321_v27 = vshll.u32 %v6949_v11, 16  ;;  %v2308_v29 = vsel %vm370_vm1, %v2303_v14, %v2307_v10 }
  0x2d   : > { %5707 = vmatmul.mubr.msk.bf16.gmra.mrb[8].mxu1 %vm567_vm2, %v422_v46  ;;  %v453_v30 = vrot.slane %v451_v15, 1  ;;  %v2317_v32 = vshrl.u32 %v6928_v51, 16  ;;  %v2316_v35 = vsel %vm370_vm1, %v2311_v12, %v2315_v17  ;;  %v449_v37 = vor.u32 %v447_v21, %v445_v6  ;;  %v6992_v6 = vld [vmem:[%s6806_s27 + $0x70] sm:$0xff]  }
  0x2e   : > { %5710 = vmatprep.mubr.msk.bf16.mxu1 %vm567_vm2, %v430_v54  ;;  %5907 = vmatmul.mubr.msk.bf16.gmra.mrb[8].mxu0 %vm567_vm2, %v2292_v59  ;;  %v2325_v38 = vshrl.u32 %v6949_v11, 16  ;;  %v2329_v40 = vshll.u32 %v6956_v23, 16  ;;  %v461_v44 = vrot.slane %v459_v26, 1  ;;  %v2323_v46 = vrot.slane %v2321_v27, 1 }
  0x2f   : > { %5910 = vmatprep.mubr.msk.bf16.mxu0 %vm567_vm2, %v2300_v63  ;;  %v457_v41 = vor.u32 %v455_v25, %v453_v30  ;;  %v2319_v47 = vor.u32 %v2317_v32, %v2315_v17  ;;  %v467_v49 = vshll.u32 %v6966_v33, 16  ;;  %v454_v54 = vsel %vm370_vm1, %v449_v37, %v453_v30  ;;  %v2785_v63 = vld [vmem:[%s6806_s27 + $0xc] sm:$0xe]  ;;  %v6998_v17 = vld [vmem:[%s6806_s27 + $0x78] sm:$0xff]  }
  0x30   : > { %v2327_v55 = vor.u32 %v2325_v38, %v2323_v46  ;;  %v2331_v56 = vrot.slane %v2329_v40, 1  ;;  %v463_v57 = vshrl.u32 %v6945_v7, 16  ;;  %v471_v60 = vshrl.u32 %v6966_v33, 16  ;;  %v7015_v40 = vld [vmem:[%s6806_s27 + $0x80] sm:$0xff]  }
  0x31   : > { %v462_v59 = vsel %vm370_vm1, %v457_v41, %v461_v44  ;;  %v475_v61 = vshll.u32 %v6973_v45, 16  ;;  %v2324_v0 = vsel %vm370_vm1, %v2319_v47, %v2323_v46  ;;  %v469_v1 = vrot.slane %v467_v49, 1  ;;  %v7020_v47 = vld [vmem:[%s6806_s27 + $0x88] sm:$0xff]  }
  0x32   : > { %v2333_v2 = vshrl.u32 %v6956_v23, 16  ;;  %v2337_v5 = vshll.u32 %v6979_v50, 16  ;;  %v2332_v10 = vsel %vm370_vm1, %v2327_v55, %v2331_v56  ;;  %v465_v14 = vor.u32 %v463_v57, %v461_v44 }
  0x33   : > { %v5317_v15 = vcombine.low %v2785_v63, %v6817_v13  ;;  %v477_v12 = vrot.slane %v475_v61, 1  ;;  %v483_v25 = vshll.u32 %v6992_v6, 16  ;;  %v2792_v13 = vrot.slane %v6822_v18, 1  ;;  %v7033_v63 = vld [vmem:[%s6806_s27 + $0x90] sm:$0xff]  }
  0x34   : > { %v2335_v21 = vor.u32 %v2333_v2, %v2331_v56  ;;  %v470_v26 = vsel %vm370_vm1, %v465_v14, %v469_v1  ;;  %v487_v32 = vshrl.u32 %v6992_v6, 16  ;;  %v2794_v49 = vrot.slane %v6832_v28, 1 }
  0x35   : > { %5711 = vmatmul.mubr.msk.bf16.gmra.mrb[12].mxu1 %vm567_vm2, %v438_v16  ;;  %v473_v16 = vor.u32 %v471_v60, %v469_v1  ;;  %v2791_v27 = vrot.slane %v5317_v15, 1  ;;  %v485_v38 = vrot.slane %v483_v25, 1  ;;  %v499_v55 = vshll.u32 %v7015_v40, 16  ;;  %v7043_v15 = vld [vmem:[%s6806_s27 + $0x98] sm:$0xff]  }
  0x36   : > { %5714 = vmatprep.mubr.msk.bf16.mxu1 %vm567_vm2, %v446_v24  ;;  %5911 = vmatmul.mubr.msk.bf16.gmra.mrb[12].mxu0 %vm567_vm2, %v2308_v29  ;;  %v7002_v24 = vrot.slane %v2337_v5, 1  ;;  %v479_v29 = vshrl.u32 %v6973_v45, 16  ;;  %v495_v57 = vshrl.u32 %v6998_v17, 16  ;;  %v507_v61 = vshll.u32 %v7020_v47, 16 }
  0x37   : > { %5914 = vmatprep.mubr.msk.bf16.mxu0 %vm567_vm2, %v2316_v35  ;;  %v478_v30 = vsel %vm370_vm1, %v473_v16, %v477_v12  ;;  %v491_v35 = vshll.u32 %v6998_v17, 16  ;;  %v2793_v18 = vsel %vm1151_vm3, %v2791_v27, %v2792_v13  ;;  %v489_v44 = vor.u32 %v487_v32, %v485_v38 }
  0x38   : > { %v2340_v37 = vsel %vm370_vm1, %v2335_v21, %v7002_v24  ;;  %v481_v41 = vor.u32 %v479_v29, %v477_v12  ;;  %v2795_v28 = vsel %vm1151_vm3, %v2792_v13, %v2794_v49  ;;  %v515_v14 = vshll.u32 %v7033_v63, 16  ;;  %v7057_v13 = vld [vmem:[%s7943_s1 + $0xe] sm:$0x3] }
  0x39   : > { %v493_v46 = vrot.slane %v491_v35, 1  ;;  %v2800_v12 = vrot.slane %v6880_v4, 1  ;;  %v511_v21 = vshrl.u32 %v7020_v47, 16  ;;  %v523_v27 = vshll.u32 %v7043_v15, 16 }
  0x3a   : > { %v486_v56 = vsel %vm370_vm1, %v481_v41, %v485_v38  ;;  %v517_v29 = vrot.slane %v515_v14, 1  ;;  %v7069_v38 = vld [vmem:[%s6806_s27 + $0xa8] sm:$0xff]  }
  0x3b   : > { %v494_v60 = vsel %vm370_vm1, %v489_v44, %v493_v46  ;;  %v497_v2 = vor.u32 %v495_v57, %v493_v46  ;;  %v2804_v46 = vrot.slane %v6907_v31, 1  ;;  %v7082_v57 = vld [vmem:[%s6806_s27 + $0xb0] sm:$0xff]   ;;  %v543_v14 = vshrl.u32 %v7069_v38, 16 }
  0x3d   : > { %5715 = vmatmul.mubr.msk.bf16.gmra.mrb[16].mxu1 %vm567_vm2, %v454_v54  ;;  %v2796_v54 = vrot.slane %v6837_v34, 1  ;;  %v3431_v34 = vsel %vm640_vm0, %v6860_v53, 0  ;;  %v2798_v53 = vrot.slane %v6855_v52, 1  ;;  %v7060_v52 = vld [vmem:[%s6806_s27 + $0xa0] sm:$0xff]  }
  0x3e   : > { %5718 = vmatprep.mubr.msk.bf16.mxu1 %vm567_vm2, %v462_v59  ;;  %5915 = vmatmul.mubr.msk.bf16.gmra.mrb[16].mxu0 %vm567_vm2, %v2324_v0  ;;  %v503_v59 = vshrl.u32 %v7015_v40, 16  ;;  %v501_v0 = vrot.slane %v499_v55, 1  ;;  %v531_v41 = vshll.u32 %v7060_v52, 16  ;;  %v535_v55 = vshrl.u32 %v7060_v52, 16 }
  0x3f   : > { %5918 = vmatprep.mubr.msk.bf16.mxu0 %vm567_vm2, %v2332_v10  ;;  %v2797_v1 = vsel %vm1151_vm3, %v2794_v49, %v2796_v54  ;;  %v509_v10 = vrot.slane %v507_v61, 1  ;;  %v2799_v4 = vsel %vm1151_vm3, %v2796_v54, %v2798_v53  ;;  %v527_v49 = vshrl.u32 %v7043_v15, 16 }
  0x40   : > { %v505_v5 = vor.u32 %v503_v59, %v501_v0  ;;  %v502_v16 = vsel %vm370_vm1, %v497_v2, %v501_v0  ;;  %v533_v59 = vrot.slane %v531_v41, 1  ;;  %v2806_v0 = vrot.slane %v6918_v42, 1 }
  0x41   : > { %v513_v32 = vor.u32 %v511_v21, %v509_v10  ;;  %v547_v2 = vshll.u32 %v7082_v57, 16 }
  0x42   : > { %v510_v25 = vsel %vm370_vm1, %v505_v5, %v509_v10  ;;  %v2807_v42 = vsel %vm1151_vm3, %v2804_v46, %v2806_v0 }
  0x43   : > { %v518_v44 = vsel %vm370_vm1, %v513_v32, %v517_v29  ;;  %v549_v21 = vrot.slane %v547_v2, 1 }
  0x45   : > { %5719 = vmatmul.mubr.msk.bf16.gmra.mrb[20].mxu1 %vm567_vm2, %v470_v26  ;;  %v519_v26 = vshrl.u32 %v7033_v63, 16 }
  0x46   : > { %5722 = vmatprep.mubr.msk.bf16.mxu1 %vm567_vm2, %v478_v30  ;;  %5919 = vmatmul.mubr.msk.bf16.gmra.mrb[20].mxu0 %vm567_vm2, %v2340_v37  ;;  %v2801_v30 = vsel %vm1151_vm3, %v2798_v53, %v2800_v12  ;;  %v525_v37 = vrot.slane %v523_v27, 1  ;;  %v551_v53 = vshrl.u32 %v7082_v57, 16 }
  0x47   : > { %5948 = vmatprep.mubr.msk.bf16.mxu0 %vm567_vm2, %v2793_v18  ;;  %v521_v35 = vor.u32 %v519_v26, %v517_v29  ;;  %v2802_v18 = vrot.slane %v6894_v20, 1  ;;  %v2810_v29 = vrot.slane %v6949_v11, 1  ;;  %v6607_v11 = vld [vmem:[%s6806_s27 + $0x74] sm:$0xff]  }
  0x48   : > { %v529_v61 = vor.u32 %v527_v49, %v525_v37  ;;  %v553_v27 = vor.u32 %v551_v53, %v549_v21  ;;  %v2816_v49 = vrot.slane %v6607_v11, 1  ;;  %v7166_v53 = vld [vmem:[%s6806_s27 + $0xa4] sm:$0xff]  }
  0x49   : > { %v526_v54 = vsel %vm370_vm1, %v521_v35, %v525_v37  ;;  %v2803_v20 = vsel %vm1151_vm3, %v2800_v12, %v2802_v18  ;;  %v2805_v31 = vsel %vm1151_vm3, %v2802_v18, %v2804_v46  ;;  %v7102_v12 = vld [vmem:[%s6806_s27 + $0xc0] ss:$0 sps:$4 sm:$0x11]   ;;  %v2814_v46 = vrot.slane %v6979_v50, 1  ;;  %v6621_v11 = vld [vmem:[%s6806_s27 + $0x28] sm:$0xff]  }
  0x4a   : > { %v534_v10 = vsel %vm370_vm1, %v529_v61, %v533_v59  ;;  %v563_v32 = vshll.u32 %v7102_v12, 16  ;;  %v1274_v50 = vsel %vm640_vm0, %v6844_v39, 0 }
  0x4c   : > { %v565_v41 = vrot.slane %v563_v32, 1 }
  0x4d   : > { %5723 = vmatmul.mubr.msk.bf16.gmra.mrb[24].mxu1 %vm567_vm2, %v486_v56  ;;  %v539_v56 = vshll.u32 %v7069_v38, 16 }
  0x4e   : > { %5726 = vmatprep.mubr.msk.bf16.mxu1 %vm567_vm2, %v494_v60  ;;  %5949 = vmatmul.mubr.msk.bf16.vlgmr.msra.gmra.mrb[0].mxu0 %vm567_vm2, %v2795_v28  ;;  %v7087_v60 = vld [vmem:[%s6806_s27 + $0xb8] sm:$0xff]   ;;  %v537_v28 = vor.u32 %v535_v55, %v533_v59  ;;  %v2817_v59 = vsel %vm1151_vm3, %v2814_v46, %v2816_v49 }
  0x4f   : > { %5997 = vmatpush3.bf16.msra.mxu0 %v3431_v34  ;;  %5952 = vmatprep.mubr.msk.bf16.mxu0 %vm567_vm2, %v2797_v1  ;;  %v541_v34 = vrot.slane %v539_v56, 1  ;;  %v2808_v1 = vrot.slane %v6928_v51, 1  ;;  %v555_v5 = vshll.u32 %v7087_v60, 16  ;;  %v6608_v55 = vld [vmem:[%s6806_s27 + $0x7c] sm:$0xff]  }
  0x50   : > { %6540 = vmatprep.subr.msk.bf16.mxu0 %vm640_vm0, %v7057_v13 }
  0x51   : > { %v557_v51 = vrot.slane %v555_v5, 1  ;;  %v545_v26 = vor.u32 %v543_v14, %v541_v34  ;;  %v2811_v18 = vsel %vm1151_vm3, %v2808_v1, %v2810_v29  ;;  %v7163_v14 = vld [vmem:[%s6806_s27 + $0x9c] sm:$0xff]  }
  0x53   : > { %v550_v35 = vsel %vm370_vm1, %v545_v26, %v549_v21  ;;  %v558_v37 = vsel %vm370_vm1, %v553_v27, %v557_v51  ;;  %v2828_v21 = vrot.slane %v7166_v53, 1 }
  0x55   : > { %5727 = vmatmul.mubr.msk.bf16.gmra.mrb[28].mxu1 %vm567_vm2, %v502_v16  ;;  %v542_v16 = vsel %vm370_vm1, %v537_v28, %v541_v34  ;;  %v7139_v28 = vld [vmem:[%s7943_s1 + $0x6] sm:$0x3]  ;;  %v6610_v34 = vld [vmem:[%s6806_s27 + $0x8c] sm:$0xff]  }
  0x56   : > { %5730 = vmatprep.mubr.msk.bf16.mxu1 %vm567_vm2, %v510_v25  ;;  %5953 = vmatmul.mubr.msk.bf16.gmra.mrb[4].mxu0 %vm567_vm2, %v2799_v4  ;;  %v2809_v25 = vsel %vm1151_vm3, %v2806_v0, %v2808_v1  ;;  %v2812_v4 = vrot.slane %v6956_v23, 1  ;;  %v6611_v0 = vld [vmem:[%s6806_s27 + $0x94] sm:$0xff]   ;;  %v2822_v2 = vrot.slane %v6610_v34, 1 }
  0x57   : > { %5956 = vmatprep.mubr.msk.bf16.mxu0 %vm567_vm2, %v2801_v30  ;;  %v559_v30 = vshrl.u32 %v7087_v60, 16  ;;  %v2824_v5 = vrot.slane %v6611_v0, 1  ;;  %v6632_v0 = vld [vmem:[%s6806_s27 + $0x78] sm:$0xff]  }
  0x58   : > { %v2813_v23 = vsel %vm1151_vm3, %v2810_v29, %v2812_v4  ;;  %v2815_v56 = vsel %vm1151_vm3, %v2812_v4, %v2814_v46  ;;  %v7195_v4 = vld [vmem:[%s6806_s27 + $0xbc] sm:$0xff]   ;;  %v6625_v46 = vld [vmem:[%s6806_s27 + $0x48] sm:$0xff]  }
  0x59   : > { %v2834_v32 = vrot.slane %v7195_v4, 1 }
  0x5d   : > { %5731 = vmatmul.mubr.msk.bf16.gmra.mrb[32].mxu1 %vm567_vm2, %v518_v44  ;;  %v561_v44 = vor.u32 %v559_v30, %v557_v51  ;;  %v7176_v51 = vld [vmem:[%s6806_s27 + $0xac] sm:$0xff]   ;;  %v7201_v30 = vld [vmem:[%s6806_s27 + $0xc4] sm:$0xff]  }
  0x5e   : > { %5734 = vmatprep.mubr.msk.bf16.mxu1 %vm567_vm2, %v526_v54  ;;  %5957 = vmatmul.mubr.msk.bf16.gmra.mrb[8].mxu0 %vm567_vm2, %v2803_v20  ;;  %v6609_v20 = vld [vmem:[%s6806_s27 + $0x84] sm:$0xff]   ;;  %v2830_v27 = vrot.slane %v7176_v51, 1 }
  0x5f   : > { %5960 = vmatprep.mubr.msk.bf16.mxu0 %vm567_vm2, %v2805_v31  ;;  %v566_v54 = vsel %vm370_vm1, %v561_v44, %v565_v41  ;;  %v2818_v31 = vrot.slane %v6608_v55, 1  ;;  %v2820_v61 = vrot.slane %v6609_v20, 1  ;;  %v6619_v41 = vld [vmem:[%s6806_s27 + $0x18] sm:$0xff]   ;;  %v6624_v44 = vld [vmem:[%s6806_s27 + $0x40] sm:$0xff]  }
  0x60   : > { %v1145_v55 = vld [vmem:[%s6806_s27] sm:$0xe] }
  0x61   : > { %v2819_v39 = vsel %vm1151_vm3, %v2816_v49, %v2818_v31  ;;  %v2821_v1 = vsel %vm1151_vm3, %v2818_v31, %v2820_v61  ;;  %v6626_v49 = vld [vmem:[%s6806_s27 + $0x50] sm:$0xff]  }
  0x65   : > { %5735 = vmatmul.mubr.msk.bf16.gmra.mrb[36].mxu1 %vm567_vm2, %v534_v10  ;;  %v7157_v10 = vld [vmem:[%s6806_s27 + $0x18] sm:$0xff]  }
  0x66   : > { %5738 = vmatprep.mubr.msk.bf16.mxu1 %vm567_vm2, %v542_v16  ;;  %5961 = vmatmul.mubr.msk.bf16.gmra.mrb[12].mxu0 %vm567_vm2, %v2807_v42  ;;  %v2825_v16 = vsel %vm1151_vm3, %v2822_v2, %v2824_v5  ;;  %v2826_v42 = vrot.slane %v7163_v14, 1 }
  0x67   : > { %5964 = vmatprep.mubr.msk.bf16.mxu0 %vm567_vm2, %v2809_v25 }
  0x68   : > { %v2827_v25 = vsel %vm1151_vm3, %v2824_v5, %v2826_v42  ;;  %v2829_v26 = vsel %vm1151_vm3, %v2826_v42, %v2828_v21  ;;  %v6633_v42 = vld [vmem:[%s6806_s27 + $0x80] sm:$0xff]  }
  0x6d   : > { %5739 = vmatmul.mubr.msk.bf16.gmra.mrb[40].mxu1 %vm567_vm2, %v550_v35  ;;  %v7211_v35 = vld [vmem:[%s6806_s27 + $0xcc] ss:$0 sps:$4 sm:$0x11]  }
  0x6e   : > { %5742 = vmatprep.mubr.msk.bf16.mxu1 %vm567_vm2, %v558_v37  ;;  %5965 = vmatmul.mubr.msk.bf16.gmra.mrb[16].mxu0 %vm567_vm2, %v2811_v18  ;;  %v2838_v18 = vrot.slane %v7211_v35, 1 }
  0x6f   : > { %5968 = vmatprep.mubr.msk.bf16.mxu0 %vm567_vm2, %v2813_v23  ;;  %v6622_v23 = vld [vmem:[%s6806_s27 + $0x30] sm:$0xff]  }
  0x75   : > { %5743 = vmatmul.mubr.msk.bf16.gmra.mrb[44].mxu1 %vm567_vm2, %v566_v54  ;;  %v6627_v54 = vld [vmem:[%s6806_s27 + $0x58] sm:$0xff]  }
  0x76   : > { %5748 = vmatprep.mubr.msk.bf16.mxu1 %vm567_vm2, %v6811_v9  ;;  %5969 = vmatmul.mubr.msk.bf16.gmra.mrb[20].mxu0 %vm567_vm2, %v2815_v56  ;;  %v7143_v9 = vld [vmem:[%s6806_s27 + $0x8] sm:$0xff]   ;;  %v6696_v56 = vld [vmem:[%s6806_s27 + $0x4] sm:$0xf] }
  0x77   : > { %5972 = vmatprep.mubr.msk.bf16.mxu0 %vm567_vm2, %v2817_v59  ;;  %v5192_v20 = vcombine.low %v1145_v55, %v6696_v56  ;;  %v6628_v59 = vld [vmem:[%s6806_s27 + $0x60] sm:$0xff]   ;;  %v7329_v55 = vld [vmem:[%s6806_s27 + $0x1c] sm:$0xf]  ;;  %v6639_v56 = vld [vmem:[%s6806_s27 + $0xb0] sm:$0xff]  }
  0x79   : > { %v1152_v31 = vrot.slane %v5192_v20, 1  ;;  %v6640_v20 = vld [vmem:[%s6806_s27 + $0xb8] sm:$0xff]  }
  0x7d   : > { %5749 = vmatmul.mubr.msk.bf16.vlgmr.msra.gmra.mrb[0].mxu1 %vm567_vm2, %v7143_v9 }
  0x7e   : > { %5797 = vmatpush3.bf16.msra.mxu1 %v1274_v50  ;;  %5752 = vmatprep.mubr.msk.bf16.mxu1 %vm567_vm2, %v6825_v19  ;;  %v2823_v19 = vsel %vm1151_vm3, %v2820_v61, %v2822_v2  ;;  %v6629_v50 = vld [vmem:[%s6806_s27 + $0x68] sm:$0xff]   ;;  %v1153_v61 = vrot.slane %v7143_v9, 1  ;;  %v1157_v9 = vrot.slane %v7157_v10, 1 }
  0x7f   : > { %6535 = vmatprep.subr.msk.bf16.mxu1 %vm640_vm0, %v7139_v28  ;;  %5973 = vmatmul.mubr.msk.bf16.gmra.mrb[24].mxu0 %vm567_vm2, %v2819_v39  ;;  %v6630_v39 = vld [vmem:[%s6806_s27 + $0x70] sm:$0xff]  }
  0x80   : > { %5976 = vmatprep.mubr.msk.bf16.mxu0 %vm567_vm2, %v2821_v1  ;;  %v1154_v34 = vsel %vm1151_vm3, %v1152_v31, %v1153_v61  ;;  %v6697_v1 = vld [vmem:[%s6806_s27 + $0x10] sm:$0xff]  }
  0x81   : > { %v1155_v2 = vrot.slane %v6697_v1, 1 }
  0x83   : > { %v1156_v5 = vsel %vm1151_vm3, %v1153_v61, %v1155_v2  ;;  %v6706_v61 = vld [vmem:[%s6806_s27 + $0x58] sm:$0xff]  }
  0x85   : > { %5753 = vmatmul.mubr.msk.bf16.gmra.mrb[4].mxu1 %vm567_vm2, %v7157_v10  ;;  %v6698_v10 = vld [vmem:[%s6806_s27 + $0x20] sm:$0xff]  }
  0x86   : > { %5756 = vmatprep.mubr.msk.bf16.mxu1 %vm567_vm2, %v6851_v48  ;;  %v7182_v48 = vld [vmem:[%s6806_s27 + $0xb4] sm:$0xff]  }
  0x87   : > { %5977 = vmatmul.mubr.msk.bf16.gmra.mrb[28].mxu0 %vm567_vm2, %v2823_v19  ;;  %v2832_v29 = vrot.slane %v7182_v48, 1  ;;  %v1792_v19 = vsel %vm640_vm0, %v7139_v28, 0  ;;  %v6700_v28 = vld [vmem:[%s7943_s1 + $0x8] sm:$0x3] }
  0x88   : > { %5980 = vmatprep.mubr.msk.bf16.mxu0 %vm567_vm2, %v2825_v16  ;;  %v1158_v16 = vsel %vm1151_vm3, %v1155_v2, %v1157_v9 }
  0x8d   : > { %5757 = vmatmul.mubr.msk.bf16.gmra.mrb[8].mxu1 %vm567_vm2, %v6866_v58  ;;  %v2831_v58 = vsel %vm1151_vm3, %v2828_v21, %v2830_v27  ;;  %v6634_v21 = vld [vmem:[%s6806_s27 + $0x88] sm:$0xff]  }
  0x8e   : > { %5760 = vmatprep.mubr.msk.bf16.mxu1 %vm567_vm2, %v6885_v8  ;;  %v2833_v8 = vsel %vm1151_vm3, %v2830_v27, %v2832_v29 }
  0x8f   : > { %5981 = vmatmul.mubr.msk.bf16.gmra.mrb[32].mxu0 %vm567_vm2, %v2827_v25  ;;  %v1159_v25 = vrot.slane %v6698_v10, 1 }
  0x90   : > { %5984 = vmatprep.mubr.msk.bf16.mxu0 %vm567_vm2, %v2829_v26  ;;  %v6699_v26 = vld [vmem:[%s6806_s27 + $0x28] sm:$0xff]  }
  0x91   : > { %v1161_v27 = vrot.slane %v6699_v26, 1  ;;  %v7354_v26 = vld [vmem:[%s6806_s27 + $0x28] sm:$0xff]  }
  0x95   : > { %5761 = vmatmul.mubr.msk.bf16.gmra.mrb[12].mxu1 %vm567_vm2, %v6898_v22  ;;  %v2836_v22 = vrot.slane %v7201_v30, 1 }
  0x96   : > { %5764 = vmatprep.mubr.msk.bf16.mxu1 %vm567_vm2, %v6913_v36  ;;  %v2835_v36 = vsel %vm1151_vm3, %v2832_v29, %v2834_v32  ;;  %v1160_v29 = vsel %vm1151_vm3, %v1157_v9, %v1159_v25  ;;  %v6641_v9 = vld [vmem:[%s6806_s27 + $0xc0] sm:$0xff]  }
  0x97   : > { %5985 = vmatmul.mubr.msk.bf16.gmra.mrb[36].mxu0 %vm567_vm2, %v2831_v58  ;;  %v2837_v37 = vsel %vm1151_vm3, %v2834_v32, %v2836_v22  ;;  %v1162_v58 = vsel %vm1151_vm3, %v1159_v25, %v1161_v27  ;;  %v6636_v32 = vld [vmem:[%s6806_s27 + $0x98] sm:$0xff]   ;;  %v1177_v25 = vrot.slane %v6973_v45, 1 }
  0x98   : > { %5988 = vmatprep.mubr.msk.bf16.mxu0 %vm567_vm2, %v2833_v8  ;;  %v6635_v8 = vld [vmem:[%s6806_s27 + $0x90] sm:$0xff]  }
  0x9d   : > { %5765 = vmatmul.mubr.msk.bf16.gmra.mrb[16].mxu1 %vm567_vm2, %v6921_v43  ;;  %v2839_v43 = vsel %vm1151_vm3, %v2836_v22, %v2838_v18  ;;  %v6701_v22 = vld [vmem:[%s6806_s27 + $0x30] sm:$0xff]  }
  0x9e   : > { %5768 = vmatprep.mubr.msk.bf16.mxu1 %vm567_vm2, %v6938_v62  ;;  %v6620_v62 = vld [vmem:[%s6806_s27 + $0x20] sm:$0xff]  }
  0x9f   : > { %5989 = vmatmul.mubr.msk.bf16.gmra.mrb[40].mxu0 %vm567_vm2, %v2835_v36  ;;  %v1163_v36 = vrot.slane %v6701_v22, 1  ;;  %v3896_v22 = vshll.u32 %v7354_v26, 16 }
  0xa0   : > { %5992 = vmatprep.mubr.msk.bf16.mxu0 %vm567_vm2, %v2837_v37  ;;  %v6702_v37 = vld [vmem:[%s6806_s27 + $0x38] sm:$0xff]  }
  0xa1   : > { %v1165_v18 = vrot.slane %v6702_v37, 1  ;;  %v1179_v37 = vrot.slane %v6992_v6, 1 }
  0xa5   : > { %5769 = vmatmul.mubr.msk.bf16.gmra.mrb[20].mxu1 %vm567_vm2, %v6945_v7  ;;  %v4149_v7 = vsel %vm640_vm0, %v7057_v13, 0  ;;  %v6623_v13 = vld [vmem:[%s6806_s27 + $0x38] sm:$0xff]  }
  0xa6   : > { %5772 = vmatprep.mubr.msk.bf16.mxu1 %vm567_vm2, %v6966_v33  ;;  %v7238_v33 = vld [vmem:[%s7943_s1 + $0x10] sm:$0x3] }
  0xa7   : > { %5993 = vmatmul.mubr.msk.bf16.gmra.mrb[44].mxu0 %vm567_vm2, %v2839_v43  ;;  %v1164_v43 = vsel %vm1151_vm3, %v1161_v27, %v1163_v36 }
  0xa8   : > { %5998 = vmatprep.mubr.msk.bf16.mxu0 %vm567_vm2, %v6619_v41  ;;  %v1166_v41 = vsel %vm1151_vm3, %v1163_v36, %v1165_v18 }
  0xad   : > { %5773 = vmatmul.mubr.msk.bf16.gmra.mrb[24].mxu1 %vm567_vm2, %v6973_v45 }
  0xae   : > { %5776 = vmatprep.mubr.msk.bf16.mxu1 %vm567_vm2, %v6992_v6  ;;  %v7379_v6 = vld [vmem:[%s6806_s27 + $0x40] sm:$0xff]  }
  0xaf   : > { %5999 = vmatmul.mubr.msk.bf16.vlgmr.msra.gmra.mrb[0].mxu0 %vm567_vm2, %v6620_v62  ;;  %v6637_v62 = vld [vmem:[%s6806_s27 + $0xa0] sm:$0xff]  }
  0xb0   : > { %6047 = vmatpush3.bf16.msra.mxu0 %v4149_v7  ;;  %6002 = vmatprep.mubr.msk.bf16.mxu0 %vm567_vm2, %v6621_v11  ;;  %v6638_v11 = vld [vmem:[%s6806_s27 + $0xa8] sm:$0xff]   ;;  %v6703_v7 = vld [vmem:[%s6806_s27 + $0x40] sm:$0xff]  }
  0xb1   : > { %6541 = vmatprep.subr.msk.bf16.mxu0 %vm640_vm0, %v7238_v33 }
  0xb5   : > { %5777 = vmatmul.mubr.msk.bf16.gmra.mrb[28].mxu1 %vm567_vm2, %v6998_v17 }
  0xb6   : > { %5780 = vmatprep.mubr.msk.bf16.mxu1 %vm567_vm2, %v7015_v40 }
  0xb7   : > { %6003 = vmatmul.mubr.msk.bf16.gmra.mrb[4].mxu0 %vm567_vm2, %v6622_v23  ;;  %v1167_v23 = vrot.slane %v6703_v7, 1 }
  0xb8   : > { %6006 = vmatprep.mubr.msk.bf16.mxu0 %vm567_vm2, %v6623_v13  ;;  %v6704_v13 = vld [vmem:[%s6806_s27 + $0x48] sm:$0xff]  }
  0xbd   : > { %5781 = vmatmul.mubr.msk.bf16.gmra.mrb[32].mxu1 %vm567_vm2, %v7020_v47 }
  0xbe   : > { %5784 = vmatprep.mubr.msk.bf16.mxu1 %vm567_vm2, %v7033_v63 }
  0xbf   : > { %6007 = vmatmul.mubr.msk.bf16.gmra.mrb[8].mxu0 %vm567_vm2, %v6624_v44  ;;  %v1169_v44 = vrot.slane %v6704_v13, 1 }
  0xc0   : > { %6010 = vmatprep.mubr.msk.bf16.mxu0 %vm567_vm2, %v6625_v46  ;;  %v1168_v46 = vsel %vm1151_vm3, %v1165_v18, %v1167_v23  ;;  %v3900_v18 = vshrl.u32 %v7354_v26, 16 }
  0xc5   : > { %5785 = vmatmul.mubr.msk.bf16.gmra.mrb[36].mxu1 %vm567_vm2, %v7043_v15 }
  0xc6   : > { %5788 = vmatprep.mubr.msk.bf16.mxu1 %vm567_vm2, %v7060_v52 }
  0xc7   : > { %6011 = vmatmul.mubr.msk.bf16.gmra.mrb[12].mxu0 %vm567_vm2, %v6626_v49  ;;  %v1170_v49 = vsel %vm1151_vm3, %v1167_v23, %v1169_v44  ;;  %v1180_v23 = vsel %vm1151_vm3, %v1177_v25, %v1179_v37 }
  0xc8   : > { %6014 = vmatprep.mubr.msk.bf16.mxu0 %vm567_vm2, %v6627_v54  ;;  %v3706_v54 = vld [vmem:[%s6806_s27 + $0x18] sm:$0xf] }
  0xc9   : > { %v5392_v31 = vcombine.low %v3706_v54, %v7329_v55  ;;  %v4552_v54 = vsel %vm640_vm0, %v7238_v33, 0 }
  0xcb   : > { %v3883_v1 = vshll.u32 %v5392_v31, 16 }
  0xcd   : > { %5789 = vmatmul.mubr.msk.bf16.gmra.mrb[40].mxu1 %vm567_vm2, %v7069_v38 }
  0xce   : > { %5792 = vmatprep.mubr.msk.bf16.mxu1 %vm567_vm2, %v7082_v57 }
  0xcf   : > { %6015 = vmatmul.mubr.msk.bf16.gmra.mrb[16].mxu0 %vm567_vm2, %v6628_v59  ;;  %v6705_v59 = vld [vmem:[%s6806_s27 + $0x50] sm:$0xff]  }
  0xd0   : > { %6018 = vmatprep.mubr.msk.bf16.mxu0 %vm567_vm2, %v6629_v50  ;;  %v1171_v50 = vrot.slane %v6705_v59, 1  ;;  %v1183_v59 = vrot.slane %v7015_v40, 1 }
  0xd5   : > { %5793 = vmatmul.mubr.msk.bf16.gmra.mrb[44].mxu1 %vm567_vm2, %v7087_v60 }
  0xd6   : > { %5798 = vmatprep.mubr.msk.bf16.mxu1 %vm567_vm2, %v1154_v34  ;;  %v1173_v34 = vrot.slane %v6706_v61, 1  ;;  %v1185_v61 = vrot.slane %v7020_v47, 1 }
  0xd7   : > { %6019 = vmatmul.mubr.msk.bf16.gmra.mrb[20].mxu0 %vm567_vm2, %v6630_v39  ;;  %v1172_v39 = vsel %vm1151_vm3, %v1169_v44, %v1171_v50 }
  0xd8   : > { %6022 = vmatprep.mubr.msk.bf16.mxu0 %vm567_vm2, %v6632_v0  ;;  %v7342_v0 = vld [vmem:[%s6806_s27 + $0x20] sm:$0xff]   ;;  %v1174_v2 = vsel %vm1151_vm3, %v1171_v50, %v1173_v34 }
  0xd9   : > { %v3888_v10 = vshll.u32 %v7342_v0, 16  ;;  %v3892_v45 = vshrl.u32 %v7342_v0, 16 }
  0xdd   : > { %5799 = vmatmul.mubr.msk.bf16.vlgmr.msra.gmra.mrb[0].mxu1 %vm567_vm2, %v1156_v5  ;;  %v6642_v5 = vld [vmem:[%s6806_s27 + $0xc8] sm:$0xff]  }
  0xde   : > { %5847 = vmatpush3.bf16.msra.mxu1 %v1792_v19  ;;  %5802 = vmatprep.mubr.msk.bf16.mxu1 %vm567_vm2, %v1158_v16  ;;  %v6707_v19 = vld [vmem:[%s6806_s27 + $0x60] sm:$0xff]  }
  0xdf   : > { %6537 = vmatprep.subr.msk.bf16.mxu1 %vm640_vm0, %v6700_v28  ;;  %6023 = vmatmul.mubr.msk.bf16.gmra.mrb[24].mxu0 %vm567_vm2, %v6633_v42  ;;  %v1175_v16 = vrot.slane %v6707_v19, 1  ;;  %v3881_v42 = vshrl.u32 %v5392_v31, 16  ;;  %v3920_v31 = vshll.u32 %v7379_v6, 16 }
  0xe0   : > { %6026 = vmatprep.mubr.msk.bf16.mxu0 %vm567_vm2, %v6634_v21  ;;  %v3885_v21 = vrot.slane %v3883_v1, 1 }
  0xe1   : > { %v1176_v27 = vsel %vm1151_vm3, %v1173_v34, %v1175_v16  ;;  %v3922_v40 = vrot.slane %v3920_v31, 1  ;;  %v1195_v31 = vrot.slane %v7082_v57, 1  ;;  %v7461_v57 = vld [vmem:[%s6806_s27 + $0x80] sm:$0xff]  }
  0xe2   : > { %v3886_v28 = vor.u32 %v3885_v21, %v3881_v42  ;;  %v1187_v21 = vrot.slane %v7033_v63, 1  ;;  %v7421_v63 = vld [vmem:[%s6806_s27 + $0x60] sm:$0xff]  }
  0xe5   : > { %5803 = vmatmul.mubr.msk.bf16.gmra.mrb[4].mxu1 %vm567_vm2, %v1160_v29  ;;  %v3890_v29 = vrot.slane %v3888_v10, 1 }
  0xe6   : > { %5806 = vmatprep.mubr.msk.bf16.mxu1 %vm567_vm2, %v1162_v58  ;;  %v7359_v58 = vld [vmem:[%s6806_s27 + $0x30] sm:$0xff]  }
  0xe7   : > { %6027 = vmatmul.mubr.msk.bf16.gmra.mrb[28].mxu0 %vm567_vm2, %v6635_v8  ;;  %v1178_v8 = vsel %vm1151_vm3, %v1175_v16, %v1177_v25  ;;  %v3891_v36 = vsel %vm370_vm1, %v3886_v28, %v3890_v29  ;;  %v3894_v7 = vor.u32 %v3892_v45, %v3890_v29  ;;  %v3924_v16 = vshrl.u32 %v7379_v6, 16  ;;  %v7416_v29 = vld [vmem:[%s6806_s27 + $0x58] sm:$0xff]  }
  0xe8   : > { %6030 = vmatprep.mubr.msk.bf16.mxu0 %vm567_vm2, %v6636_v32  ;;  %v6643_v32 = vld [vmem:[%s6806_s27 + $0xd0] sm:$0xff]  }
  0xed   : > { %5807 = vmatmul.mubr.msk.bf16.gmra.mrb[8].mxu1 %vm567_vm2, %v1164_v43  ;;  %v3904_v43 = vshll.u32 %v7359_v58, 16 }
  0xee   : > { %5810 = vmatprep.mubr.msk.bf16.mxu1 %vm567_vm2, %v1166_v41  ;;  %v1181_v41 = vrot.slane %v6998_v17, 1 }
  0xef   : > { %6031 = vmatmul.mubr.msk.bf16.gmra.mrb[32].mxu0 %vm567_vm2, %v6637_v62  ;;  %v3898_v62 = vrot.slane %v3896_v22, 1  ;;  %v3906_v44 = vrot.slane %v3904_v43, 1 }
  0xf0   : > { %6034 = vmatprep.mubr.msk.bf16.mxu0 %vm567_vm2, %v6638_v11  ;;  %v7374_v11 = vld [vmem:[%s6806_s27 + $0x38] sm:$0xff]   ;;  %v1184_v1 = vsel %vm1151_vm3, %v1181_v41, %v1183_v59 }
  0xf1   : > { %v3902_v13 = vor.u32 %v3900_v18, %v3898_v62  ;;  %v3899_v17 = vsel %vm370_vm1, %v3894_v7, %v3898_v62  ;;  %v3916_v50 = vshrl.u32 %v7374_v11, 16  ;;  %v3948_v62 = vshrl.u32 %v7416_v29, 16 }
  0xf2   : > { %v3952_v7 = vshll.u32 %v7421_v63, 16 }
  0xf5   : > { %5811 = vmatmul.mubr.msk.bf16.gmra.mrb[12].mxu1 %vm567_vm2, %v1168_v46  ;;  %v1182_v46 = vsel %vm1151_vm3, %v1179_v37, %v1181_v41  ;;  %v3944_v37 = vshll.u32 %v7416_v29, 16  ;;  %v1191_v41 = vrot.slane %v7060_v52, 1  ;;  %v7441_v52 = vld [vmem:[%s6806_s27 + $0x70] sm:$0xff]  }
  0xf6   : > { %5814 = vmatprep.mubr.msk.bf16.mxu1 %vm567_vm2, %v1170_v49  ;;  %v3912_v49 = vshll.u32 %v7374_v11, 16 }
  0xf7   : > { %6035 = vmatmul.mubr.msk.bf16.gmra.mrb[36].mxu0 %vm567_vm2, %v6639_v56  ;;  %v3908_v56 = vshrl.u32 %v7359_v58, 16 }
  0xf8   : > { %6038 = vmatprep.mubr.msk.bf16.mxu0 %vm567_vm2, %v6640_v20  ;;  %v3907_v20 = vsel %vm370_vm1, %v3902_v13, %v3906_v44  ;;  %v3914_v34 = vrot.slane %v3912_v49, 1  ;;  %v3946_v13 = vrot.slane %v3944_v37, 1 }
  0xf9   : > { %v3910_v33 = vor.u32 %v3908_v56, %v3906_v44  ;;  %v7436_v44 = vld [vmem:[%s6806_s27 + $0x68] sm:$0xff]  }
  0xfb   : > { %v3915_v19 = vsel %vm370_vm1, %v3910_v33, %v3914_v34  ;;  %v1197_v33 = vrot.slane %v7087_v60, 1 }
  0xfd   : > { %5815 = vmatmul.mubr.msk.bf16.gmra.mrb[16].mxu1 %vm567_vm2, %v1172_v39  ;;  %v7396_v39 = vld [vmem:[%s6806_s27 + $0x48] sm:$0xff]  }
  0xfe   : > { %5818 = vmatprep.mubr.msk.bf16.mxu1 %vm567_vm2, %v1174_v2  ;;  %v3918_v2 = vor.u32 %v3916_v50, %v3914_v34  ;;  %v3928_v47 = vshll.u32 %v7396_v39, 16  ;;  %v3932_v10 = vshrl.u32 %v7396_v39, 16  ;;  %v3968_v34 = vshll.u32 %v7441_v52, 16 }
  0xff   : > { %6039 = vmatmul.mubr.msk.bf16.gmra.mrb[40].mxu0 %vm567_vm2, %v6641_v9  ;;  %v7401_v9 = vld [vmem:[%s6806_s27 + $0x50] sm:$0xff]  }
 0x100   : > { %6042 = vmatprep.mubr.msk.bf16.mxu0 %vm567_vm2, %v6642_v5  ;;  %v1186_v5 = vsel %vm1151_vm3, %v1183_v59, %v1185_v61  ;;  %v3923_v42 = vsel %vm370_vm1, %v3918_v2, %v3922_v40  ;;  %v3936_v25 = vshll.u32 %v7401_v9, 16  ;;  %v3930_v28 = vrot.slane %v3928_v47, 1  ;;  %v7456_v2 = vld [vmem:[%s6806_s27 + $0x78] sm:$0xff]  }
 0x101   : > { %v3940_v18 = vshrl.u32 %v7401_v9, 16  ;;  %v3956_v59 = vshrl.u32 %v7421_v63, 16  ;;  %v3976_v60 = vshll.u32 %v7456_v2, 16 }
 0x102   : > { %v3934_v22 = vor.u32 %v3932_v10, %v3930_v28  ;;  %v3938_v45 = vrot.slane %v3936_v25, 1  ;;  %v1199_v25 = vrot.slane %v7102_v12, 1  ;;  %v7481_v12 = vld [vmem:[%s6806_s27 + $0x90] sm:$0xff]  }
 0x104   : > { %v3939_v43 = vsel %vm370_vm1, %v3934_v22, %v3938_v45 }
 0x105   : > { %5819 = vmatmul.mubr.msk.bf16.gmra.mrb[20].mxu1 %vm567_vm2, %v1176_v27  ;;  %v1189_v27 = vrot.slane %v7043_v15, 1 }
 0x106   : > { %5822 = vmatprep.mubr.msk.bf16.mxu1 %vm567_vm2, %v1178_v8  ;;  %v3926_v8 = vor.u32 %v3924_v16, %v3922_v40  ;;  %v1198_v16 = vsel %vm1151_vm3, %v1195_v31, %v1197_v33 }
 0x107   : > { %6043 = vmatmul.mubr.msk.bf16.gmra.mrb[44].mxu0 %vm567_vm2, %v6643_v32  ;;  %v1188_v32 = vsel %vm1151_vm3, %v1185_v61, %v1187_v21  ;;  %v1192_v49 = vsel %vm1151_vm3, %v1189_v27, %v1191_v41  ;;  %v3964_v61 = vshrl.u32 %v7436_v44, 16 }
 0x108   : > { %6048 = vmatprep.mubr.msk.bf16.mxu0 %vm567_vm2, %v3891_v36  ;;  %v1190_v36 = vsel %vm1151_vm3, %v1187_v21, %v1189_v27  ;;  %v3931_v15 = vsel %vm370_vm1, %v3926_v8, %v3930_v28  ;;  %v3972_v21 = vshrl.u32 %v7441_v52, 16  ;;  %v3980_v27 = vshrl.u32 %v7456_v2, 16 }
 0x109   : > { %v3984_v28 = vshll.u32 %v7461_v57, 16  ;;  %v3978_v8 = vrot.slane %v3976_v60, 1  ;;  %v7518_v60 = vld [vmem:[%s6806_s27 + $0xb0] sm:$0xff]  }
 0x10b   : > { %v3982_v37 = vor.u32 %v3980_v27, %v3978_v8 }
 0x10d   : > { %5823 = vmatmul.mubr.msk.bf16.gmra.mrb[24].mxu1 %vm567_vm2, %v1180_v23  ;;  %v1193_v23 = vrot.slane %v7069_v38, 1 }
 0x10e   : > { %5826 = vmatprep.mubr.msk.bf16.mxu1 %vm567_vm2, %v1182_v46  ;;  %v3942_v46 = vor.u32 %v3940_v18, %v3938_v45  ;;  %v1200_v45 = vsel %vm1151_vm3, %v1197_v33, %v1199_v25 }
 0x10f   : > { %6049 = vmatmul.mubr.msk.bf16.vlgmr.msra.gmra.mrb[0].mxu0 %vm567_vm2, %v3899_v17  ;;  %v3950_v17 = vor.u32 %v3948_v62, %v3946_v13  ;;  %v1194_v56 = vsel %vm1151_vm3, %v1191_v41, %v1193_v23  ;;  %v3988_v41 = vshrl.u32 %v7461_v57, 16 }
 0x110   : > { %6097 = vmatpush3.bf16.msra.mxu0 %v4552_v54  ;;  %6052 = vmatprep.mubr.msk.bf16.mxu0 %vm567_vm2, %v3907_v20  ;;  %v3954_v54 = vrot.slane %v3952_v7, 1  ;;  %v3960_v20 = vshll.u32 %v7436_v44, 16  ;;  %v3947_v38 = vsel %vm370_vm1, %v3942_v46, %v3946_v13  ;;  %v7493_v46 = vld [vmem:[%s6806_s27 + $0x98] sm:$0xff]  }
 0x112   : > { %v3955_v50 = vsel %vm370_vm1, %v3950_v17, %v3954_v54  ;;  %v3958_v40 = vor.u32 %v3956_v59, %v3954_v54  ;;  %v6661_v54 = vld [vmem:[%s6806_s27 + $0x1c] sm:$0xff]   ;;  %v4008_v59 = vshll.u32 %v7493_v46, 16 }
 0x115   : > { %5827 = vmatmul.mubr.msk.bf16.gmra.mrb[28].mxu1 %vm567_vm2, %v1184_v1  ;;  %v3962_v1 = vrot.slane %v3960_v20, 1 }
 0x116   : > { %5830 = vmatprep.mubr.msk.bf16.mxu1 %vm567_vm2, %v1186_v5  ;;  %v1196_v5 = vsel %vm1151_vm3, %v1193_v23, %v1195_v31  ;;  %v4000_v23 = vshll.u32 %v7481_v12, 16  ;;  %v4004_v31 = vshrl.u32 %v7481_v12, 16 }
 0x117   : > { %6053 = vmatmul.mubr.msk.bf16.gmra.mrb[4].mxu0 %vm567_vm2, %v3915_v19  ;;  %v3966_v47 = vor.u32 %v3964_v61, %v3962_v1  ;;  %v3970_v19 = vrot.slane %v3968_v34, 1  ;;  %v4012_v34 = vshrl.u32 %v7493_v46, 16 }
 0x118   : > { %6056 = vmatprep.mubr.msk.bf16.mxu0 %vm567_vm2, %v3923_v42  ;;  %v3963_v42 = vsel %vm370_vm1, %v3958_v40, %v3962_v1  ;;  %v4002_v20 = vrot.slane %v4000_v23, 1  ;;  %v4010_v1 = vrot.slane %v4008_v59, 1  ;;  %v7512_v40 = vld [vmem:[%s6806_s27 + $0xa8] sm:$0xff]  }
 0x119   : > { %v3971_v10 = vsel %vm370_vm1, %v3966_v47, %v3970_v19  ;;  %v3974_v22 = vor.u32 %v3972_v21, %v3970_v19  ;;  %v6665_v19 = vld [vmem:[%s6806_s27 + $0x2c] sm:$0xff]   ;;  %v4028_v27 = vshrl.u32 %v7512_v40, 16 }
 0x11a   : > { %v4006_v47 = vor.u32 %v4004_v31, %v4002_v20  ;;  %v6673_v59 = vld [vmem:[%s6806_s27 + $0x4c] sm:$0xff]  }
 0x11c   : > { %v4011_v21 = vsel %vm370_vm1, %v4006_v47, %v4010_v1 }
 0x11d   : > { %5831 = vmatmul.mubr.msk.bf16.gmra.mrb[32].mxu1 %vm567_vm2, %v1188_v32  ;;  %v7475_v32 = vld [vmem:[%s6806_s27 + $0x88] sm:$0xff]  }
 0x11e   : > { %5834 = vmatprep.mubr.msk.bf16.mxu1 %vm567_vm2, %v1190_v36  ;;  %v6657_v36 = vld [vmem:[%s6806_s27 + $0xc] sm:$0xff]   ;;  %v3992_v18 = vshll.u32 %v7475_v32, 16  ;;  %v3996_v7 = vshrl.u32 %v7475_v32, 16 }
 0x11f   : > { %6057 = vmatmul.mubr.msk.bf16.gmra.mrb[8].mxu0 %vm567_vm2, %v3931_v15  ;;  %v3986_v15 = vrot.slane %v3984_v28, 1  ;;  %v4032_v28 = vshll.u32 %v7518_v60, 16 }
 0x120   : > { %6060 = vmatprep.mubr.msk.bf16.mxu0 %vm567_vm2, %v3939_v43  ;;  %v3979_v43 = vsel %vm370_vm1, %v3974_v22, %v3978_v8  ;;  %v3994_v13 = vrot.slane %v3992_v18, 1  ;;  %v7530_v22 = vld [vmem:[%s6806_s27 + $0xb8] sm:$0xff]  }
 0x121   : > { %v3987_v62 = vsel %vm370_vm1, %v3982_v37, %v3986_v15  ;;  %v3990_v17 = vor.u32 %v3988_v41, %v3986_v15  ;;  %v6669_v37 = vld [vmem:[%s6806_s27 + $0x3c] sm:$0xff]   ;;  %v4034_v18 = vrot.slane %v4032_v28, 1  ;;  %v4040_v41 = vshll.u32 %v7530_v22, 16  ;;  %v4424_v28 = vld [vmem:[%s6806_s27 + $0x18] sm:$0xe] }
 0x125   : > { %5835 = vmatmul.mubr.msk.bf16.gmra.mrb[36].mxu1 %vm567_vm2, %v1192_v49  ;;  %v6659_v49 = vld [vmem:[%s6806_s27 + $0x14] sm:$0xff]  }
 0x126   : > { %5838 = vmatprep.mubr.msk.bf16.mxu1 %vm567_vm2, %v1194_v56  ;;  %v3998_v56 = vor.u32 %v3996_v7, %v3994_v13  ;;  %v4036_v7 = vshrl.u32 %v7518_v60, 16 }
 0x127   : > { %6061 = vmatmul.mubr.msk.bf16.gmra.mrb[12].mxu0 %vm567_vm2, %v3947_v38  ;;  %v7499_v38 = vld [vmem:[%s6806_s27 + $0xa0] sm:$0xff]  }
 0x128   : > { %6064 = vmatprep.mubr.msk.bf16.mxu0 %vm567_vm2, %v3955_v50  ;;  %v3995_v50 = vsel %vm370_vm1, %v3990_v17, %v3994_v13  ;;  %v4003_v61 = vsel %vm370_vm1, %v3998_v56, %v4002_v20  ;;  %v4016_v33 = vshll.u32 %v7499_v38, 16  ;;  %v4044_v13 = vshrl.u32 %v7530_v22, 16  ;;  %v6671_v56 = vld [vmem:[%s6806_s27 + $0x44] sm:$0xff]  }
 0x129   : > { %v4042_v17 = vrot.slane %v4040_v41, 1  ;;  %v4038_v20 = vor.u32 %v4036_v7, %v4034_v18  ;;  %v6681_v7 = vld [vmem:[%s6806_s27 + $0x6c] sm:$0xff]  }
 0x12d   : > { %5839 = vmatmul.mubr.msk.bf16.gmra.mrb[40].mxu1 %vm567_vm2, %v1196_v5  ;;  %v6663_v5 = vld [vmem:[%s6806_s27 + $0x24] sm:$0xff]  }
 0x12e   : > { %5842 = vmatprep.mubr.msk.bf16.mxu1 %vm567_vm2, %v1198_v16  ;;  %v4018_v16 = vrot.slane %v4016_v33, 1  ;;  %v4043_v33 = vsel %vm370_vm1, %v4038_v20, %v4042_v17  ;;  %v6684_v20 = vld [vmem:[%s6806_s27 + $0x7c] sm:$0xff]  }
 0x12f   : > { %6065 = vmatmul.mubr.msk.bf16.gmra.mrb[16].mxu0 %vm567_vm2, %v3963_v42  ;;  %v4024_v42 = vshll.u32 %v7512_v40, 16 }
 0x130   : > { %6068 = vmatprep.mubr.msk.bf16.mxu0 %vm567_vm2, %v3971_v10  ;;  %v4020_v10 = vshrl.u32 %v7499_v38, 16 }
 0x131   : > { %v4026_v8 = vrot.slane %v4024_v42, 1 }
 0x133   : > { %v4030_v15 = vor.u32 %v4028_v27, %v4026_v8 }
 0x135   : > { %5843 = vmatmul.mubr.msk.bf16.gmra.mrb[44].mxu1 %vm567_vm2, %v1200_v45  ;;  %v6667_v45 = vld [vmem:[%s6806_s27 + $0x34] sm:$0xff]   ;;  %v4035_v23 = vsel %vm370_vm1, %v4030_v15, %v4034_v18  ;;  %v5442_v15 = vcombine.low %v4424_v28, %v7329_v55  ;;  %v6679_v18 = vld [vmem:[%s6806_s27 + $0x64] sm:$0xff]   ;;  %v4449_v28 = vrot.slane %v7436_v44, 1 }
 0x136   : > { %5848 = vmatprep.mubr.msk.bf16.mxu1 %vm567_vm2, %v6657_v36  ;;  %v4022_v36 = vor.u32 %v4020_v10, %v4018_v16  ;;  %v6677_v10 = vld [vmem:[%s6806_s27 + $0x5c] sm:$0xff]  }
 0x137   : > { %6069 = vmatmul.mubr.msk.bf16.gmra.mrb[20].mxu0 %vm567_vm2, %v3979_v43  ;;  %v7536_v43 = vld [vmem:[%s6806_s27 + $0xc0] sm:$0xff]  }
 0x138   : > { %6072 = vmatprep.mubr.msk.bf16.mxu0 %vm567_vm2, %v3987_v62  ;;  %v4027_v62 = vsel %vm370_vm1, %v4022_v36, %v4026_v8 }
 0x13d   : > { %5849 = vmatmul.mubr.msk.bf16.vlgmr.msra.gmra.mrb[0].mxu1 %vm567_vm2, %v6659_v49  ;;  %v4048_v49 = vshll.u32 %v7536_v43, 16 }
 0x13e   : > { %6147 = vmatpush3.bf16.msra.mxu1 %v6789_v3  ;;  %5852 = vmatprep.mubr.msk.bf16.mxu1 %vm567_vm2, %v6661_v54  ;;  %v4014_v3 = vor.u32 %v4012_v34, %v4010_v1  ;;  %v7548_v54 = vld [vmem:[%s6806_s27 + $0xc8] sm:$0xff]   ;;  %v4052_v1 = vshrl.u32 %v7536_v43, 16 }
 0x13f   : > { %6073 = vmatmul.mubr.msk.bf16.gmra.mrb[24].mxu0 %vm567_vm2, %v3995_v50  ;;  %v4046_v50 = vor.u32 %v4044_v13, %v4042_v17  ;;  %v4050_v31 = vrot.slane %v4048_v49, 1  ;;  %v4056_v34 = vshll.u32 %v7548_v54, 16  ;;  %v4060_v47 = vshrl.u32 %v7548_v54, 16  ;;  %v6683_v17 = vld [vmem:[%s6806_s27 + $0x74] sm:$0xff]  }
 0x140   : > { %6076 = vmatprep.mubr.msk.bf16.mxu0 %vm567_vm2, %v4003_v61  ;;  %v4019_v25 = vsel %vm370_vm1, %v4014_v3, %v4018_v16  ;;  %v7554_v61 = vld [vmem:[%s6806_s27 + $0xd0] sm:$0xff]   ;;  %v4431_v13 = vrot.slane %v7342_v0, 1  ;;  %v4435_v0 = vrot.slane %v7359_v58, 1  ;;  %v4439_v58 = vrot.slane %v7379_v6, 1 }
 0x141   : > { %v4058_v3 = vrot.slane %v4056_v34, 1  ;;  %v6675_v16 = vld [vmem:[%s6806_s27 + $0x54] sm:$0xff]   ;;  %v4054_v42 = vor.u32 %v4052_v1, %v4050_v31  ;;  %v6686_v34 = vld [vmem:[%s6806_s27 + $0x8c] sm:$0xff]   ;;  %v4443_v6 = vrot.slane %v7401_v9, 1 }
 0x142   : > { %v6690_v9 = vld [vmem:[%s6806_s27 + $0xac] sm:$0xff]  }
 0x143   : > { %v4059_v8 = vsel %vm370_vm1, %v4054_v42, %v4058_v3  ;;  %v4447_v42 = vrot.slane %v7421_v63, 1  ;;  %v4451_v63 = vrot.slane %v7441_v52, 1  ;;  %v6693_v52 = vld [vmem:[%s6806_s27 + $0xc4] sm:$0xff]  }
 0x145   : > { %5853 = vmatmul.mubr.msk.bf16.gmra.mrb[4].mxu1 %vm567_vm2, %v6663_v5  ;;  %v4051_v5 = vsel %vm370_vm1, %v4046_v50, %v4050_v31  ;;  %v6685_v31 = vld [vmem:[%s6806_s27 + $0x84] sm:$0xff]  }
 0x146   : > { %5856 = vmatprep.mubr.msk.bf16.mxu1 %vm567_vm2, %v6665_v19  ;;  %v4064_v19 = vshll.u32 %v7554_v61, 16 }
 0x147   : > { %6077 = vmatmul.mubr.msk.bf16.gmra.mrb[28].mxu0 %vm567_vm2, %v4011_v21  ;;  %v7568_v21 = vld [vmem:[%s6806_s27 + $0xd8] ss:$0 sps:$4 sm:$0x11]  }
 0x148   : > { %6080 = vmatprep.mubr.msk.bf16.mxu0 %vm567_vm2, %v4019_v25  ;;  %v4062_v25 = vor.u32 %v4060_v47, %v4058_v3  ;;  %v4066_v27 = vrot.slane %v4064_v19, 1  ;;  %v4072_v36 = vshll.u32 %v7568_v21, 16  ;;  %v6688_v47 = vld [vmem:[%s6806_s27 + $0x9c] sm:$0xff]  }
 0x14d   : > { %5857 = vmatmul.mubr.msk.bf16.gmra.mrb[8].mxu1 %vm567_vm2, %v6667_v45  ;;  %v4068_v45 = vshrl.u32 %v7554_v61, 16 }
 0x14e   : > { %5860 = vmatprep.mubr.msk.bf16.mxu1 %vm567_vm2, %v6669_v37  ;;  %v4067_v37 = vsel %vm370_vm1, %v4062_v25, %v4066_v27 }
 0x14f   : > { %6081 = vmatmul.mubr.msk.bf16.gmra.mrb[32].mxu0 %vm567_vm2, %v4027_v62  ;;  %v4070_v41 = vor.u32 %v4068_v45, %v4066_v27  ;;  %v4074_v62 = vrot.slane %v4072_v36, 1  ;;  %v6691_v27 = vld [vmem:[%s6806_s27 + $0xb4] sm:$0xff]  }
 0x150   : > { %6084 = vmatprep.mubr.msk.bf16.mxu0 %vm567_vm2, %v4035_v23  ;;  %v4430_v23 = vrot.slane %v5442_v15, 1  ;;  %v6709_v36 = vld [vmem:[%s6806_s27 + $0x74] sm:$0xff]   ;;  %v4450_v15 = vsel %vm1151_vm3, %v4447_v42, %v4449_v28 }
 0x151   : > { %v4075_v49 = vsel %vm370_vm1, %v4070_v41, %v4074_v62  ;;  %v4453_v62 = vrot.slane %v7456_v2, 1 }
 0x152   : > { %v4432_v55 = vsel %vm1151_vm3, %v4430_v23, %v4431_v13 }
 0x155   : > { %5861 = vmatmul.mubr.msk.bf16.gmra.mrb[12].mxu1 %vm567_vm2, %v6671_v56  ;;  %v4433_v56 = vrot.slane %v7354_v26, 1  ;;  %v4437_v26 = vrot.slane %v7374_v11, 1  ;;  %v4441_v11 = vrot.slane %v7396_v39, 1  ;;  %v4445_v39 = vrot.slane %v7416_v29, 1  ;;  %v6692_v29 = vld [vmem:[%s6806_s27 + $0xbc] sm:$0xff]  }
 0x156   : > { %5864 = vmatprep.mubr.msk.bf16.mxu1 %vm567_vm2, %v6673_v59 }
 0x157   : > { %6085 = vmatmul.mubr.msk.bf16.gmra.mrb[36].mxu0 %vm567_vm2, %v4043_v33  ;;  %v4434_v59 = vsel %vm1151_vm3, %v4431_v13, %v4433_v56  ;;  %v4436_v50 = vsel %vm1151_vm3, %v4433_v56, %v4435_v0  ;;  %v4438_v33 = vsel %vm1151_vm3, %v4435_v0, %v4437_v26  ;;  %v4440_v1 = vsel %vm1151_vm3, %v4437_v26, %v4439_v58  ;;  %v6711_v56 = vld [vmem:[%s6806_s27 + $0x84] sm:$0xff]   ;;  %v6712_v26 = vld [vmem:[%s6806_s27 + $0x8c] sm:$0xff]  }
 0x158   : > { %6088 = vmatprep.mubr.msk.bf16.mxu0 %vm567_vm2, %v4051_v5  ;;  %v6687_v5 = vld [vmem:[%s6806_s27 + $0x94] sm:$0xff]   ;;  %v4442_v19 = vsel %vm1151_vm3, %v4439_v58, %v4441_v11  ;;  %v4444_v3 = vsel %vm1151_vm3, %v4441_v11, %v4443_v6  ;;  %v4448_v25 = vsel %vm1151_vm3, %v4445_v39, %v4447_v42  ;;  %v2349_v13 = vshrl.u32 %v6709_v36, 16 }
 0x159   : > { %v2373_v11 = vshrl.u32 %v6712_v26, 16  ;;  %v2385_v42 = vshll.u32 %v7163_v14, 16 }
 0x15d   : > { %5865 = vmatmul.mubr.msk.bf16.gmra.mrb[16].mxu1 %vm567_vm2, %v6675_v16  ;;  %v6689_v16 = vld [vmem:[%s6806_s27 + $0xa4] sm:$0xff]  }
 0x15e   : > { %5868 = vmatprep.mubr.msk.bf16.mxu1 %vm567_vm2, %v6677_v10  ;;  %v4446_v10 = vsel %vm1151_vm3, %v4443_v6, %v4445_v39 }
 0x15f   : > { %6089 = vmatmul.mubr.msk.bf16.gmra.mrb[40].mxu0 %vm567_vm2, %v4059_v8  ;;  %v6708_v8 = vld [vmem:[%s6806_s27 + $0x6c] sm:$0xff]  }
 0x160   : > { %6092 = vmatprep.mubr.msk.bf16.mxu0 %vm567_vm2, %v4067_v37  ;;  %v2341_v45 = vshrl.u32 %v6708_v8, 16  ;;  %v2345_v37 = vshll.u32 %v6709_v36, 16 }
 0x162   : > { %v2343_v41 = vor.u32 %v2341_v45, %v7002_v24  ;;  %v2347_v44 = vrot.slane %v2345_v37, 1  ;;  %v4454_v24 = vsel %vm1151_vm3, %v4451_v63, %v4453_v62  ;;  %v2387_v45 = vrot.slane %v2385_v42, 1 }
 0x165   : > { %5869 = vmatmul.mubr.msk.bf16.gmra.mrb[20].mxu1 %vm567_vm2, %v6679_v18  ;;  %v4452_v18 = vsel %vm1151_vm3, %v4449_v28, %v4451_v63  ;;  %v2393_v63 = vshll.u32 %v7166_v53, 16  ;;  %v2401_v53 = vshll.u32 %v7176_v51, 16 }
 0x166   : > { %5872 = vmatprep.mubr.msk.bf16.mxu1 %vm567_vm2, %v6681_v7  ;;  %v6710_v7 = vld [vmem:[%s6806_s27 + $0x7c] sm:$0xff]  }
 0x167   : > { %6093 = vmatmul.mubr.msk.bf16.gmra.mrb[44].mxu0 %vm567_vm2, %v4075_v49  ;;  %v2353_v23 = vshll.u32 %v6710_v7, 16  ;;  %v4455_v49 = vrot.slane %v7461_v57, 1  ;;  %v4457_v57 = vrot.slane %v7475_v32, 1 }
 0x168   : > { %6098 = vmatprep.mubr.msk.bf16.mxu0 %vm567_vm2, %v4432_v55  ;;  %v2348_v55 = vsel %vm370_vm1, %v2343_v41, %v2347_v44  ;;  %v6714_v41 = vld [vmem:[%s6806_s27 + $0xa4] sm:$0xff]  }
 0x169   : > { %v2355_v0 = vrot.slane %v2353_v23, 1  ;;  %v4456_v2 = vsel %vm1151_vm3, %v4453_v62, %v4455_v49  ;;  %v2405_v62 = vshrl.u32 %v7176_v51, 16  ;;  %v4469_v51 = vrot.slane %v7530_v22, 1 }
 0x16d   : > { %5873 = vmatmul.mubr.msk.bf16.gmra.mrb[24].mxu1 %vm567_vm2, %v6683_v17  ;;  %v2357_v17 = vshrl.u32 %v6710_v7, 16  ;;  %v2409_v7 = vshll.u32 %v7182_v48, 16  ;;  %v2417_v48 = vshll.u32 %v7195_v4, 16 }
 0x16e   : > { %5876 = vmatprep.mubr.msk.bf16.mxu1 %vm567_vm2, %v6684_v20  ;;  %v2361_v20 = vshll.u32 %v6711_v56, 16 }
 0x16f   : > { %6099 = vmatmul.mubr.msk.bf16.vlgmr.msra.gmra.mrb[0].mxu0 %vm567_vm2, %v4434_v59  ;;  %v2351_v59 = vor.u32 %v2349_v13, %v2347_v44  ;;  %v2397_v44 = vshrl.u32 %v6714_v41, 16  ;;  %v2419_v22 = vrot.slane %v2417_v48, 1 }
 0x170   : > { %6102 = vmatprep.mubr.msk.bf16.mxu0 %vm567_vm2, %v4436_v50  ;;  %v2359_v50 = vor.u32 %v2357_v17, %v2355_v0 }
 0x171   : > { %v2356_v58 = vsel %vm370_vm1, %v2351_v59, %v2355_v0  ;;  %v2421_v59 = vshrl.u32 %v7195_v4, 16  ;;  %v4473_v4 = vrot.slane %v7548_v54, 1 }
 0x175   : > { %5877 = vmatmul.mubr.msk.bf16.gmra.mrb[28].mxu1 %vm567_vm2, %v6685_v31  ;;  %v2363_v31 = vrot.slane %v2361_v20, 1  ;;  %v6715_v20 = vld [vmem:[%s6806_s27 + $0xb4] sm:$0xff]  }
 0x176   : > { %5880 = vmatprep.mubr.msk.bf16.mxu1 %vm567_vm2, %v6686_v34  ;;  %v2369_v34 = vshll.u32 %v6712_v26, 16 }
 0x177   : > { %6103 = vmatmul.mubr.msk.bf16.gmra.mrb[4].mxu0 %vm567_vm2, %v4438_v33  ;;  %v4459_v33 = vrot.slane %v7481_v12, 1  ;;  %v4461_v12 = vrot.slane %v7493_v46, 1 }
 0x178   : > { %6106 = vmatprep.mubr.msk.bf16.mxu0 %vm567_vm2, %v4440_v1  ;;  %v2365_v1 = vshrl.u32 %v6711_v56, 16  ;;  %v4471_v56 = vrot.slane %v7536_v43, 1  ;;  %v2423_v43 = vor.u32 %v2421_v59, %v2419_v22 }
 0x179   : > { %v4460_v32 = vsel %vm1151_vm3, %v4457_v57, %v4459_v33  ;;  %v4462_v8 = vsel %vm1151_vm3, %v4459_v33, %v4461_v12 }
 0x17d   : > { %5881 = vmatmul.mubr.msk.bf16.gmra.mrb[32].mxu1 %vm567_vm2, %v6687_v5  ;;  %v2364_v5 = vsel %vm370_vm1, %v2359_v50, %v2363_v31 }
 0x17e   : > { %5884 = vmatprep.mubr.msk.bf16.mxu1 %vm567_vm2, %v6688_v47  ;;  %v6713_v47 = vld [vmem:[%s6806_s27 + $0x94] sm:$0xff]  }
 0x17f   : > { %6107 = vmatmul.mubr.msk.bf16.gmra.mrb[8].mxu0 %vm567_vm2, %v4442_v19  ;;  %v2377_v6 = vshll.u32 %v6713_v47, 16  ;;  %v4458_v19 = vsel %vm1151_vm3, %v4455_v49, %v4457_v57 }
 0x180   : > { %6110 = vmatprep.mubr.msk.bf16.mxu0 %vm567_vm2, %v4444_v3  ;;  %v2371_v3 = vrot.slane %v2369_v34, 1  ;;  %v4475_v34 = vrot.slane %v7554_v61, 1  ;;  %v4477_v61 = vrot.slane %v7568_v21, 1 }
 0x182   : > { %v2375_v39 = vor.u32 %v2373_v11, %v2371_v3  ;;  %v4474_v11 = vsel %vm1151_vm3, %v4471_v56, %v4473_v4 }
 0x185   : > { %5885 = vmatmul.mubr.msk.bf16.gmra.mrb[36].mxu1 %vm567_vm2, %v6689_v16  ;;  %v2367_v16 = vor.u32 %v2365_v1, %v2363_v31  ;;  %v4472_v31 = vsel %vm1151_vm3, %v4469_v51, %v4471_v56  ;;  %v2433_v1 = vshll.u32 %v7211_v35, 16 }
 0x186   : > { %5888 = vmatprep.mubr.msk.bf16.mxu1 %vm567_vm2, %v6690_v9  ;;  %v2379_v9 = vrot.slane %v2377_v6, 1 }
 0x187   : > { %6111 = vmatmul.mubr.msk.bf16.gmra.mrb[12].mxu0 %vm567_vm2, %v4446_v10  ;;  %v2372_v10 = vsel %vm370_vm1, %v2367_v16, %v2371_v3  ;;  %v2435_v54 = vrot.slane %v2433_v1, 1 }
 0x188   : > { %6114 = vmatprep.mubr.msk.bf16.mxu0 %vm567_vm2, %v4448_v25  ;;  %v4463_v25 = vrot.slane %v7499_v38, 1  ;;  %v2380_v28 = vsel %vm370_vm1, %v2375_v39, %v2379_v9  ;;  %v2395_v38 = vrot.slane %v2393_v63, 1 }
 0x18a   : > { %v4464_v46 = vsel %vm1151_vm3, %v4461_v12, %v4463_v25  ;;  %v2399_v49 = vor.u32 %v2397_v44, %v2395_v38  ;;  %v7760_v44 = vld [vmem:[%s7944_s2] ss:$0 sm:$0xff] }
 0x18d   : > { %5889 = vmatmul.mubr.msk.bf16.gmra.mrb[40].mxu1 %vm567_vm2, %v6691_v27  ;;  %v2381_v27 = vshrl.u32 %v6713_v47, 16  ;;  %v4476_v47 = vsel %vm1151_vm3, %v4473_v4, %v4475_v34 }
 0x18e   : > { %5892 = vmatprep.mubr.msk.bf16.mxu1 %vm567_vm2, %v6692_v29  ;;  %v2389_v29 = vshrl.u32 %v7163_v14, 16  ;;  %v4465_v14 = vrot.slane %v7512_v40, 1  ;;  %v2403_v40 = vrot.slane %v2401_v53, 1 }
 0x18f   : > { %6115 = vmatmul.mubr.msk.bf16.gmra.mrb[16].mxu0 %vm567_vm2, %v4450_v15  ;;  %v2383_v36 = vor.u32 %v2381_v27, %v2379_v9 }
 0x190   : > { %6118 = vmatprep.mubr.msk.bf16.mxu0 %vm567_vm2, %v4452_v18  ;;  %v2391_v37 = vor.u32 %v2389_v29, %v2387_v45  ;;  %v4467_v18 = vrot.slane %v7518_v60, 1  ;;  %v4466_v23 = vsel %vm1151_vm3, %v4463_v25, %v4465_v14  ;;  %v2407_v60 = vor.u32 %v2405_v62, %v2403_v40 }
 0x191   : > { %v2388_v15 = vsel %vm370_vm1, %v2383_v36, %v2387_v45  ;;  %v2404_v17 = vsel %vm370_vm1, %v2399_v49, %v2403_v40 }
 0x192   : > { %v4468_v13 = vsel %vm1151_vm3, %v4465_v14, %v4467_v18  ;;  %v4470_v50 = vsel %vm1151_vm3, %v4467_v18, %v4469_v51 }
 0x195   : > { %5893 = vmatmul.mubr.msk.bf16.gmra.mrb[44].mxu1 %vm567_vm2, %v6693_v52  ;;  %v2396_v52 = vsel %vm370_vm1, %v2391_v37, %v2395_v38 }
 0x196   : > { %5922 = vmatprep.mubr.msk.bf16.mxu1 %vm567_vm2, %v2348_v55  ;;  %v2411_v55 = vrot.slane %v2409_v7, 1  ;;  %v7766_v7 = vld [vmem:[%s7944_s2 + $0x1] ss:$0 sm:$0xff] }
 0x197   : > { %6119 = vmatmul.mubr.msk.bf16.gmra.mrb[20].mxu0 %vm567_vm2, %v4454_v24  ;;  %v2413_v24 = vshrl.u32 %v6715_v20, 16 }
 0x198   : > { %6122 = vmatprep.mubr.msk.bf16.mxu0 %vm567_vm2, %v4456_v2  ;;  %v2412_v0 = vsel %vm370_vm1, %v2407_v60, %v2411_v55  ;;  %v2425_v2 = vshll.u32 %v7201_v30, 16 }
 0x199   : > { %v2415_v57 = vor.u32 %v2413_v24, %v2411_v55 }
 0x19a   : > { %v2427_v26 = vrot.slane %v2425_v2, 1 }
 0x19b   : > { %v2420_v30 = vsel %vm370_vm1, %v2415_v57, %v2419_v22 }
 0x19d   : > { %5923 = vmatmul.mubr.msk.bf16.vlgmr.msra.gmra.mrb[24].mxu1 %vm567_vm2, %v2356_v58  ;;  %v6716_v58 = vld [vmem:[%s6806_s27 + $0xc4] sm:$0xff]  }
 0x19e   : > { %5926 = vmatprep.mubr.msk.bf16.mxu1 %vm567_vm2, %v2364_v5  ;;  %v2429_v33 = vshrl.u32 %v6716_v58, 16  ;;  %v2428_v5 = vsel %vm370_vm1, %v2423_v43, %v2427_v26 }
 0x19f   : > { %6123 = vmatmul.mubr.msk.bf16.gmra.mrb[24].mxu0 %vm567_vm2, %v4458_v19  ;;  %v4478_v19 = vsel %vm1151_vm3, %v4475_v34, %v4477_v61 }
 0x1a0   : > { %6126 = vmatprep.mubr.msk.bf16.mxu0 %vm567_vm2, %v4460_v32  ;;  %v2431_v6 = vor.u32 %v2429_v33, %v2427_v26 }
 0x1a2   : > { %v2436_v35 = vsel %vm370_vm1, %v2431_v6, %v2435_v54 }
 0x1a5   : > { %5927 = vmatmul.mubr.msk.bf16.gmra.mrb[28].mxu1 %vm567_vm2, %v2372_v10 }
 0x1a6   : > { %5930 = vmatprep.mubr.msk.bf16.mxu1 %vm567_vm2, %v2380_v28 }
 0x1a7   : > { %6127 = vmatmul.mubr.msk.bf16.gmra.mrb[28].mxu0 %vm567_vm2, %v4462_v8 }
 0x1a8   : > { %6130 = vmatprep.mubr.msk.bf16.mxu0 %vm567_vm2, %v4464_v46 }
 0x1ad   : > { %5931 = vmatmul.mubr.msk.bf16.gmra.mrb[32].mxu1 %vm567_vm2, %v2388_v15 }
 0x1ae   : > { %5934 = vmatprep.mubr.msk.bf16.mxu1 %vm567_vm2, %v2396_v52 }
 0x1af   : > { %6131 = vmatmul.mubr.msk.bf16.gmra.mrb[32].mxu0 %vm567_vm2, %v4466_v23 }
 0x1b0   : > { %6134 = vmatprep.mubr.msk.bf16.mxu0 %vm567_vm2, %v4468_v13 }
 0x1b5   : > { %5935 = vmatmul.mubr.msk.bf16.gmra.mrb[36].mxu1 %vm567_vm2, %v2404_v17 }
 0x1b6   : > { %5938 = vmatprep.mubr.msk.bf16.mxu1 %vm567_vm2, %v2412_v0 }
 0x1b7   : > { %6135 = vmatmul.mubr.msk.bf16.gmra.mrb[36].mxu0 %vm567_vm2, %v4470_v50 }
 0x1b8   : > { %6138 = vmatprep.mubr.msk.bf16.mxu0 %vm567_vm2, %v4472_v31 }
 0x1bd   : > { %5939 = vmatmul.mubr.msk.bf16.gmra.mrb[40].mxu1 %vm567_vm2, %v2420_v30 }
 0x1be   : > { %5942 = vmatprep.mubr.msk.bf16.mxu1 %vm567_vm2, %v2428_v5 }
 0x1bf   : > { %6139 = vmatmul.mubr.msk.bf16.gmra.mrb[40].mxu0 %vm567_vm2, %v4474_v11 }
 0x1c0   : > { %6142 = vmatprep.mubr.msk.bf16.mxu0 %vm567_vm2, %v4476_v47 }
 0x1c5   : > { %5943 = vmatmul.mubr.msk.bf16.gmra.mrb[44].mxu1 %vm567_vm2, %v2436_v35 }
 0x1c7   : > { %6143 = vmatmul.mubr.msk.bf16.gmra.mrb[44].mxu0 %vm567_vm2, %v4478_v19 }
 0x210   : > { %v5850_v3 = vpop.f32.mrb[0].mxu1 }
 0x211   : > { %v1828_v32 = vpop.f32.mrb[1].mxu1 }
 0x212   : > { %v5851_v16 = vpop.f32.mrb[2].mxu1 }
 0x213   : > { %v1831_v39 = vpop.f32.mrb[3].mxu1 }
 0x218   : > { %v5854_v9 = vpop.f32.mrb[4].mxu1 }
 0x219   : > { %v1844_v12 = vpop.f32.mrb[5].mxu1 }
 0x21a   : > { %v5855_v42 = vpop.f32.mrb[6].mxu1 }
 0x21b   : > { %v1847_v10 = vpop.f32.mrb[7].mxu1 }
 0x220   : > { %v7725_v25 = vpop.f32.mrb[8].mxu1 }
 0x221   : > { %v7727_v27 = vpop.f32.mrb[9].mxu1 }
 0x222   : > { %v7729_v21 = vpop.f32.mrb[10].mxu1 }
 0x223   : > { %v7731_v28 = vpop.f32.mrb[11].mxu1 }
 0x228   : > { %v7733_v29 = vpop.f32.mrb[12].mxu1 }
 0x229   : > { %v7735_v63 = vpop.f32.mrb[13].mxu1 }
 0x22a   : > { %v7737_v8 = vpop.f32.mrb[14].mxu1 }
 0x22b   : > { %v7739_v45 = vpop.f32.mrb[15].mxu1 }
 0x230   : > { %v7741_v46 = vpop.f32.mrb[16].mxu1 }
 0x231   : > { %v7743_v36 = vpop.f32.mrb[17].mxu1 }
 0x232   : > { %v7745_v37 = vpop.f32.mrb[18].mxu1 }
 0x233   : > { %v7747_v38 = vpop.f32.mrb[19].mxu1 }
 0x238   : > { %v7749_v14 = vpop.f32.mrb[20].mxu1 }
 0x239   : > { %v7751_v53 = vpop.f32.mrb[21].mxu1 }
 0x23a   : > { %v7753_v15 = vpop.f32.mrb[22].mxu1 }
 0x23b   : > { %v7755_v18 = vpop.f32.mrb[23].mxu1 }
 0x242   : > { %v6100_v41 = vpop.f32.mrb[0].mxu0 }
 0x243   : > { %v6148_v52 = vadd.f32 %v6100_v41, %v5850_v3  ;;  %v4588_v62 = vpop.f32.mrb[1].mxu0 }
 0x244   : > { %v6149_v23 = vadd.f32 %v4588_v62, %v1828_v32  ;;  %v6101_v40 = vpop.f32.mrb[2].mxu0 }
 0x245   : > { %v4834_v13 = vmul.f32 %v6148_v52, %v7760_v44  ;;  %v6150_v49 = vadd.f32 %v6101_v40, %v5851_v16  ;;  %v4591_v60 = vpop.f32.mrb[3].mxu0 }
 0x246   : > { %v4832_v55 = vmul.f32 %v6149_v23, %v7760_v44  ;;  %v6151_v51 = vadd.f32 %v4591_v60, %v1831_v39 }
 0x247   : > { %v4887_v48 = vadd.f32 %v7766_v7, %v4834_v13  ;;  %v4835_v17 = vmul.f32 %v6150_v49, %v7760_v44 }
 0x248   : > { %v4885_v56 = vadd.f32 %v7766_v7, %v4832_v55  ;;  %v4833_v20 = vmul.f32 %v6151_v51, %v7760_v44 }
 0x249   : > { %v4935_v24 = vmax.f32 %v4887_v48, 0.0  ;;  %v4888_v0 = vadd.f32 %v7766_v7, %v4835_v17 }
 0x24a   : > { %v4933_v59 = vmax.f32 %v4885_v56, 0.0  ;;  %v4886_v2 = vadd.f32 %v7766_v7, %v4833_v20  ;;  %v6104_v50 = vpop.f32.mrb[4].mxu0 }
 0x24b   : > { %4983 = vst [vmem:[%s7775_s23 + $0x10] sm:$0xff] %v4935_v24  ;;  %v4936_v22 = vmax.f32 %v4888_v0, 0.0  ;;  %v6152_v31 = vadd.f32 %v6104_v50, %v5854_v9  ;;  %v4604_v57 = vpop.f32.mrb[5].mxu0 }
 0x24c   : > { %4981 = vst [vmem:[%s7775_s23] sm:$0xff] %v4933_v59  ;;  %v4934_v43 = vmax.f32 %v4886_v2, 0.0  ;;  %v6153_v26 = vadd.f32 %v4604_v57, %v1844_v12  ;;  %v6105_v4 = vpop.f32.mrb[6].mxu0 }
 0x24d   : > { %4984 = vst [vmem:[%s7775_s23 + $0x18] sm:$0xff] %v4936_v22  ;;  %v4838_v30 = vmul.f32 %v6152_v31, %v7760_v44  ;;  %v6154_v34 = vadd.f32 %v6105_v4, %v5855_v42  ;;  %v4607_v58 = vpop.f32.mrb[7].mxu0 }
 0x24e   : > { %4982 = vst [vmem:[%s7775_s23 + $0x8] sm:$0xff] %v4934_v43  ;;  %v4836_v33 = vmul.f32 %v6153_v26, %v7760_v44  ;;  %v6155_v1 = vadd.f32 %v4607_v58, %v1847_v10 }
 0x24f   : > { %v4891_v5 = vadd.f32 %v7766_v7, %v4838_v30  ;;  %v4839_v11 = vmul.f32 %v6154_v34, %v7760_v44 }
 0x250   : > { %v4889_v47 = vadd.f32 %v7766_v7, %v4836_v33  ;;  %v4837_v6 = vmul.f32 %v6155_v1, %v7760_v44 }
 0x251   : > { %v4939_v54 = vmax.f32 %v4891_v5, 0.0  ;;  %v4892_v61 = vadd.f32 %v7766_v7, %v4839_v11 }
 0x252   : > { %v4937_v35 = vmax.f32 %v4889_v47, 0.0  ;;  %v4890_v19 = vadd.f32 %v7766_v7, %v4837_v6  ;;  %v6108_v3 = vpop.f32.mrb[8].mxu0 }
 0x253   : > { %4987 = vst [vmem:[%s7775_s23 + $0x30] sm:$0xff] %v4939_v54  ;;  %v4940_v32 = vmax.f32 %v4892_v61, 0.0  ;;  %v6156_v16 = vadd.f32 %v6108_v3, %v7725_v25  ;;  %v4620_v39 = vpop.f32.mrb[9].mxu0 }
 0x254   : > { %4985 = vst [vmem:[%s7775_s23 + $0x20] sm:$0xff] %v4937_v35  ;;  %v4938_v9 = vmax.f32 %v4890_v19, 0.0  ;;  %v6157_v12 = vadd.f32 %v4620_v39, %v7727_v27  ;;  %v6109_v42 = vpop.f32.mrb[10].mxu0 }
 0x255   : > { %4988 = vst [vmem:[%s7775_s23 + $0x38] sm:$0xff] %v4940_v32  ;;  %v4842_v10 = vmul.f32 %v6156_v16, %v7760_v44  ;;  %v6158_v41 = vadd.f32 %v6109_v42, %v7729_v21  ;;  %v4623_v52 = vpop.f32.mrb[11].mxu0 }
 0x256   : > { %4986 = vst [vmem:[%s7775_s23 + $0x28] sm:$0xff] %v4938_v9  ;;  %v4840_v62 = vmul.f32 %v6157_v12, %v7760_v44  ;;  %v6159_v23 = vadd.f32 %v4623_v52, %v7731_v28 }
 0x257   : > { %v4895_v25 = vadd.f32 %v7766_v7, %v4842_v10  ;;  %v4843_v40 = vmul.f32 %v6158_v41, %v7760_v44 }
 0x258   : > { %v4893_v27 = vadd.f32 %v7766_v7, %v4840_v62  ;;  %v4841_v13 = vmul.f32 %v6159_v23, %v7760_v44 }
 0x259   : > { %v4943_v49 = vmax.f32 %v4895_v25, 0.0  ;;  %v4896_v60 = vadd.f32 %v7766_v7, %v4843_v40 }
 0x25a   : > { %v4941_v21 = vmax.f32 %v4893_v27, 0.0  ;;  %v4894_v55 = vadd.f32 %v7766_v7, %v4841_v13  ;;  %v6112_v51 = vpop.f32.mrb[12].mxu0 }
 0x25b   : > { %4991 = vst [vmem:[%s7775_s23 + $0x50] sm:$0xff] %v4943_v49  ;;  %v4944_v48 = vmax.f32 %v4896_v60, 0.0  ;;  %v6160_v28 = vadd.f32 %v6112_v51, %v7733_v29  ;;  %v4636_v17 = vpop.f32.mrb[13].mxu0 }
 0x25c   : > { %4989 = vst [vmem:[%s7775_s23 + $0x40] sm:$0xff] %v4941_v21  ;;  %v4942_v56 = vmax.f32 %v4894_v55, 0.0  ;;  %v6161_v20 = vadd.f32 %v4636_v17, %v7735_v63  ;;  %v6113_v24 = vpop.f32.mrb[14].mxu0 }
 0x25d   : > { %4992 = vst [vmem:[%s7775_s23 + $0x58] sm:$0xff] %v4944_v48  ;;  %v4846_v0 = vmul.f32 %v6160_v28, %v7760_v44  ;;  %v6162_v59 = vadd.f32 %v6113_v24, %v7737_v8  ;;  %v4639_v2 = vpop.f32.mrb[15].mxu0 }
 0x25e   : > { %4990 = vst [vmem:[%s7775_s23 + $0x48] sm:$0xff] %v4942_v56  ;;  %v4844_v50 = vmul.f32 %v6161_v20, %v7760_v44  ;;  %v6163_v22 = vadd.f32 %v4639_v2, %v7739_v45 }
 0x25f   : > { %v4899_v29 = vadd.f32 %v7766_v7, %v4846_v0  ;;  %v4847_v31 = vmul.f32 %v6162_v59, %v7760_v44 }
 0x260   : > { %v4897_v63 = vadd.f32 %v7766_v7, %v4844_v50  ;;  %v4845_v57 = vmul.f32 %v6163_v22, %v7760_v44 }
 0x261   : > { %v4947_v43 = vmax.f32 %v4899_v29, 0.0  ;;  %v4900_v26 = vadd.f32 %v7766_v7, %v4847_v31 }
 0x262   : > { %v4945_v8 = vmax.f32 %v4897_v63, 0.0  ;;  %v4898_v4 = vadd.f32 %v7766_v7, %v4845_v57  ;;  %v6116_v30 = vpop.f32.mrb[16].mxu0 }
 0x263   : > { %4995 = vst [vmem:[%s7775_s23 + $0x70] sm:$0xff] %v4947_v43  ;;  %v4948_v34 = vmax.f32 %v4900_v26, 0.0  ;;  %v6164_v45 = vadd.f32 %v6116_v30, %v7741_v46  ;;  %v4652_v58 = vpop.f32.mrb[17].mxu0 }
 0x264   : > { %4993 = vst [vmem:[%s7775_s23 + $0x60] sm:$0xff] %v4945_v8  ;;  %v4946_v33 = vmax.f32 %v4898_v4, 0.0  ;;  %v6165_v1 = vadd.f32 %v4652_v58, %v7743_v36  ;;  %v6117_v5 = vpop.f32.mrb[18].mxu0 }
 0x265   : > { %4996 = vst [vmem:[%s7775_s23 + $0x78] sm:$0xff] %v4948_v34  ;;  %v4850_v11 = vmul.f32 %v6164_v45, %v7760_v44  ;;  %v6166_v47 = vadd.f32 %v6117_v5, %v7745_v37  ;;  %v4655_v6 = vpop.f32.mrb[19].mxu0 }
 0x266   : > { %4994 = vst [vmem:[%s7775_s23 + $0x68] sm:$0xff] %v4946_v33  ;;  %v4848_v54 = vmul.f32 %v6165_v1, %v7760_v44  ;;  %v6167_v61 = vadd.f32 %v4655_v6, %v7747_v38 }
 0x267   : > { %v4903_v46 = vadd.f32 %v7766_v7, %v4850_v11  ;;  %v4851_v35 = vmul.f32 %v6166_v47, %v7760_v44 }
 0x268   : > { %v4901_v36 = vadd.f32 %v7766_v7, %v4848_v54  ;;  %v4849_v19 = vmul.f32 %v6167_v61, %v7760_v44 }
 0x269   : > { %v4951_v3 = vmax.f32 %v4903_v46, 0.0  ;;  %v4904_v32 = vadd.f32 %v7766_v7, %v4851_v35 }
 0x26a   : > { %v4949_v37 = vmax.f32 %v4901_v36, 0.0  ;;  %v4902_v16 = vadd.f32 %v7766_v7, %v4849_v19  ;;  %v6120_v39 = vpop.f32.mrb[20].mxu0 }
 0x26b   : > { %4999 = vst [vmem:[%s7775_s23 + $0x90] sm:$0xff] %v4951_v3  ;;  %v4952_v9 = vmax.f32 %v4904_v32, 0.0  ;;  %v6168_v38 = vadd.f32 %v6120_v39, %v7749_v14  ;;  %v4668_v12 = vpop.f32.mrb[21].mxu0 }
 0x26c   : > { %4997 = vst [vmem:[%s7775_s23 + $0x80] sm:$0xff] %v4949_v37  ;;  %v4950_v42 = vmax.f32 %v4902_v16, 0.0  ;;  %v6169_v10 = vadd.f32 %v4668_v12, %v7751_v53  ;;  %v6121_v41 = vpop.f32.mrb[22].mxu0 }
 0x26d   : > { %5000 = vst [vmem:[%s7775_s23 + $0x98] sm:$0xff] %v4952_v9  ;;  %v4854_v52 = vmul.f32 %v6168_v38, %v7760_v44  ;;  %v6170_v62 = vadd.f32 %v6121_v41, %v7753_v15  ;;  %v4671_v23 = vpop.f32.mrb[23].mxu0 }
 0x26e   : > { %4998 = vst [vmem:[%s7775_s23 + $0x88] sm:$0xff] %v4950_v42  ;;  %v4852_v25 = vmul.f32 %v6169_v10, %v7760_v44  ;;  %v6171_v40 = vadd.f32 %v4671_v23, %v7755_v18 }
 0x26f   : > { %v4907_v14 = vadd.f32 %v7766_v7, %v4854_v52  ;;  %v4855_v27 = vmul.f32 %v6170_v62, %v7760_v44 }
 0x270   : > { %v5924_v13 = vpop.f32.mrb[24].mxu1  ;;  %v4905_v53 = vadd.f32 %v7766_v7, %v4852_v25  ;;  %v4853_v49 = vmul.f32 %v6171_v40, %v7760_v44 }
 0x271   : > { %v2642_v60 = vpop.f32.mrb[25].mxu1  ;;  %v4955_v15 = vmax.f32 %v4907_v14, 0.0  ;;  %v4908_v21 = vadd.f32 %v7766_v7, %v4855_v27 }
 0x272   : > { %v5925_v55 = vpop.f32.mrb[26].mxu1  ;;  %v4953_v51 = vmax.f32 %v4905_v53, 0.0  ;;  %v4906_v18 = vadd.f32 %v7766_v7, %v4853_v49  ;;  %v6124_v48 = vpop.f32.mrb[24].mxu0 }
 0x273   : > { %v2645_v28 = vpop.f32.mrb[27].mxu1  ;;  %5003 = vst [vmem:[%s7775_s23 + $0xb0] sm:$0xff] %v4955_v15  ;;  %v4956_v17 = vmax.f32 %v4908_v21, 0.0  ;;  %v6172_v56 = vadd.f32 %v6124_v48, %v5924_v13  ;;  %v4684_v20 = vpop.f32.mrb[25].mxu0 }
 0x274   : > { %5001 = vst [vmem:[%s7775_s23 + $0xa0] sm:$0xff] %v4953_v51  ;;  %v4954_v24 = vmax.f32 %v4906_v18, 0.0  ;;  %v6173_v0 = vadd.f32 %v4684_v20, %v2642_v60  ;;  %v6125_v59 = vpop.f32.mrb[26].mxu0 }
 0x275   : > { %5004 = vst [vmem:[%s7775_s23 + $0xb8] sm:$0xff] %v4956_v17  ;;  %v4858_v2 = vmul.f32 %v6172_v56, %v7760_v44  ;;  %v6174_v50 = vadd.f32 %v6125_v59, %v5925_v55  ;;  %v4687_v22 = vpop.f32.mrb[27].mxu0 }
 0x276   : > { %5002 = vst [vmem:[%s7775_s23 + $0xa8] sm:$0xff] %v4954_v24  ;;  %v4856_v29 = vmul.f32 %v6173_v0, %v7760_v44  ;;  %v6175_v31 = vadd.f32 %v4687_v22, %v2645_v28 }
 0x277   : > { %v4911_v63 = vadd.f32 %v7766_v7, %v4858_v2  ;;  %v4859_v57 = vmul.f32 %v6174_v50, %v7760_v44 }
 0x278   : > { %v5928_v43 = vpop.f32.mrb[28].mxu1  ;;  %v4909_v26 = vadd.f32 %v7766_v7, %v4856_v29  ;;  %v4857_v8 = vmul.f32 %v6175_v31, %v7760_v44 }
 0x279   : > { %v2658_v4 = vpop.f32.mrb[29].mxu1  ;;  %v4959_v30 = vmax.f32 %v4911_v63, 0.0  ;;  %v4912_v34 = vadd.f32 %v7766_v7, %v4859_v57 }
 0x27a   : > { %v5929_v45 = vpop.f32.mrb[30].mxu1  ;;  %v4957_v58 = vmax.f32 %v4909_v26, 0.0  ;;  %v4910_v33 = vadd.f32 %v7766_v7, %v4857_v8  ;;  %v6128_v1 = vpop.f32.mrb[28].mxu0 }
 0x27b   : > { %v2661_v5 = vpop.f32.mrb[31].mxu1  ;;  %5007 = vst [vmem:[%s7775_s23 + $0xd0] sm:$0xff] %v4959_v30  ;;  %v4960_v11 = vmax.f32 %v4912_v34, 0.0  ;;  %v6176_v47 = vadd.f32 %v6128_v1, %v5928_v43  ;;  %v4700_v6 = vpop.f32.mrb[29].mxu0 }
 0x27c   : > { %5005 = vst [vmem:[%s7775_s23 + $0xc0] sm:$0xff] %v4957_v58  ;;  %v4958_v54 = vmax.f32 %v4910_v33, 0.0  ;;  %v6177_v61 = vadd.f32 %v4700_v6, %v2658_v4  ;;  %v6129_v46 = vpop.f32.mrb[30].mxu0 }
 0x27d   : > { %5008 = vst [vmem:[%s7775_s23 + $0xd8] sm:$0xff] %v4960_v11  ;;  %v4862_v35 = vmul.f32 %v6176_v47, %v7760_v44  ;;  %v6178_v36 = vadd.f32 %v6129_v46, %v5929_v45  ;;  %v4703_v19 = vpop.f32.mrb[31].mxu0 }
 0x27e   : > { %5006 = vst [vmem:[%s7775_s23 + $0xc8] sm:$0xff] %v4958_v54  ;;  %v4860_v3 = vmul.f32 %v6177_v61, %v7760_v44  ;;  %v6179_v32 = vadd.f32 %v4703_v19, %v2661_v5 }
 0x27f   : > { %v4915_v37 = vadd.f32 %v7766_v7, %v4862_v35  ;;  %v4863_v16 = vmul.f32 %v6178_v36, %v7760_v44 }
 0x280   : > { %v5932_v39 = vpop.f32.mrb[32].mxu1  ;;  %v4913_v9 = vadd.f32 %v7766_v7, %v4860_v3  ;;  %v4861_v38 = vmul.f32 %v6179_v32, %v7760_v44 }
 0x281   : > { %v2674_v12 = vpop.f32.mrb[33].mxu1  ;;  %v4963_v42 = vmax.f32 %v4915_v37, 0.0  ;;  %v4916_v10 = vadd.f32 %v7766_v7, %v4863_v16 }
 0x282   : > { %v5933_v41 = vpop.f32.mrb[34].mxu1  ;;  %v4961_v52 = vmax.f32 %v4913_v9, 0.0  ;;  %v4914_v62 = vadd.f32 %v7766_v7, %v4861_v38  ;;  %v6132_v23 = vpop.f32.mrb[32].mxu0 }
 0x283   : > { %v2677_v25 = vpop.f32.mrb[35].mxu1  ;;  %5011 = vst [vmem:[%s7775_s23 + $0xf0] sm:$0xff] %v4963_v42  ;;  %v4964_v40 = vmax.f32 %v4916_v10, 0.0  ;;  %v6180_v14 = vadd.f32 %v6132_v23, %v5932_v39  ;;  %v4716_v27 = vpop.f32.mrb[33].mxu0 }
 0x284   : > { %5009 = vst [vmem:[%s7775_s23 + $0xe0] sm:$0xff] %v4961_v52  ;;  %v4962_v13 = vmax.f32 %v4914_v62, 0.0  ;;  %v6181_v53 = vadd.f32 %v4716_v27, %v2674_v12  ;;  %v6133_v49 = vpop.f32.mrb[34].mxu0 }
 0x285   : > { %5012 = vst [vmem:[%s7775_s23 + $0xf8] sm:$0xff] %v4964_v40  ;;  %v4866_v60 = vmul.f32 %v6180_v14, %v7760_v44  ;;  %v6182_v15 = vadd.f32 %v6133_v49, %v5933_v41  ;;  %v4719_v21 = vpop.f32.mrb[35].mxu0 }
 0x286   : > { %5010 = vst [vmem:[%s7775_s23 + $0xe8] sm:$0xff] %v4962_v13  ;;  %v4864_v55 = vmul.f32 %v6181_v53, %v7760_v44  ;;  %v6183_v51 = vadd.f32 %v4719_v21, %v2677_v25 }
 0x287   : > { %v4919_v18 = vadd.f32 %v7766_v7, %v4866_v60  ;;  %v4867_v48 = vmul.f32 %v6182_v15, %v7760_v44 }
 0x288   : > { %v5936_v28 = vpop.f32.mrb[36].mxu1  ;;  %v4917_v17 = vadd.f32 %v7766_v7, %v4864_v55  ;;  %v4865_v56 = vmul.f32 %v6183_v51, %v7760_v44 }
 0x289   : > { %v2690_v20 = vpop.f32.mrb[37].mxu1  ;;  %v4967_v24 = vmax.f32 %v4919_v18, 0.0  ;;  %v4920_v0 = vadd.f32 %v7766_v7, %v4867_v48 }
 0x28a   : > { %v5937_v59 = vpop.f32.mrb[38].mxu1  ;;  %v4965_v2 = vmax.f32 %v4917_v17, 0.0  ;;  %v4918_v50 = vadd.f32 %v7766_v7, %v4865_v56  ;;  %v6136_v22 = vpop.f32.mrb[36].mxu0 }
 0x28b   : > { %v2693_v29 = vpop.f32.mrb[39].mxu1  ;;  %5015 = vst [vmem:[%s7775_s23 + $0x110] sm:$0xff] %v4967_v24  ;;  %v4968_v31 = vmax.f32 %v4920_v0, 0.0  ;;  %v6184_v63 = vadd.f32 %v6136_v22, %v5936_v28  ;;  %v4732_v57 = vpop.f32.mrb[37].mxu0 }
 0x28c   : > { %5013 = vst [vmem:[%s7775_s23 + $0x100] sm:$0xff] %v4965_v2  ;;  %v4966_v43 = vmax.f32 %v4918_v50, 0.0  ;;  %v6185_v26 = vadd.f32 %v4732_v57, %v2690_v20  ;;  %v6137_v8 = vpop.f32.mrb[38].mxu0 }
 0x28d   : > { %5016 = vst [vmem:[%s7775_s23 + $0x118] sm:$0xff] %v4968_v31  ;;  %v4870_v4 = vmul.f32 %v6184_v63, %v7760_v44  ;;  %v6186_v30 = vadd.f32 %v6137_v8, %v5937_v59  ;;  %v4735_v34 = vpop.f32.mrb[39].mxu0 }
 0x28e   : > { %5014 = vst [vmem:[%s7775_s23 + $0x108] sm:$0xff] %v4966_v43  ;;  %v4868_v45 = vmul.f32 %v6185_v26, %v7760_v44  ;;  %v6187_v58 = vadd.f32 %v4735_v34, %v2693_v29 }
 0x28f   : > { %v4923_v33 = vadd.f32 %v7766_v7, %v4870_v4  ;;  %v4871_v1 = vmul.f32 %v6186_v30, %v7760_v44 }
 0x290   : > { %v5940_v5 = vpop.f32.mrb[40].mxu1  ;;  %v4921_v11 = vadd.f32 %v7766_v7, %v4868_v45  ;;  %v4869_v47 = vmul.f32 %v6187_v58, %v7760_v44 }
 0x291   : > { %v2706_v6 = vpop.f32.mrb[41].mxu1  ;;  %v4971_v54 = vmax.f32 %v4923_v33, 0.0  ;;  %v4924_v61 = vadd.f32 %v7766_v7, %v4871_v1 }
 0x292   : > { %v5941_v46 = vpop.f32.mrb[42].mxu1  ;;  %v4969_v35 = vmax.f32 %v4921_v11, 0.0  ;;  %v4922_v36 = vadd.f32 %v7766_v7, %v4869_v47  ;;  %v6140_v19 = vpop.f32.mrb[40].mxu0 }
 0x293   : > { %v2709_v3 = vpop.f32.mrb[43].mxu1  ;;  %5019 = vst [vmem:[%s7775_s23 + $0x130] sm:$0xff] %v4971_v54  ;;  %v4972_v32 = vmax.f32 %v4924_v61, 0.0  ;;  %v6188_v37 = vadd.f32 %v6140_v19, %v5940_v5  ;;  %v4748_v16 = vpop.f32.mrb[41].mxu0 }
 0x294   : > { %5017 = vst [vmem:[%s7775_s23 + $0x120] sm:$0xff] %v4969_v35  ;;  %v4970_v39 = vmax.f32 %v4922_v36, 0.0  ;;  %v6189_v9 = vadd.f32 %v4748_v16, %v2706_v6  ;;  %v6141_v38 = vpop.f32.mrb[42].mxu0 }
 0x295   : > { %5020 = vst [vmem:[%s7775_s23 + $0x138] sm:$0xff] %v4972_v32  ;;  %v4874_v12 = vmul.f32 %v6188_v37, %v7760_v44  ;;  %v6190_v42 = vadd.f32 %v6141_v38, %v5941_v46  ;;  %v4751_v10 = vpop.f32.mrb[43].mxu0 }
 0x296   : > { %5018 = vst [vmem:[%s7775_s23 + $0x128] sm:$0xff] %v4970_v39  ;;  %v4872_v41 = vmul.f32 %v6189_v9, %v7760_v44  ;;  %v6191_v52 = vadd.f32 %v4751_v10, %v2709_v3 }
 0x297   : > { %v4927_v62 = vadd.f32 %v7766_v7, %v4874_v12  ;;  %v4875_v23 = vmul.f32 %v6190_v42, %v7760_v44 }
 0x298   : > { %v5944_v25 = vpop.f32.mrb[44].mxu1  ;;  %v4925_v40 = vadd.f32 %v7766_v7, %v4872_v41  ;;  %v4873_v14 = vmul.f32 %v6191_v52, %v7760_v44 }
 0x299   : > { %v2722_v27 = vpop.f32.mrb[45].mxu1  ;;  %v4975_v13 = vmax.f32 %v4927_v62, 0.0  ;;  %v4928_v53 = vadd.f32 %v7766_v7, %v4875_v23 }
 0x29a   : > { %v5945_v49 = vpop.f32.mrb[46].mxu1  ;;  %v4973_v60 = vmax.f32 %v4925_v40, 0.0  ;;  %v4926_v15 = vadd.f32 %v7766_v7, %v4873_v14  ;;  %v6144_v21 = vpop.f32.mrb[44].mxu0 }
 0x29b   : > { %v2725_v55 = vpop.f32.mrb[47].mxu1  ;;  %5023 = vst [vmem:[%s7775_s23 + $0x150] sm:$0xff] %v4975_v13  ;;  %v4976_v51 = vmax.f32 %v4928_v53, 0.0  ;;  %v6192_v18 = vadd.f32 %v6144_v21, %v5944_v25  ;;  %v4764_v48 = vpop.f32.mrb[45].mxu0 }
 0x29c   : > { %5021 = vst [vmem:[%s7775_s23 + $0x140] sm:$0xff] %v4973_v60  ;;  %v4974_v28 = vmax.f32 %v4926_v15, 0.0  ;;  %v6193_v17 = vadd.f32 %v4764_v48, %v2722_v27  ;;  %v6145_v56 = vpop.f32.mrb[46].mxu0 }
 0x29d   : > { %5024 = vst [vmem:[%s7775_s23 + $0x158] sm:$0xff] %v4976_v51  ;;  %v4878_v20 = vmul.f32 %v6192_v18, %v7760_v44  ;;  %v6194_v24 = vadd.f32 %v6145_v56, %v5945_v49  ;;  %v4767_v0 = vpop.f32.mrb[47].mxu0 }
 0x29e   : > { %5022 = vst [vmem:[%s7775_s23 + $0x148] sm:$0xff] %v4974_v28  ;;  %v4876_v59 = vmul.f32 %v6193_v17, %v7760_v44  ;;  %v6195_v2 = vadd.f32 %v4767_v0, %v2725_v55 }
 0x29f   : > { %v4931_v50 = vadd.f32 %v7766_v7, %v4878_v20  ;;  %v4879_v22 = vmul.f32 %v6194_v24, %v7760_v44 }
 0x2a0   : > { %v4929_v29 = vadd.f32 %v7766_v7, %v4876_v59  ;;  %v4877_v31 = vmul.f32 %v6195_v2, %v7760_v44 }
 0x2a1   : > { %v4979_v63 = vmax.f32 %v4931_v50, 0.0  ;;  %v4932_v57 = vadd.f32 %v7766_v7, %v4879_v22 }
 0x2a2   : > { %v4977_v43 = vmax.f32 %v4929_v29, 0.0  ;;  %v4930_v26 = vadd.f32 %v7766_v7, %v4877_v31 }
 0x2a3   : > { %5027 = vst [vmem:[%s7775_s23 + $0x170] sm:$0xff] %v4979_v63  ;;  %v4980_v8 = vmax.f32 %v4932_v57, 0.0 }
 0x2a4   : > { %5025 = vst [vmem:[%s7775_s23 + $0x160] sm:$0xff] %v4977_v43  ;;  %v4978_v4 = vmax.f32 %v4930_v26, 0.0 }
 0x2a5   : > { %5028 = vst [vmem:[%s7775_s23 + $0x178] sm:$0xff] %v4980_v8 }
 0x2a6   : > { %5026 = vst [vmem:[%s7775_s23 + $0x168] sm:$0xff] %v4978_v4 }
 0x2a7 PF: > { %s13_s14 = sadd.s32 1, %s6739_s14   ;;  %s7946_s12 = smov %s6735_s13 }
 0x2a8   : > { %p10_p5 = scmp.ge.s32.totalorder %s13_s14, 4   ;;  %s7947_s13 = smov %s7949_s15 }
 0x2aa   :  { %12 = sbr.rel (!%p10_p5) target bundleno = 2 (0x2), region = 70 }

</bundles_post_ra>
